<compile_context>
chip_gen: v7x
topology: tpu7x:2x2x1
jax: 0.10.0
libtpu: 0.0.40
codegen_flags: <defaults>
</compile_context>

<pallas_src>
import functools
import numpy as np
import jax
import jax.numpy as jnp
from jax import lax
from jax.experimental import pallas as pl
from jax.experimental.pallas import tpu as pltpu


# ----------------------------------------------------------------------------
# helpers
# ----------------------------------------------------------------------------

def _round_up(x, m):
    return ((x + m - 1) // m) * m


def _pick_chunk(length, preferred=512):
    """Largest K-chunk <= preferred that divides `length` (falls back to L)."""
    if length <= preferred:
        return length
    for c in (preferred, 384, 256, 128, 64, 32, 16, 8):
        if c <= length and length % c == 0:
            return c
    return length


# ----------------------------------------------------------------------------
# Fused decoder-layer kernel
# ----------------------------------------------------------------------------

def decoder_layer_kernel(*refs, num_heads, d_k, d_v, eps, has_cross_mask,
                         self_kchunk, cross_kchunk, compute_dtype):
    # ---- unpack refs: inputs..., output, scratch... ----
    dec_q_ref, dec_kv_ref, enc_ref, dec_mask_ref = refs[:4]
    i = 4
    cross_mask_ref = None
    if has_cross_mask:
        cross_mask_ref = refs[i]
        i += 1
    (wq1, bq1, wk1, bk1, wv1, bv1, wo1, bo1, g1, be1,
     wq2, bq2, wk2, bk2, wv2, bv2, wo2, bo2, g2, be2,
     w1, b1, w2, b2, g3, be3) = refs[i:i + 26]
    o_ref = refs[i + 26]
    k1s, v1s, k2s, v2s = refs[i + 27:]

    cdt = compute_dtype
    H, dk, dv = num_heads, d_k, d_v
    t = pl.program_id(1)

    # ------------------------------------------------------------------
    # Hoisted K/V projections: once per batch element (t == 0), written to
    # head-major bf16 VMEM scratch and reused by every q-tile.
    # ------------------------------------------------------------------
    def project_kv(x_bf, wk, bk, wv, bv, k_scr, v_scr):
        # x_bf: (L, D) bf16 ; fused (D, H*dk) projections -> full MXU depth.
        kf = (jnp.dot(x_bf, wk[...], preferred_element_type=jnp.float32)
              + bk[...]).astype(cdt)
        vf = (jnp.dot(x_bf, wv[...], preferred_element_type=jnp.float32)
              + bv[...]).astype(cdt)
        for h in range(H):                       # static lane slices -> scratch
            k_scr[h] = kf[:, h * dk:(h + 1) * dk]
            v_scr[h] = vf[:, h * dv:(h + 1) * dv]

    @pl.when(t == 0)
    def _():
        project_kv(dec_kv_ref[0], wk1, bk1, wv1, bv1, k1s, v1s)   # self K/V
        project_kv(enc_ref[0],    wk2, bk2, wv2, bv2, k2s, v2s)   # cross K/V

    # ------------------------------------------------------------------
    # Multi-head attention for one query tile (chunked online softmax).
    # The 1/sqrt(d_k) scale is already folded into wq/bq by the wrapper.
    # ------------------------------------------------------------------
    def attend(x_f32, wq, bq, wo, bo, k_scr, v_scr, mask_ref, TK):
        TQ = x_f32.shape[0]
        L_k = k_scr.shape[1]
        # fused Q projection (TQ, D) @ (D, H*dk), then split into heads.
        qf = (jnp.dot(x_f32.astype(cdt), wq[...],
                      preferred_element_type=jnp.float32) + bq[...]).astype(cdt)
        qh = jnp.stack([qf[:, h * dk:(h + 1) * dk] for h in range(H)], axis=0)

        mask_i32 = None
        if mask_ref is not None:
            mask_i32 = mask_ref[0].astype(jnp.int32)          # (TQ, L_k)

        m = jnp.full((H, TQ, 1), -1e30, jnp.float32)
        l = jnp.zeros((H, TQ, 1), jnp.float32)
        acc = jnp.zeros((H, TQ, dv), jnp.float32)

        for c in range(L_k // TK):                            # static unroll
            c0 = c * TK
            kc = k_scr[:, c0:c0 + TK, :]                      # (H, TK, dk) bf16
            vc = v_scr[:, c0:c0 + TK, :]                      # (H, TK, dv) bf16
            s = jnp.einsum('hqd,hkd->hqk', qh, kc,
                           preferred_element_type=jnp.float32)
            if mask_i32 is not None:
                s = jnp.where(mask_i32[None, :, c0:c0 + TK] != 0,
                              jnp.float32(-10000.0), s)
            m_new = jnp.maximum(m, jnp.max(s, axis=-1, keepdims=True))
            alpha = jnp.exp(m - m_new)
            p = jnp.exp(s - m_new)
            l = alpha * l + jnp.sum(p, axis=-1, keepdims=True)
            acc = alpha * acc + jnp.einsum('hqk,hkd->hqd', p.astype(cdt), vc,
                                           preferred_element_type=jnp.float32)
            m = m_new

        ctx = acc * pl.reciprocal(l, approx=True)             # (H, TQ, dv) f32
        # output projection: concat_h(ctx_h) @ W_out  (contraction depth H*dv).
        ctx_cat = jnp.concatenate([ctx[h] for h in range(H)], axis=-1)
        return jnp.dot(ctx_cat.astype(cdt), wo[...],
                       preferred_element_type=jnp.float32) + bo[...]

    def add_ln(x, y, g, b):
        z = x + y
        mu = jnp.mean(z, axis=-1, keepdims=True)
        zc = z - mu
        var = jnp.mean(zc * zc, axis=-1, keepdims=True)
        return zc * lax.rsqrt(var + eps) * g[...] + b[...]

    def ffn(x):
        h = jnp.dot(x.astype(cdt), w1[...],
                    preferred_element_type=jnp.float32) + b1[...]
        h = jnp.maximum(h, 0.0)
        return jnp.dot(h.astype(cdt), w2[...],
                       preferred_element_type=jnp.float32) + b2[...]

    dec_q = dec_q_ref[0].astype(jnp.float32)                  # (TQ, D) residual

    # self-attention + Add&Norm
    ctx = attend(dec_q, wq1, bq1, wo1, bo1, k1s, v1s, dec_mask_ref, self_kchunk)
    x = add_ln(dec_q, ctx, g1, be1)
    # cross-attention + Add&Norm
    ctx = attend(x, wq2, bq2, wo2, bo2, k2s, v2s, cross_mask_ref, cross_kchunk)
    x = add_ln(x, ctx, g2, be2)
    # position-wise FFN + Add&Norm
    x = add_ln(x, ffn(x), g3, be3)
    o_ref[0] = x.astype(o_ref.dtype)                          # lane-dense store


# ----------------------------------------------------------------------------
# Wrapper (pallas_call glue)
# ----------------------------------------------------------------------------

def _rep_spec(arr):
    """Full-array block, same block at every grid step."""
    n = arr.ndim
    return pl.BlockSpec(arr.shape, lambda *_: (0,) * n)


def _prep_attn(p, d_k, cdt):
    """Cast MHA weights to bf16 in their natural layout; fold 1/sqrt(dk)."""
    scale = 1.0 / np.sqrt(d_k)
    return [
        (p["wq"] * scale).astype(cdt),   # (D, H*dk), scale folded in
        p["bq"] * scale,                 # (1, H*dk) f32, scale folded in
        p["wk"].astype(cdt),             # (D, H*dk)
        p["bk"],
        p["wv"].astype(cdt),             # (D, H*dv)
        p["bv"],
        p["wo"].astype(cdt),             # (H*dv, D)
        p["bo"],
    ]


def _prep_weights(params, d_k, cdt):
    w = []
    w += _prep_attn(params["dec_attn"], d_k, cdt)
    w += [params["norm1"]["gamma"], params["norm1"]["beta"]]
    w += _prep_attn(params["enc_dec_attn"], d_k, cdt)
    w += [params["norm2"]["gamma"], params["norm2"]["beta"]]
    w += [params["ffn"]["w1"].astype(cdt), params["ffn"]["b1"],
          params["ffn"]["w2"].astype(cdt), params["ffn"]["b2"]]
    w += [params["norm3"]["gamma"], params["norm3"]["beta"]]
    return w


def decoder_layer(dec_in, enc_out, dec_mask, dec_enc_mask, params, *,
                  num_heads, d_k, d_v, eps=1e-5, q_tile=128,
                  compute_dtype=jnp.bfloat16):
    """Fused DecoderLayer forward.  dec_enc_mask may be None (no cross mask)."""
    N, q_len, d_model = dec_in.shape
    k_len = enc_out.shape[1]

    # Query tile (multiple of 8 sublanes); pad the query axis to a multiple of
    # TQ so awkward lengths never force a full-sequence tile.
    TQ = _round_up(min(q_tile, _round_up(q_len, 8)), 8)
    Lq = _round_up(q_len, TQ)
    n_qt = Lq // TQ
    pad_q = Lq - q_len
    has_cross_mask = dec_enc_mask is not None

    dec_f32 = dec_in.astype(jnp.float32)
    if pad_q:
        dec_f32 = jnp.pad(dec_f32, ((0, 0), (0, pad_q), (0, 0)))
    dec_bf = dec_f32.astype(compute_dtype)        # full-seq K/V source (bf16)
    enc_bf = enc_out.astype(compute_dtype)        # encoder output (bf16)

    self_mask = dec_mask.astype(jnp.int8)
    if pad_q:                                     # padded keys/queries masked
        self_mask = jnp.pad(self_mask, ((0, 0), (0, pad_q), (0, pad_q)),
                            constant_values=1)

    inputs = [dec_f32, dec_bf, enc_bf, self_mask]
    in_specs = [
        pl.BlockSpec((1, TQ, d_model), lambda b, t: (b, t, 0)),    # q tile f32
        pl.BlockSpec((1, Lq, d_model), lambda b, t: (b, 0, 0)),    # self K/V src
        pl.BlockSpec((1, k_len, d_model), lambda b, t: (b, 0, 0)), # encoder
        pl.BlockSpec((1, TQ, Lq), lambda b, t: (b, t, 0)),         # self mask
    ]
    if has_cross_mask:
        cm = dec_enc_mask.astype(jnp.int8)
        if pad_q:
            cm = jnp.pad(cm, ((0, 0), (0, pad_q), (0, 0)), constant_values=1)
        inputs.append(cm)
        in_specs.append(pl.BlockSpec((1, TQ, k_len), lambda b, t: (b, t, 0)))

    for w in _prep_weights(params, d_k, compute_dtype):
        inputs.append(w)
        in_specs.append(_rep_spec(w))

    kernel = functools.partial(
        decoder_layer_kernel, num_heads=num_heads, d_k=d_k, d_v=d_v, eps=eps,
        has_cross_mask=has_cross_mask,
        self_kchunk=_pick_chunk(Lq), cross_kchunk=_pick_chunk(k_len),
        compute_dtype=compute_dtype)

    # Per-batch K/V caches (bf16, head-major) carried across the q-tile axis.
    scratch_shapes = [
        pltpu.VMEM((num_heads, Lq, d_k), compute_dtype),
        pltpu.VMEM((num_heads, Lq, d_v), compute_dtype),
        pltpu.VMEM((num_heads, k_len, d_k), compute_dtype),
        pltpu.VMEM((num_heads, k_len, d_v), compute_dtype),
    ]

    out = pl.pallas_call(
        kernel,
        out_shape=jax.ShapeDtypeStruct((N, Lq, d_model), dec_in.dtype),
        grid=(N, n_qt),
        in_specs=in_specs,
        out_specs=pl.BlockSpec((1, TQ, d_model), lambda b, t: (b, t, 0)),
        scratch_shapes=scratch_shapes,
        compiler_params=pltpu.CompilerParams(
            # t axis must be "arbitrary": K/V scratch is carried across it.
            dimension_semantics=("parallel", "arbitrary"),
            vmem_limit_bytes=64 * 1024 * 1024),
    )(*inputs)
    return out[:, :q_len, :] if pad_q else out


# ----------------------------------------------------------------------------
# Deterministic parameter construction (mirrors the PyTorch module's layout)
# ----------------------------------------------------------------------------

def init_mha_params(key, d_model, d_k, d_v, num_heads):
    ks = jax.random.split(key, 4)
    std_qk = np.sqrt(2.0 / (d_model + d_k))
    std_v = np.sqrt(2.0 / (d_model + d_v))
    return {
        "wq": jax.random.normal(ks[0], (d_model, d_k * num_heads), jnp.float32) * std_qk,
        "bq": jnp.zeros((1, d_k * num_heads), jnp.float32),
        "wk": jax.random.normal(ks[1], (d_model, d_k * num_heads), jnp.float32) * std_qk,
        "bk": jnp.zeros((1, d_k * num_heads), jnp.float32),
        "wv": jax.random.normal(ks[2], (d_model, d_v * num_heads), jnp.float32) * std_v,
        "bv": jnp.zeros((1, d_v * num_heads), jnp.float32),
        "wo": jax.random.normal(ks[3], (d_v * num_heads, d_model), jnp.float32) * std_v,
        "bo": jnp.zeros((1, d_model), jnp.float32),
    }


def init_ln_params(d_model):
    return {"gamma": jnp.ones((1, d_model), jnp.float32),
            "beta": jnp.zeros((1, d_model), jnp.float32)}


def init_ffn_params(key, d_model, d_ff):
    k1, k2 = jax.random.split(key)
    # Conv1d(k=1) weight (out, in, 1) == linear (in, out) after transpose/squeeze
    s1 = 1.0 / np.sqrt(d_model)
    s2 = 1.0 / np.sqrt(d_ff)
    return {
        "w1": jax.random.uniform(k1, (d_model, d_ff), jnp.float32, -s1, s1),
        "b1": jnp.zeros((1, d_ff), jnp.float32),
        "w2": jax.random.uniform(k2, (d_ff, d_model), jnp.float32, -s2, s2),
        "b2": jnp.zeros((1, d_model), jnp.float32),
    }


# ----------------------------------------------------------------------------
# Main
# ----------------------------------------------------------------------------

if __name__ == "__main__":
    N = 2            # batch
    q_len = 8        # decoder sequence length
    k_len = 8        # encoder sequence length
    dim = 32         # d_model
    n_heads = 4
    hdim = dim // n_heads   # d_k == d_v
    dff = 64

    key = jax.random.PRNGKey(0)
    k_in, k_enc, k_a1, k_a2, k_ffn = jax.random.split(key, 5)

    dec_in = jax.random.normal(k_in, (N, q_len, dim), jnp.float32)
    enc_out = jax.random.normal(k_enc, (N, k_len, dim), jnp.float32)

    # causal mask for decoder self-attention (nonzero == masked), int8
    causal = np.triu(np.ones((q_len, q_len), np.int8), k=1)
    dec_mask = jnp.broadcast_to(jnp.asarray(causal), (N, q_len, q_len))
    # no masking for encoder-decoder attention -> pass None (== attn_mask=None)
    dec_enc_mask = None

    params = {
        "dec_attn": init_mha_params(k_a1, dim, hdim, hdim, n_heads),
        "enc_dec_attn": init_mha_params(k_a2, dim, hdim, hdim, n_heads),
        "ffn": init_ffn_params(k_ffn, dim, dff),
        "norm1": init_ln_params(dim),
        "norm2": init_ln_params(dim),
        "norm3": init_ln_params(dim),
    }

    out = decoder_layer(dec_in, enc_out, dec_mask, dec_enc_mask, params,
                        num_heads=n_heads, d_k=hdim, d_v=hdim)
    out = jax.block_until_ready(out)
    assert out.shape == (N, q_len, dim)
    assert bool(jnp.all(jnp.isfinite(out)))
    print("KERNEL_OK")
</pallas_src>

<mosaic_0001>
module attributes {stable_mosaic.version = 11 : i64} {
  func.func @decoder_layer_kernel(%arg0: i32, %arg1: i32, %arg2: memref<1x8x32xf32, #tpu.memory_space<vmem>>, %arg3: memref<1x8x32xbf16, #tpu.memory_space<vmem>>, %arg4: memref<1x8x32xbf16, #tpu.memory_space<vmem>>, %arg5: memref<1x8x8xi8, #tpu.memory_space<vmem>>, %arg6: memref<32x32xbf16, #tpu.memory_space<vmem>>, %arg7: memref<1x32xf32, #tpu.memory_space<vmem>>, %arg8: memref<32x32xbf16, #tpu.memory_space<vmem>>, %arg9: memref<1x32xf32, #tpu.memory_space<vmem>>, %arg10: memref<32x32xbf16, #tpu.memory_space<vmem>>, %arg11: memref<1x32xf32, #tpu.memory_space<vmem>>, %arg12: memref<32x32xbf16, #tpu.memory_space<vmem>>, %arg13: memref<1x32xf32, #tpu.memory_space<vmem>>, %arg14: memref<1x32xf32, #tpu.memory_space<vmem>>, %arg15: memref<1x32xf32, #tpu.memory_space<vmem>>, %arg16: memref<32x32xbf16, #tpu.memory_space<vmem>>, %arg17: memref<1x32xf32, #tpu.memory_space<vmem>>, %arg18: memref<32x32xbf16, #tpu.memory_space<vmem>>, %arg19: memref<1x32xf32, #tpu.memory_space<vmem>>, %arg20: memref<32x32xbf16, #tpu.memory_space<vmem>>, %arg21: memref<1x32xf32, #tpu.memory_space<vmem>>, %arg22: memref<32x32xbf16, #tpu.memory_space<vmem>>, %arg23: memref<1x32xf32, #tpu.memory_space<vmem>>, %arg24: memref<1x32xf32, #tpu.memory_space<vmem>>, %arg25: memref<1x32xf32, #tpu.memory_space<vmem>>, %arg26: memref<32x64xbf16, #tpu.memory_space<vmem>>, %arg27: memref<1x64xf32, #tpu.memory_space<vmem>>, %arg28: memref<64x32xbf16, #tpu.memory_space<vmem>>, %arg29: memref<1x32xf32, #tpu.memory_space<vmem>>, %arg30: memref<1x32xf32, #tpu.memory_space<vmem>>, %arg31: memref<1x32xf32, #tpu.memory_space<vmem>>, %arg32: memref<1x8x32xf32, #tpu.memory_space<vmem>>, %arg33: memref<4x8x8xbf16, #tpu.memory_space<vmem>>, %arg34: memref<4x8x8xbf16, #tpu.memory_space<vmem>>, %arg35: memref<4x8x8xbf16, #tpu.memory_space<vmem>>, %arg36: memref<4x8x8xbf16, #tpu.memory_space<vmem>>) attributes {dimension_semantics = [#tpu.dimension_semantics<parallel>, #tpu.dimension_semantics<arbitrary>], iteration_bounds = array<i64: 2, 1>, scalar_prefetch = 0 : i64, scratch_operands = 4 : i64, tpu.core_type = #tpu.core_type<tc>, window_params = [{transform_indices = @transform_0, window_bounds = array<i64: 1, 8, 32>}, {transform_indices = @transform_1, window_bounds = array<i64: 1, 8, 32>}, {transform_indices = @transform_2, window_bounds = array<i64: 1, 8, 32>}, {transform_indices = @transform_3, window_bounds = array<i64: 1, 8, 8>}, {pipeline_mode = #tpu.pipeline_mode<synchronous>, transform_indices = @transform_4, window_bounds = array<i64: 32, 32>}, {pipeline_mode = #tpu.pipeline_mode<synchronous>, transform_indices = @transform_5, window_bounds = array<i64: 1, 32>}, {pipeline_mode = #tpu.pipeline_mode<synchronous>, transform_indices = @transform_6, window_bounds = array<i64: 32, 32>}, {pipeline_mode = #tpu.pipeline_mode<synchronous>, transform_indices = @transform_7, window_bounds = array<i64: 1, 32>}, {pipeline_mode = #tpu.pipeline_mode<synchronous>, transform_indices = @transform_8, window_bounds = array<i64: 32, 32>}, {pipeline_mode = #tpu.pipeline_mode<synchronous>, transform_indices = @transform_9, window_bounds = array<i64: 1, 32>}, {pipeline_mode = #tpu.pipeline_mode<synchronous>, transform_indices = @transform_10, window_bounds = array<i64: 32, 32>}, {pipeline_mode = #tpu.pipeline_mode<synchronous>, transform_indices = @transform_11, window_bounds = array<i64: 1, 32>}, {pipeline_mode = #tpu.pipeline_mode<synchronous>, transform_indices = @transform_12, window_bounds = array<i64: 1, 32>}, {pipeline_mode = #tpu.pipeline_mode<synchronous>, transform_indices = @transform_13, window_bounds = array<i64: 1, 32>}, {pipeline_mode = #tpu.pipeline_mode<synchronous>, transform_indices = @transform_14, window_bounds = array<i64: 32, 32>}, {pipeline_mode = #tpu.pipeline_mode<synchronous>, transform_indices = @transform_15, window_bounds = array<i64: 1, 32>}, {pipeline_mode = #tpu.pipeline_mode<synchronous>, transform_indices = @transform_16, window_bounds = array<i64: 32, 32>}, {pipeline_mode = #tpu.pipeline_mode<synchronous>, transform_indices = @transform_17, window_bounds = array<i64: 1, 32>}, {pipeline_mode = #tpu.pipeline_mode<synchronous>, transform_indices = @transform_18, window_bounds = array<i64: 32, 32>}, {pipeline_mode = #tpu.pipeline_mode<synchronous>, transform_indices = @transform_19, window_bounds = array<i64: 1, 32>}, {pipeline_mode = #tpu.pipeline_mode<synchronous>, transform_indices = @transform_20, window_bounds = array<i64: 32, 32>}, {pipeline_mode = #tpu.pipeline_mode<synchronous>, transform_indices = @transform_21, window_bounds = array<i64: 1, 32>}, {pipeline_mode = #tpu.pipeline_mode<synchronous>, transform_indices = @transform_22, window_bounds = array<i64: 1, 32>}, {pipeline_mode = #tpu.pipeline_mode<synchronous>, transform_indices = @transform_23, window_bounds = array<i64: 1, 32>}, {pipeline_mode = #tpu.pipeline_mode<synchronous>, transform_indices = @transform_24, window_bounds = array<i64: 32, 64>}, {pipeline_mode = #tpu.pipeline_mode<synchronous>, transform_indices = @transform_25, window_bounds = array<i64: 1, 64>}, {pipeline_mode = #tpu.pipeline_mode<synchronous>, transform_indices = @transform_26, window_bounds = array<i64: 64, 32>}, {pipeline_mode = #tpu.pipeline_mode<synchronous>, transform_indices = @transform_27, window_bounds = array<i64: 1, 32>}, {pipeline_mode = #tpu.pipeline_mode<synchronous>, transform_indices = @transform_28, window_bounds = array<i64: 1, 32>}, {pipeline_mode = #tpu.pipeline_mode<synchronous>, transform_indices = @transform_29, window_bounds = array<i64: 1, 32>}, {transform_indices = @transform_30, window_bounds = array<i64: 1, 8, 32>}]} {
    %c0_i32 = arith.constant 0 : i32
    %0 = arith.cmpi eq, %arg1, %c0_i32 : i32
    %1 = arith.extui %0 : i1 to i32
    %c0_i32_0 = arith.constant 0 : i32
    %2 = arith.cmpi ne, %1, %c0_i32_0 : i32
    scf.if %2 {
      %c0_94 = arith.constant 0 : index
      %c0_95 = arith.constant 0 : index
      %c0_96 = arith.constant 0 : index
      %215 = vector.load %arg3[%c0_94, %c0_95, %c0_96] : memref<1x8x32xbf16, #tpu.memory_space<vmem>>, vector<1x8x32xbf16>
      %216 = vector.shape_cast %215 : vector<1x8x32xbf16> to vector<8x32xbf16>
      %c0_97 = arith.constant 0 : index
      %c0_98 = arith.constant 0 : index
      %217 = vector.load %arg8[%c0_97, %c0_98] : memref<32x32xbf16, #tpu.memory_space<vmem>>, vector<32x32xbf16>
      %cst_99 = arith.constant dense<0.000000e+00> : vector<8x32xf32>
      %218 = tpu.matmul %216, %217, %cst_99 {dimension_numbers = #tpu.dot_dimension_numbers<[1], [0], [0], [1], [0, 0, 1, 1], [], []>} : vector<8x32xbf16>, vector<32x32xbf16>, vector<8x32xf32> -> vector<8x32xf32>
      %c0_100 = arith.constant 0 : index
      %c0_101 = arith.constant 0 : index
      %219 = vector.load %arg9[%c0_100, %c0_101] : memref<1x32xf32, #tpu.memory_space<vmem>>, vector<1x32xf32>
      %220 = vector.broadcast %219 : vector<1x32xf32> to vector<8x32xf32>
      %221 = arith.addf %218, %220 : vector<8x32xf32>
      %222 = arith.truncf %221 : vector<8x32xf32> to vector<8x32xbf16>
      %c0_102 = arith.constant 0 : index
      %c0_103 = arith.constant 0 : index
      %223 = vector.load %arg10[%c0_102, %c0_103] : memref<32x32xbf16, #tpu.memory_space<vmem>>, vector<32x32xbf16>
      %cst_104 = arith.constant dense<0.000000e+00> : vector<8x32xf32>
      %224 = tpu.matmul %216, %223, %cst_104 {dimension_numbers = #tpu.dot_dimension_numbers<[1], [0], [0], [1], [0, 0, 1, 1], [], []>} : vector<8x32xbf16>, vector<32x32xbf16>, vector<8x32xf32> -> vector<8x32xf32>
      %c0_105 = arith.constant 0 : index
      %c0_106 = arith.constant 0 : index
      %225 = vector.load %arg11[%c0_105, %c0_106] : memref<1x32xf32, #tpu.memory_space<vmem>>, vector<1x32xf32>
      %226 = vector.broadcast %225 : vector<1x32xf32> to vector<8x32xf32>
      %227 = arith.addf %224, %226 : vector<8x32xf32>
      %228 = arith.truncf %227 : vector<8x32xf32> to vector<8x32xbf16>
      %229 = vector.extract_strided_slice %222 {offsets = [0, 0], sizes = [8, 8], strides = [1, 1]} : vector<8x32xbf16> to vector<8x8xbf16>
      %c0_107 = arith.constant 0 : index
      %c0_108 = arith.constant 0 : index
      %c0_109 = arith.constant 0 : index
      %230 = vector.load %arg33[%c0_107, %c0_108, %c0_109] : memref<4x8x8xbf16, #tpu.memory_space<vmem>>, vector<1x8x8xbf16>
      %231 = vector.shape_cast %230 : vector<1x8x8xbf16> to vector<8x8xbf16>
      %232 = vector.shape_cast %229 : vector<8x8xbf16> to vector<1x8x8xbf16>
      tpu.vector_store %arg33[%c0_107, %c0_108, %c0_109], %232 {strides = array<i32>} : memref<4x8x8xbf16, #tpu.memory_space<vmem>>, vector<1x8x8xbf16>,
      %233 = vector.extract_strided_slice %228 {offsets = [0, 0], sizes = [8, 8], strides = [1, 1]} : vector<8x32xbf16> to vector<8x8xbf16>
      %c0_110 = arith.constant 0 : index
      %c0_111 = arith.constant 0 : index
      %c0_112 = arith.constant 0 : index
      %234 = vector.load %arg34[%c0_110, %c0_111, %c0_112] : memref<4x8x8xbf16, #tpu.memory_space<vmem>>, vector<1x8x8xbf16>
      %235 = vector.shape_cast %234 : vector<1x8x8xbf16> to vector<8x8xbf16>
      %236 = vector.shape_cast %233 : vector<8x8xbf16> to vector<1x8x8xbf16>
      tpu.vector_store %arg34[%c0_110, %c0_111, %c0_112], %236 {strides = array<i32>} : memref<4x8x8xbf16, #tpu.memory_space<vmem>>, vector<1x8x8xbf16>,
      %237 = vector.extract_strided_slice %222 {offsets = [0, 8], sizes = [8, 8], strides = [1, 1]} : vector<8x32xbf16> to vector<8x8xbf16>
      %c1 = arith.constant 1 : index
      %c0_113 = arith.constant 0 : index
      %c0_114 = arith.constant 0 : index
      %238 = vector.load %arg33[%c1, %c0_113, %c0_114] : memref<4x8x8xbf16, #tpu.memory_space<vmem>>, vector<1x8x8xbf16>
      %239 = vector.shape_cast %238 : vector<1x8x8xbf16> to vector<8x8xbf16>
      %240 = vector.shape_cast %237 : vector<8x8xbf16> to vector<1x8x8xbf16>
      tpu.vector_store %arg33[%c1, %c0_113, %c0_114], %240 {strides = array<i32>} : memref<4x8x8xbf16, #tpu.memory_space<vmem>>, vector<1x8x8xbf16>,
      %241 = vector.extract_strided_slice %228 {offsets = [0, 8], sizes = [8, 8], strides = [1, 1]} : vector<8x32xbf16> to vector<8x8xbf16>
      %c1_115 = arith.constant 1 : index
      %c0_116 = arith.constant 0 : index
      %c0_117 = arith.constant 0 : index
      %242 = vector.load %arg34[%c1_115, %c0_116, %c0_117] : memref<4x8x8xbf16, #tpu.memory_space<vmem>>, vector<1x8x8xbf16>
      %243 = vector.shape_cast %242 : vector<1x8x8xbf16> to vector<8x8xbf16>
      %244 = vector.shape_cast %241 : vector<8x8xbf16> to vector<1x8x8xbf16>
      tpu.vector_store %arg34[%c1_115, %c0_116, %c0_117], %244 {strides = array<i32>} : memref<4x8x8xbf16, #tpu.memory_space<vmem>>, vector<1x8x8xbf16>,
      %245 = vector.extract_strided_slice %222 {offsets = [0, 16], sizes = [8, 8], strides = [1, 1]} : vector<8x32xbf16> to vector<8x8xbf16>
      %c2 = arith.constant 2 : index
      %c0_118 = arith.constant 0 : index
      %c0_119 = arith.constant 0 : index
      %246 = vector.load %arg33[%c2, %c0_118, %c0_119] : memref<4x8x8xbf16, #tpu.memory_space<vmem>>, vector<1x8x8xbf16>
      %247 = vector.shape_cast %246 : vector<1x8x8xbf16> to vector<8x8xbf16>
      %248 = vector.shape_cast %245 : vector<8x8xbf16> to vector<1x8x8xbf16>
      tpu.vector_store %arg33[%c2, %c0_118, %c0_119], %248 {strides = array<i32>} : memref<4x8x8xbf16, #tpu.memory_space<vmem>>, vector<1x8x8xbf16>,
      %249 = vector.extract_strided_slice %228 {offsets = [0, 16], sizes = [8, 8], strides = [1, 1]} : vector<8x32xbf16> to vector<8x8xbf16>
      %c2_120 = arith.constant 2 : index
      %c0_121 = arith.constant 0 : index
      %c0_122 = arith.constant 0 : index
      %250 = vector.load %arg34[%c2_120, %c0_121, %c0_122] : memref<4x8x8xbf16, #tpu.memory_space<vmem>>, vector<1x8x8xbf16>
      %251 = vector.shape_cast %250 : vector<1x8x8xbf16> to vector<8x8xbf16>
      %252 = vector.shape_cast %249 : vector<8x8xbf16> to vector<1x8x8xbf16>
      tpu.vector_store %arg34[%c2_120, %c0_121, %c0_122], %252 {strides = array<i32>} : memref<4x8x8xbf16, #tpu.memory_space<vmem>>, vector<1x8x8xbf16>,
      %253 = vector.extract_strided_slice %222 {offsets = [0, 24], sizes = [8, 8], strides = [1, 1]} : vector<8x32xbf16> to vector<8x8xbf16>
      %c3 = arith.constant 3 : index
      %c0_123 = arith.constant 0 : index
      %c0_124 = arith.constant 0 : index
      %254 = vector.load %arg33[%c3, %c0_123, %c0_124] : memref<4x8x8xbf16, #tpu.memory_space<vmem>>, vector<1x8x8xbf16>
      %255 = vector.shape_cast %254 : vector<1x8x8xbf16> to vector<8x8xbf16>
      %256 = vector.shape_cast %253 : vector<8x8xbf16> to vector<1x8x8xbf16>
      tpu.vector_store %arg33[%c3, %c0_123, %c0_124], %256 {strides = array<i32>} : memref<4x8x8xbf16, #tpu.memory_space<vmem>>, vector<1x8x8xbf16>,
      %257 = vector.extract_strided_slice %228 {offsets = [0, 24], sizes = [8, 8], strides = [1, 1]} : vector<8x32xbf16> to vector<8x8xbf16>
      %c3_125 = arith.constant 3 : index
      %c0_126 = arith.constant 0 : index
      %c0_127 = arith.constant 0 : index
      %258 = vector.load %arg34[%c3_125, %c0_126, %c0_127] : memref<4x8x8xbf16, #tpu.memory_space<vmem>>, vector<1x8x8xbf16>
      %259 = vector.shape_cast %258 : vector<1x8x8xbf16> to vector<8x8xbf16>
      %260 = vector.shape_cast %257 : vector<8x8xbf16> to vector<1x8x8xbf16>
      tpu.vector_store %arg34[%c3_125, %c0_126, %c0_127], %260 {strides = array<i32>} : memref<4x8x8xbf16, #tpu.memory_space<vmem>>, vector<1x8x8xbf16>,
      %c0_128 = arith.constant 0 : index
      %c0_129 = arith.constant 0 : index
      %c0_130 = arith.constant 0 : index
      %261 = vector.load %arg4[%c0_128, %c0_129, %c0_130] : memref<1x8x32xbf16, #tpu.memory_space<vmem>>, vector<1x8x32xbf16>
      %262 = vector.shape_cast %261 : vector<1x8x32xbf16> to vector<8x32xbf16>
      %c0_131 = arith.constant 0 : index
      %c0_132 = arith.constant 0 : index
      %263 = vector.load %arg18[%c0_131, %c0_132] : memref<32x32xbf16, #tpu.memory_space<vmem>>, vector<32x32xbf16>
      %cst_133 = arith.constant dense<0.000000e+00> : vector<8x32xf32>
      %264 = tpu.matmul %262, %263, %cst_133 {dimension_numbers = #tpu.dot_dimension_numbers<[1], [0], [0], [1], [0, 0, 1, 1], [], []>} : vector<8x32xbf16>, vector<32x32xbf16>, vector<8x32xf32> -> vector<8x32xf32>
      %c0_134 = arith.constant 0 : index
      %c0_135 = arith.constant 0 : index
      %265 = vector.load %arg19[%c0_134, %c0_135] : memref<1x32xf32, #tpu.memory_space<vmem>>, vector<1x32xf32>
      %266 = vector.broadcast %265 : vector<1x32xf32> to vector<8x32xf32>
      %267 = arith.addf %264, %266 : vector<8x32xf32>
      %268 = arith.truncf %267 : vector<8x32xf32> to vector<8x32xbf16>
      %c0_136 = arith.constant 0 : index
      %c0_137 = arith.constant 0 : index
      %269 = vector.load %arg20[%c0_136, %c0_137] : memref<32x32xbf16, #tpu.memory_space<vmem>>, vector<32x32xbf16>
      %cst_138 = arith.constant dense<0.000000e+00> : vector<8x32xf32>
      %270 = tpu.matmul %262, %269, %cst_138 {dimension_numbers = #tpu.dot_dimension_numbers<[1], [0], [0], [1], [0, 0, 1, 1], [], []>} : vector<8x32xbf16>, vector<32x32xbf16>, vector<8x32xf32> -> vector<8x32xf32>
      %c0_139 = arith.constant 0 : index
      %c0_140 = arith.constant 0 : index
      %271 = vector.load %arg21[%c0_139, %c0_140] : memref<1x32xf32, #tpu.memory_space<vmem>>, vector<1x32xf32>
      %272 = vector.broadcast %271 : vector<1x32xf32> to vector<8x32xf32>
      %273 = arith.addf %270, %272 : vector<8x32xf32>
      %274 = arith.truncf %273 : vector<8x32xf32> to vector<8x32xbf16>
      %275 = vector.extract_strided_slice %268 {offsets = [0, 0], sizes = [8, 8], strides = [1, 1]} : vector<8x32xbf16> to vector<8x8xbf16>
      %c0_141 = arith.constant 0 : index
      %c0_142 = arith.constant 0 : index
      %c0_143 = arith.constant 0 : index
      %276 = vector.load %arg35[%c0_141, %c0_142, %c0_143] : memref<4x8x8xbf16, #tpu.memory_space<vmem>>, vector<1x8x8xbf16>
      %277 = vector.shape_cast %276 : vector<1x8x8xbf16> to vector<8x8xbf16>
      %278 = vector.shape_cast %275 : vector<8x8xbf16> to vector<1x8x8xbf16>
      tpu.vector_store %arg35[%c0_141, %c0_142, %c0_143], %278 {strides = array<i32>} : memref<4x8x8xbf16, #tpu.memory_space<vmem>>, vector<1x8x8xbf16>,
      %279 = vector.extract_strided_slice %274 {offsets = [0, 0], sizes = [8, 8], strides = [1, 1]} : vector<8x32xbf16> to vector<8x8xbf16>
      %c0_144 = arith.constant 0 : index
      %c0_145 = arith.constant 0 : index
      %c0_146 = arith.constant 0 : index
      %280 = vector.load %arg36[%c0_144, %c0_145, %c0_146] : memref<4x8x8xbf16, #tpu.memory_space<vmem>>, vector<1x8x8xbf16>
      %281 = vector.shape_cast %280 : vector<1x8x8xbf16> to vector<8x8xbf16>
      %282 = vector.shape_cast %279 : vector<8x8xbf16> to vector<1x8x8xbf16>
      tpu.vector_store %arg36[%c0_144, %c0_145, %c0_146], %282 {strides = array<i32>} : memref<4x8x8xbf16, #tpu.memory_space<vmem>>, vector<1x8x8xbf16>,
      %283 = vector.extract_strided_slice %268 {offsets = [0, 8], sizes = [8, 8], strides = [1, 1]} : vector<8x32xbf16> to vector<8x8xbf16>
      %c1_147 = arith.constant 1 : index
      %c0_148 = arith.constant 0 : index
      %c0_149 = arith.constant 0 : index
      %284 = vector.load %arg35[%c1_147, %c0_148, %c0_149] : memref<4x8x8xbf16, #tpu.memory_space<vmem>>, vector<1x8x8xbf16>
      %285 = vector.shape_cast %284 : vector<1x8x8xbf16> to vector<8x8xbf16>
      %286 = vector.shape_cast %283 : vector<8x8xbf16> to vector<1x8x8xbf16>
      tpu.vector_store %arg35[%c1_147, %c0_148, %c0_149], %286 {strides = array<i32>} : memref<4x8x8xbf16, #tpu.memory_space<vmem>>, vector<1x8x8xbf16>,
      %287 = vector.extract_strided_slice %274 {offsets = [0, 8], sizes = [8, 8], strides = [1, 1]} : vector<8x32xbf16> to vector<8x8xbf16>
      %c1_150 = arith.constant 1 : index
      %c0_151 = arith.constant 0 : index
      %c0_152 = arith.constant 0 : index
      %288 = vector.load %arg36[%c1_150, %c0_151, %c0_152] : memref<4x8x8xbf16, #tpu.memory_space<vmem>>, vector<1x8x8xbf16>
      %289 = vector.shape_cast %288 : vector<1x8x8xbf16> to vector<8x8xbf16>
      %290 = vector.shape_cast %287 : vector<8x8xbf16> to vector<1x8x8xbf16>
      tpu.vector_store %arg36[%c1_150, %c0_151, %c0_152], %290 {strides = array<i32>} : memref<4x8x8xbf16, #tpu.memory_space<vmem>>, vector<1x8x8xbf16>,
      %291 = vector.extract_strided_slice %268 {offsets = [0, 16], sizes = [8, 8], strides = [1, 1]} : vector<8x32xbf16> to vector<8x8xbf16>
      %c2_153 = arith.constant 2 : index
      %c0_154 = arith.constant 0 : index
      %c0_155 = arith.constant 0 : index
      %292 = vector.load %arg35[%c2_153, %c0_154, %c0_155] : memref<4x8x8xbf16, #tpu.memory_space<vmem>>, vector<1x8x8xbf16>
      %293 = vector.shape_cast %292 : vector<1x8x8xbf16> to vector<8x8xbf16>
      %294 = vector.shape_cast %291 : vector<8x8xbf16> to vector<1x8x8xbf16>
      tpu.vector_store %arg35[%c2_153, %c0_154, %c0_155], %294 {strides = array<i32>} : memref<4x8x8xbf16, #tpu.memory_space<vmem>>, vector<1x8x8xbf16>,
      %295 = vector.extract_strided_slice %274 {offsets = [0, 16], sizes = [8, 8], strides = [1, 1]} : vector<8x32xbf16> to vector<8x8xbf16>
      %c2_156 = arith.constant 2 : index
      %c0_157 = arith.constant 0 : index
      %c0_158 = arith.constant 0 : index
      %296 = vector.load %arg36[%c2_156, %c0_157, %c0_158] : memref<4x8x8xbf16, #tpu.memory_space<vmem>>, vector<1x8x8xbf16>
      %297 = vector.shape_cast %296 : vector<1x8x8xbf16> to vector<8x8xbf16>
      %298 = vector.shape_cast %295 : vector<8x8xbf16> to vector<1x8x8xbf16>
      tpu.vector_store %arg36[%c2_156, %c0_157, %c0_158], %298 {strides = array<i32>} : memref<4x8x8xbf16, #tpu.memory_space<vmem>>, vector<1x8x8xbf16>,
      %299 = vector.extract_strided_slice %268 {offsets = [0, 24], sizes = [8, 8], strides = [1, 1]} : vector<8x32xbf16> to vector<8x8xbf16>
      %c3_159 = arith.constant 3 : index
      %c0_160 = arith.constant 0 : index
      %c0_161 = arith.constant 0 : index
      %300 = vector.load %arg35[%c3_159, %c0_160, %c0_161] : memref<4x8x8xbf16, #tpu.memory_space<vmem>>, vector<1x8x8xbf16>
      %301 = vector.shape_cast %300 : vector<1x8x8xbf16> to vector<8x8xbf16>
      %302 = vector.shape_cast %299 : vector<8x8xbf16> to vector<1x8x8xbf16>
      tpu.vector_store %arg35[%c3_159, %c0_160, %c0_161], %302 {strides = array<i32>} : memref<4x8x8xbf16, #tpu.memory_space<vmem>>, vector<1x8x8xbf16>,
      %303 = vector.extract_strided_slice %274 {offsets = [0, 24], sizes = [8, 8], strides = [1, 1]} : vector<8x32xbf16> to vector<8x8xbf16>
      %c3_162 = arith.constant 3 : index
      %c0_163 = arith.constant 0 : index
      %c0_164 = arith.constant 0 : index
      %304 = vector.load %arg36[%c3_162, %c0_163, %c0_164] : memref<4x8x8xbf16, #tpu.memory_space<vmem>>, vector<1x8x8xbf16>
      %305 = vector.shape_cast %304 : vector<1x8x8xbf16> to vector<8x8xbf16>
      %306 = vector.shape_cast %303 : vector<8x8xbf16> to vector<1x8x8xbf16>
      tpu.vector_store %arg36[%c3_162, %c0_163, %c0_164], %306 {strides = array<i32>} : memref<4x8x8xbf16, #tpu.memory_space<vmem>>, vector<1x8x8xbf16>,
    } else {
    }
    %c0 = arith.constant 0 : index
    %c0_1 = arith.constant 0 : index
    %c0_2 = arith.constant 0 : index
    %3 = vector.load %arg2[%c0, %c0_1, %c0_2] : memref<1x8x32xf32, #tpu.memory_space<vmem>>, vector<1x8x32xf32>
    %4 = vector.shape_cast %3 : vector<1x8x32xf32> to vector<8x32xf32>
    %5 = arith.truncf %4 : vector<8x32xf32> to vector<8x32xbf16>
    %c0_3 = arith.constant 0 : index
    %c0_4 = arith.constant 0 : index
    %6 = vector.load %arg6[%c0_3, %c0_4] : memref<32x32xbf16, #tpu.memory_space<vmem>>, vector<32x32xbf16>
    %cst = arith.constant dense<0.000000e+00> : vector<8x32xf32>
    %7 = tpu.matmul %5, %6, %cst {dimension_numbers = #tpu.dot_dimension_numbers<[1], [0], [0], [1], [0, 0, 1, 1], [], []>} : vector<8x32xbf16>, vector<32x32xbf16>, vector<8x32xf32> -> vector<8x32xf32>
    %c0_5 = arith.constant 0 : index
    %c0_6 = arith.constant 0 : index
    %8 = vector.load %arg7[%c0_5, %c0_6] : memref<1x32xf32, #tpu.memory_space<vmem>>, vector<1x32xf32>
    %9 = vector.broadcast %8 : vector<1x32xf32> to vector<8x32xf32>
    %10 = arith.addf %7, %9 : vector<8x32xf32>
    %11 = arith.truncf %10 : vector<8x32xf32> to vector<8x32xbf16>
    %12 = vector.extract_strided_slice %11 {offsets = [0, 0], sizes = [8, 8], strides = [1, 1]} : vector<8x32xbf16> to vector<8x8xbf16>
    %13 = vector.extract_strided_slice %11 {offsets = [0, 8], sizes = [8, 8], strides = [1, 1]} : vector<8x32xbf16> to vector<8x8xbf16>
    %14 = vector.extract_strided_slice %11 {offsets = [0, 16], sizes = [8, 8], strides = [1, 1]} : vector<8x32xbf16> to vector<8x8xbf16>
    %15 = vector.extract_strided_slice %11 {offsets = [0, 24], sizes = [8, 8], strides = [1, 1]} : vector<8x32xbf16> to vector<8x8xbf16>
    %16 = vector.shape_cast %12 : vector<8x8xbf16> to vector<1x8x8xbf16>
    %17 = vector.shape_cast %13 : vector<8x8xbf16> to vector<1x8x8xbf16>
    %18 = vector.shape_cast %14 : vector<8x8xbf16> to vector<1x8x8xbf16>
    %19 = vector.shape_cast %15 : vector<8x8xbf16> to vector<1x8x8xbf16>
    %20 = tpu.concatenate %16, %17, %18, %19 in 0 : vector<1x8x8xbf16>, vector<1x8x8xbf16>, vector<1x8x8xbf16>, vector<1x8x8xbf16> -> vector<4x8x8xbf16>
    %c0_7 = arith.constant 0 : index
    %c0_8 = arith.constant 0 : index
    %c0_9 = arith.constant 0 : index
    %21 = vector.load %arg5[%c0_7, %c0_8, %c0_9] : memref<1x8x8xi8, #tpu.memory_space<vmem>>, vector<1x8x8xi8>
    %22 = vector.shape_cast %21 : vector<1x8x8xi8> to vector<8x8xi8>
    %23 = arith.extsi %22 : vector<8x8xi8> to vector<8x8xi32>
    %cst_10 = arith.constant -1.000000e+30 : f32
    %24 = vector.broadcast %cst_10 : f32 to vector<4x8x1xf32>
    %cst_11 = arith.constant 0.000000e+00 : f32
    %25 = vector.broadcast %cst_11 : f32 to vector<4x8x1xf32>
    %cst_12 = arith.constant 0.000000e+00 : f32
    %26 = vector.broadcast %cst_12 : f32 to vector<4x8x8xf32>
    %c0_13 = arith.constant 0 : index
    %c0_14 = arith.constant 0 : index
    %c0_15 = arith.constant 0 : index
    %27 = vector.load %arg33[%c0_13, %c0_14, %c0_15] : memref<4x8x8xbf16, #tpu.memory_space<vmem>>, vector<4x8x8xbf16>
    %c0_16 = arith.constant 0 : index
    %c0_17 = arith.constant 0 : index
    %c0_18 = arith.constant 0 : index
    %28 = vector.load %arg34[%c0_16, %c0_17, %c0_18] : memref<4x8x8xbf16, #tpu.memory_space<vmem>>, vector<4x8x8xbf16>
    "tpu.trace_start"() <{level = 10 : i32, message = "hqd,hkd->hqk"}> : () -> ()
    %cst_19 = arith.constant dense<0.000000e+00> : vector<4x8x8xf32>
    %29 = tpu.matmul %20, %27, %cst_19 {dimension_numbers = #tpu.dot_dimension_numbers<[2], [2], [1], [1], [0, 0, 0, 1, 1, 1], [0], [0]>} : vector<4x8x8xbf16>, vector<4x8x8xbf16>, vector<4x8x8xf32> -> vector<4x8x8xf32>
    "tpu.trace_stop"() : () -> ()
    %30 = vector.shape_cast %23 : vector<8x8xi32> to vector<1x8x8xi32>
    %c0_i32_20 = arith.constant 0 : i32
    %31 = vector.broadcast %c0_i32_20 : i32 to vector<1x8x8xi32>
    %32 = arith.cmpi ne, %30, %31 : vector<1x8x8xi32>
    %cst_21 = arith.constant -1.000000e+04 : f32
    %33 = vector.shape_cast %32 : vector<1x8x8xi1> to vector<1x8x8xi1>
    %34 = vector.broadcast %33 : vector<1x8x8xi1> to vector<4x8x8xi1>
    %35 = vector.broadcast %cst_21 : f32 to vector<4x8x8xf32>
    %36 = arith.select %34, %35, %29 : vector<4x8x8xi1>, vector<4x8x8xf32>
    %cst_22 = arith.constant dense<0xFF800000> : vector<4x8xf32>
    %37 = vector.multi_reduction <maximumf>, %36, %cst_22 [2] : vector<4x8x8xf32> to vector<4x8xf32>
    %38 = vector.shape_cast %37 : vector<4x8xf32> to vector<4x8x1xf32>
    %39 = arith.maximumf %24, %38 : vector<4x8x1xf32>
    %40 = arith.subf %24, %39 : vector<4x8x1xf32>
    %41 = math.exp %40 : vector<4x8x1xf32>
    %42 = vector.broadcast %39 : vector<4x8x1xf32> to vector<4x8x8xf32>
    %43 = arith.subf %36, %42 : vector<4x8x8xf32>
    %44 = math.exp %43 : vector<4x8x8xf32>
    %45 = arith.mulf %41, %25 : vector<4x8x1xf32>
    %cst_23 = arith.constant dense<0.000000e+00> : vector<4x8xf32>
    %46 = vector.multi_reduction <add>, %44, %cst_23 [2] : vector<4x8x8xf32> to vector<4x8xf32>
    %47 = vector.shape_cast %46 : vector<4x8xf32> to vector<4x8x1xf32>
    %48 = arith.addf %45, %47 : vector<4x8x1xf32>
    %49 = vector.broadcast %41 : vector<4x8x1xf32> to vector<4x8x8xf32>
    %50 = arith.mulf %49, %26 : vector<4x8x8xf32>
    %51 = arith.truncf %44 : vector<4x8x8xf32> to vector<4x8x8xbf16>
    "tpu.trace_start"() <{level = 10 : i32, message = "hqk,hkd->hqd"}> : () -> ()
    %cst_24 = arith.constant dense<0.000000e+00> : vector<4x8x8xf32>
    %52 = tpu.matmul %51, %28, %cst_24 {dimension_numbers = #tpu.dot_dimension_numbers<[2], [1], [1], [2], [0, 0, 0, 1, 1, 2], [0], [0]>} : vector<4x8x8xbf16>, vector<4x8x8xbf16>, vector<4x8x8xf32> -> vector<4x8x8xf32>
    "tpu.trace_stop"() : () -> ()
    %53 = arith.addf %50, %52 : vector<4x8x8xf32>
    %54 = tpu.reciprocal %48 {approx = true} : vector<4x8x1xf32> -> vector<4x8x1xf32>
    %55 = vector.broadcast %54 : vector<4x8x1xf32> to vector<4x8x8xf32>
    %56 = arith.mulf %53, %55 : vector<4x8x8xf32>
    %57 = vector.extract_strided_slice %56 {offsets = [0, 0, 0], sizes = [1, 8, 8], strides = [1, 1, 1]} : vector<4x8x8xf32> to vector<1x8x8xf32>
    %58 = vector.shape_cast %57 : vector<1x8x8xf32> to vector<8x8xf32>
    %59 = vector.extract_strided_slice %56 {offsets = [1, 0, 0], sizes = [1, 8, 8], strides = [1, 1, 1]} : vector<4x8x8xf32> to vector<1x8x8xf32>
    %60 = vector.shape_cast %59 : vector<1x8x8xf32> to vector<8x8xf32>
    %61 = vector.extract_strided_slice %56 {offsets = [2, 0, 0], sizes = [1, 8, 8], strides = [1, 1, 1]} : vector<4x8x8xf32> to vector<1x8x8xf32>
    %62 = vector.shape_cast %61 : vector<1x8x8xf32> to vector<8x8xf32>
    %63 = vector.extract_strided_slice %56 {offsets = [3, 0, 0], sizes = [1, 8, 8], strides = [1, 1, 1]} : vector<4x8x8xf32> to vector<1x8x8xf32>
    %64 = vector.shape_cast %63 : vector<1x8x8xf32> to vector<8x8xf32>
    %65 = tpu.concatenate %58, %60, %62, %64 in 1 : vector<8x8xf32>, vector<8x8xf32>, vector<8x8xf32>, vector<8x8xf32> -> vector<8x32xf32>
    %66 = arith.truncf %65 : vector<8x32xf32> to vector<8x32xbf16>
    %c0_25 = arith.constant 0 : index
    %c0_26 = arith.constant 0 : index
    %67 = vector.load %arg12[%c0_25, %c0_26] : memref<32x32xbf16, #tpu.memory_space<vmem>>, vector<32x32xbf16>
    %cst_27 = arith.constant dense<0.000000e+00> : vector<8x32xf32>
    %68 = tpu.matmul %66, %67, %cst_27 {dimension_numbers = #tpu.dot_dimension_numbers<[1], [0], [0], [1], [0, 0, 1, 1], [], []>} : vector<8x32xbf16>, vector<32x32xbf16>, vector<8x32xf32> -> vector<8x32xf32>
    %c0_28 = arith.constant 0 : index
    %c0_29 = arith.constant 0 : index
    %69 = vector.load %arg13[%c0_28, %c0_29] : memref<1x32xf32, #tpu.memory_space<vmem>>, vector<1x32xf32>
    %70 = vector.broadcast %69 : vector<1x32xf32> to vector<8x32xf32>
    %71 = arith.addf %68, %70 : vector<8x32xf32>
    %72 = arith.addf %4, %71 : vector<8x32xf32>
    %cst_30 = arith.constant dense<0.000000e+00> : vector<8xf32>
    %73 = vector.multi_reduction <add>, %72, %cst_30 [1] : vector<8x32xf32> to vector<8xf32>
    %74 = vector.shape_cast %73 : vector<8xf32> to vector<8x1xf32>
    %cst_31 = arith.constant 3.200000e+01 : f32
    %75 = vector.broadcast %cst_31 : f32 to vector<8x1xf32>
    %76 = arith.divf %74, %75 : vector<8x1xf32>
    %77 = vector.broadcast %76 : vector<8x1xf32> to vector<8x32xf32>
    %78 = arith.subf %72, %77 : vector<8x32xf32>
    %79 = arith.mulf %78, %78 : vector<8x32xf32>
    %cst_32 = arith.constant dense<0.000000e+00> : vector<8xf32>
    %80 = vector.multi_reduction <add>, %79, %cst_32 [1] : vector<8x32xf32> to vector<8xf32>
    %81 = vector.shape_cast %80 : vector<8xf32> to vector<8x1xf32>
    %cst_33 = arith.constant 3.200000e+01 : f32
    %82 = vector.broadcast %cst_33 : f32 to vector<8x1xf32>
    %83 = arith.divf %81, %82 : vector<8x1xf32>
    %cst_34 = arith.constant 9.99999974E-6 : f32
    %84 = vector.broadcast %cst_34 : f32 to vector<8x1xf32>
    %85 = arith.addf %83, %84 : vector<8x1xf32>
    %86 = math.rsqrt %85 : vector<8x1xf32>
    %87 = vector.broadcast %86 : vector<8x1xf32> to vector<8x32xf32>
    %88 = arith.mulf %78, %87 : vector<8x32xf32>
    %c0_35 = arith.constant 0 : index
    %c0_36 = arith.constant 0 : index
    %89 = vector.load %arg14[%c0_35, %c0_36] : memref<1x32xf32, #tpu.memory_space<vmem>>, vector<1x32xf32>
    %90 = vector.broadcast %89 : vector<1x32xf32> to vector<8x32xf32>
    %91 = arith.mulf %88, %90 : vector<8x32xf32>
    %c0_37 = arith.constant 0 : index
    %c0_38 = arith.constant 0 : index
    %92 = vector.load %arg15[%c0_37, %c0_38] : memref<1x32xf32, #tpu.memory_space<vmem>>, vector<1x32xf32>
    %93 = vector.broadcast %92 : vector<1x32xf32> to vector<8x32xf32>
    %94 = arith.addf %91, %93 : vector<8x32xf32>
    %95 = arith.truncf %94 : vector<8x32xf32> to vector<8x32xbf16>
    %c0_39 = arith.constant 0 : index
    %c0_40 = arith.constant 0 : index
    %96 = vector.load %arg16[%c0_39, %c0_40] : memref<32x32xbf16, #tpu.memory_space<vmem>>, vector<32x32xbf16>
    %cst_41 = arith.constant dense<0.000000e+00> : vector<8x32xf32>
    %97 = tpu.matmul %95, %96, %cst_41 {dimension_numbers = #tpu.dot_dimension_numbers<[1], [0], [0], [1], [0, 0, 1, 1], [], []>} : vector<8x32xbf16>, vector<32x32xbf16>, vector<8x32xf32> -> vector<8x32xf32>
    %c0_42 = arith.constant 0 : index
    %c0_43 = arith.constant 0 : index
    %98 = vector.load %arg17[%c0_42, %c0_43] : memref<1x32xf32, #tpu.memory_space<vmem>>, vector<1x32xf32>
    %99 = vector.broadcast %98 : vector<1x32xf32> to vector<8x32xf32>
    %100 = arith.addf %97, %99 : vector<8x32xf32>
    %101 = arith.truncf %100 : vector<8x32xf32> to vector<8x32xbf16>
    %102 = vector.extract_strided_slice %101 {offsets = [0, 0], sizes = [8, 8], strides = [1, 1]} : vector<8x32xbf16> to vector<8x8xbf16>
    %103 = vector.extract_strided_slice %101 {offsets = [0, 8], sizes = [8, 8], strides = [1, 1]} : vector<8x32xbf16> to vector<8x8xbf16>
    %104 = vector.extract_strided_slice %101 {offsets = [0, 16], sizes = [8, 8], strides = [1, 1]} : vector<8x32xbf16> to vector<8x8xbf16>
    %105 = vector.extract_strided_slice %101 {offsets = [0, 24], sizes = [8, 8], strides = [1, 1]} : vector<8x32xbf16> to vector<8x8xbf16>
    %106 = vector.shape_cast %102 : vector<8x8xbf16> to vector<1x8x8xbf16>
    %107 = vector.shape_cast %103 : vector<8x8xbf16> to vector<1x8x8xbf16>
    %108 = vector.shape_cast %104 : vector<8x8xbf16> to vector<1x8x8xbf16>
    %109 = vector.shape_cast %105 : vector<8x8xbf16> to vector<1x8x8xbf16>
    %110 = tpu.concatenate %106, %107, %108, %109 in 0 : vector<1x8x8xbf16>, vector<1x8x8xbf16>, vector<1x8x8xbf16>, vector<1x8x8xbf16> -> vector<4x8x8xbf16>
    %cst_44 = arith.constant -1.000000e+30 : f32
    %111 = vector.broadcast %cst_44 : f32 to vector<4x8x1xf32>
    %cst_45 = arith.constant 0.000000e+00 : f32
    %112 = vector.broadcast %cst_45 : f32 to vector<4x8x1xf32>
    %cst_46 = arith.constant 0.000000e+00 : f32
    %113 = vector.broadcast %cst_46 : f32 to vector<4x8x8xf32>
    %c0_47 = arith.constant 0 : index
    %c0_48 = arith.constant 0 : index
    %c0_49 = arith.constant 0 : index
    %114 = vector.load %arg35[%c0_47, %c0_48, %c0_49] : memref<4x8x8xbf16, #tpu.memory_space<vmem>>, vector<4x8x8xbf16>
    %c0_50 = arith.constant 0 : index
    %c0_51 = arith.constant 0 : index
    %c0_52 = arith.constant 0 : index
    %115 = vector.load %arg36[%c0_50, %c0_51, %c0_52] : memref<4x8x8xbf16, #tpu.memory_space<vmem>>, vector<4x8x8xbf16>
    "tpu.trace_start"() <{level = 10 : i32, message = "hqd,hkd->hqk"}> : () -> ()
    %cst_53 = arith.constant dense<0.000000e+00> : vector<4x8x8xf32>
    %116 = tpu.matmul %110, %114, %cst_53 {dimension_numbers = #tpu.dot_dimension_numbers<[2], [2], [1], [1], [0, 0, 0, 1, 1, 1], [0], [0]>} : vector<4x8x8xbf16>, vector<4x8x8xbf16>, vector<4x8x8xf32> -> vector<4x8x8xf32>
    "tpu.trace_stop"() : () -> ()
    %cst_54 = arith.constant dense<0xFF800000> : vector<4x8xf32>
    %117 = vector.multi_reduction <maximumf>, %116, %cst_54 [2] : vector<4x8x8xf32> to vector<4x8xf32>
    %118 = vector.shape_cast %117 : vector<4x8xf32> to vector<4x8x1xf32>
    %119 = arith.maximumf %111, %118 : vector<4x8x1xf32>
    %120 = arith.subf %111, %119 : vector<4x8x1xf32>
    %121 = math.exp %120 : vector<4x8x1xf32>
    %122 = vector.broadcast %119 : vector<4x8x1xf32> to vector<4x8x8xf32>
    %123 = arith.subf %116, %122 : vector<4x8x8xf32>
    %124 = math.exp %123 : vector<4x8x8xf32>
    %125 = arith.mulf %121, %112 : vector<4x8x1xf32>
    %cst_55 = arith.constant dense<0.000000e+00> : vector<4x8xf32>
    %126 = vector.multi_reduction <add>, %124, %cst_55 [2] : vector<4x8x8xf32> to vector<4x8xf32>
    %127 = vector.shape_cast %126 : vector<4x8xf32> to vector<4x8x1xf32>
    %128 = arith.addf %125, %127 : vector<4x8x1xf32>
    %129 = vector.broadcast %121 : vector<4x8x1xf32> to vector<4x8x8xf32>
    %130 = arith.mulf %129, %113 : vector<4x8x8xf32>
    %131 = arith.truncf %124 : vector<4x8x8xf32> to vector<4x8x8xbf16>
    "tpu.trace_start"() <{level = 10 : i32, message = "hqk,hkd->hqd"}> : () -> ()
    %cst_56 = arith.constant dense<0.000000e+00> : vector<4x8x8xf32>
    %132 = tpu.matmul %131, %115, %cst_56 {dimension_numbers = #tpu.dot_dimension_numbers<[2], [1], [1], [2], [0, 0, 0, 1, 1, 2], [0], [0]>} : vector<4x8x8xbf16>, vector<4x8x8xbf16>, vector<4x8x8xf32> -> vector<4x8x8xf32>
    "tpu.trace_stop"() : () -> ()
    %133 = arith.addf %130, %132 : vector<4x8x8xf32>
    %134 = tpu.reciprocal %128 {approx = true} : vector<4x8x1xf32> -> vector<4x8x1xf32>
    %135 = vector.broadcast %134 : vector<4x8x1xf32> to vector<4x8x8xf32>
    %136 = arith.mulf %133, %135 : vector<4x8x8xf32>
    %137 = vector.extract_strided_slice %136 {offsets = [0, 0, 0], sizes = [1, 8, 8], strides = [1, 1, 1]} : vector<4x8x8xf32> to vector<1x8x8xf32>
    %138 = vector.shape_cast %137 : vector<1x8x8xf32> to vector<8x8xf32>
    %139 = vector.extract_strided_slice %136 {offsets = [1, 0, 0], sizes = [1, 8, 8], strides = [1, 1, 1]} : vector<4x8x8xf32> to vector<1x8x8xf32>
    %140 = vector.shape_cast %139 : vector<1x8x8xf32> to vector<8x8xf32>
    %141 = vector.extract_strided_slice %136 {offsets = [2, 0, 0], sizes = [1, 8, 8], strides = [1, 1, 1]} : vector<4x8x8xf32> to vector<1x8x8xf32>
    %142 = vector.shape_cast %141 : vector<1x8x8xf32> to vector<8x8xf32>
    %143 = vector.extract_strided_slice %136 {offsets = [3, 0, 0], sizes = [1, 8, 8], strides = [1, 1, 1]} : vector<4x8x8xf32> to vector<1x8x8xf32>
    %144 = vector.shape_cast %143 : vector<1x8x8xf32> to vector<8x8xf32>
    %145 = tpu.concatenate %138, %140, %142, %144 in 1 : vector<8x8xf32>, vector<8x8xf32>, vector<8x8xf32>, vector<8x8xf32> -> vector<8x32xf32>
    %146 = arith.truncf %145 : vector<8x32xf32> to vector<8x32xbf16>
    %c0_57 = arith.constant 0 : index
    %c0_58 = arith.constant 0 : index
    %147 = vector.load %arg22[%c0_57, %c0_58] : memref<32x32xbf16, #tpu.memory_space<vmem>>, vector<32x32xbf16>
    %cst_59 = arith.constant dense<0.000000e+00> : vector<8x32xf32>
    %148 = tpu.matmul %146, %147, %cst_59 {dimension_numbers = #tpu.dot_dimension_numbers<[1], [0], [0], [1], [0, 0, 1, 1], [], []>} : vector<8x32xbf16>, vector<32x32xbf16>, vector<8x32xf32> -> vector<8x32xf32>
    %c0_60 = arith.constant 0 : index
    %c0_61 = arith.constant 0 : index
    %149 = vector.load %arg23[%c0_60, %c0_61] : memref<1x32xf32, #tpu.memory_space<vmem>>, vector<1x32xf32>
    %150 = vector.broadcast %149 : vector<1x32xf32> to vector<8x32xf32>
    %151 = arith.addf %148, %150 : vector<8x32xf32>
    %152 = arith.addf %94, %151 : vector<8x32xf32>
    %cst_62 = arith.constant dense<0.000000e+00> : vector<8xf32>
    %153 = vector.multi_reduction <add>, %152, %cst_62 [1] : vector<8x32xf32> to vector<8xf32>
    %154 = vector.shape_cast %153 : vector<8xf32> to vector<8x1xf32>
    %cst_63 = arith.constant 3.200000e+01 : f32
    %155 = vector.broadcast %cst_63 : f32 to vector<8x1xf32>
    %156 = arith.divf %154, %155 : vector<8x1xf32>
    %157 = vector.broadcast %156 : vector<8x1xf32> to vector<8x32xf32>
    %158 = arith.subf %152, %157 : vector<8x32xf32>
    %159 = arith.mulf %158, %158 : vector<8x32xf32>
    %cst_64 = arith.constant dense<0.000000e+00> : vector<8xf32>
    %160 = vector.multi_reduction <add>, %159, %cst_64 [1] : vector<8x32xf32> to vector<8xf32>
    %161 = vector.shape_cast %160 : vector<8xf32> to vector<8x1xf32>
    %cst_65 = arith.constant 3.200000e+01 : f32
    %162 = vector.broadcast %cst_65 : f32 to vector<8x1xf32>
    %163 = arith.divf %161, %162 : vector<8x1xf32>
    %cst_66 = arith.constant 9.99999974E-6 : f32
    %164 = vector.broadcast %cst_66 : f32 to vector<8x1xf32>
    %165 = arith.addf %163, %164 : vector<8x1xf32>
    %166 = math.rsqrt %165 : vector<8x1xf32>
    %167 = vector.broadcast %166 : vector<8x1xf32> to vector<8x32xf32>
    %168 = arith.mulf %158, %167 : vector<8x32xf32>
    %c0_67 = arith.constant 0 : index
    %c0_68 = arith.constant 0 : index
    %169 = vector.load %arg24[%c0_67, %c0_68] : memref<1x32xf32, #tpu.memory_space<vmem>>, vector<1x32xf32>
    %170 = vector.broadcast %169 : vector<1x32xf32> to vector<8x32xf32>
    %171 = arith.mulf %168, %170 : vector<8x32xf32>
    %c0_69 = arith.constant 0 : index
    %c0_70 = arith.constant 0 : index
    %172 = vector.load %arg25[%c0_69, %c0_70] : memref<1x32xf32, #tpu.memory_space<vmem>>, vector<1x32xf32>
    %173 = vector.broadcast %172 : vector<1x32xf32> to vector<8x32xf32>
    %174 = arith.addf %171, %173 : vector<8x32xf32>
    %175 = arith.truncf %174 : vector<8x32xf32> to vector<8x32xbf16>
    %c0_71 = arith.constant 0 : index
    %c0_72 = arith.constant 0 : index
    %176 = vector.load %arg26[%c0_71, %c0_72] : memref<32x64xbf16, #tpu.memory_space<vmem>>, vector<32x64xbf16>
    %cst_73 = arith.constant dense<0.000000e+00> : vector<8x64xf32>
    %177 = tpu.matmul %175, %176, %cst_73 {dimension_numbers = #tpu.dot_dimension_numbers<[1], [0], [0], [1], [0, 0, 1, 1], [], []>} : vector<8x32xbf16>, vector<32x64xbf16>, vector<8x64xf32> -> vector<8x64xf32>
    %c0_74 = arith.constant 0 : index
    %c0_75 = arith.constant 0 : index
    %178 = vector.load %arg27[%c0_74, %c0_75] : memref<1x64xf32, #tpu.memory_space<vmem>>, vector<1x64xf32>
    %179 = vector.broadcast %178 : vector<1x64xf32> to vector<8x64xf32>
    %180 = arith.addf %177, %179 : vector<8x64xf32>
    %cst_76 = arith.constant 0.000000e+00 : f32
    %181 = vector.broadcast %cst_76 : f32 to vector<8x64xf32>
    %182 = arith.maximumf %180, %181 : vector<8x64xf32>
    %183 = arith.truncf %182 : vector<8x64xf32> to vector<8x64xbf16>
    %c0_77 = arith.constant 0 : index
    %c0_78 = arith.constant 0 : index
    %184 = vector.load %arg28[%c0_77, %c0_78] : memref<64x32xbf16, #tpu.memory_space<vmem>>, vector<64x32xbf16>
    %cst_79 = arith.constant dense<0.000000e+00> : vector<8x32xf32>
    %185 = tpu.matmul %183, %184, %cst_79 {dimension_numbers = #tpu.dot_dimension_numbers<[1], [0], [0], [1], [0, 0, 1, 1], [], []>} : vector<8x64xbf16>, vector<64x32xbf16>, vector<8x32xf32> -> vector<8x32xf32>
    %c0_80 = arith.constant 0 : index
    %c0_81 = arith.constant 0 : index
    %186 = vector.load %arg29[%c0_80, %c0_81] : memref<1x32xf32, #tpu.memory_space<vmem>>, vector<1x32xf32>
    %187 = vector.broadcast %186 : vector<1x32xf32> to vector<8x32xf32>
    %188 = arith.addf %185, %187 : vector<8x32xf32>
    %189 = arith.addf %174, %188 : vector<8x32xf32>
    %cst_82 = arith.constant dense<0.000000e+00> : vector<8xf32>
    %190 = vector.multi_reduction <add>, %189, %cst_82 [1] : vector<8x32xf32> to vector<8xf32>
    %191 = vector.shape_cast %190 : vector<8xf32> to vector<8x1xf32>
    %cst_83 = arith.constant 3.200000e+01 : f32
    %192 = vector.broadcast %cst_83 : f32 to vector<8x1xf32>
    %193 = arith.divf %191, %192 : vector<8x1xf32>
    %194 = vector.broadcast %193 : vector<8x1xf32> to vector<8x32xf32>
    %195 = arith.subf %189, %194 : vector<8x32xf32>
    %196 = arith.mulf %195, %195 : vector<8x32xf32>
    %cst_84 = arith.constant dense<0.000000e+00> : vector<8xf32>
    %197 = vector.multi_reduction <add>, %196, %cst_84 [1] : vector<8x32xf32> to vector<8xf32>
    %198 = vector.shape_cast %197 : vector<8xf32> to vector<8x1xf32>
    %cst_85 = arith.constant 3.200000e+01 : f32
    %199 = vector.broadcast %cst_85 : f32 to vector<8x1xf32>
    %200 = arith.divf %198, %199 : vector<8x1xf32>
    %cst_86 = arith.constant 9.99999974E-6 : f32
    %201 = vector.broadcast %cst_86 : f32 to vector<8x1xf32>
    %202 = arith.addf %200, %201 : vector<8x1xf32>
    %203 = math.rsqrt %202 : vector<8x1xf32>
    %204 = vector.broadcast %203 : vector<8x1xf32> to vector<8x32xf32>
    %205 = arith.mulf %195, %204 : vector<8x32xf32>
    %c0_87 = arith.constant 0 : index
    %c0_88 = arith.constant 0 : index
    %206 = vector.load %arg30[%c0_87, %c0_88] : memref<1x32xf32, #tpu.memory_space<vmem>>, vector<1x32xf32>
    %207 = vector.broadcast %206 : vector<1x32xf32> to vector<8x32xf32>
    %208 = arith.mulf %205, %207 : vector<8x32xf32>
    %c0_89 = arith.constant 0 : index
    %c0_90 = arith.constant 0 : index
    %209 = vector.load %arg31[%c0_89, %c0_90] : memref<1x32xf32, #tpu.memory_space<vmem>>, vector<1x32xf32>
    %210 = vector.broadcast %209 : vector<1x32xf32> to vector<8x32xf32>
    %211 = arith.addf %208, %210 : vector<8x32xf32>
    %c0_91 = arith.constant 0 : index
    %c0_92 = arith.constant 0 : index
    %c0_93 = arith.constant 0 : index
    %212 = vector.load %arg32[%c0_91, %c0_92, %c0_93] : memref<1x8x32xf32, #tpu.memory_space<vmem>>, vector<1x8x32xf32>
    %213 = vector.shape_cast %212 : vector<1x8x32xf32> to vector<8x32xf32>
    %214 = vector.shape_cast %211 : vector<8x32xf32> to vector<1x8x32xf32>
    tpu.vector_store %arg32[%c0_91, %c0_92, %c0_93], %214 {strides = array<i32>} : memref<1x8x32xf32, #tpu.memory_space<vmem>>, vector<1x8x32xf32>,
    return
  }
  func.func @transform_0(%arg0: i32, %arg1: i32) -> (i32, i32, i32) {
    %c0_i32 = arith.constant 0 : i32
    %c0_i32_0 = arith.constant 0 : i32
    return %arg0, %arg1, %c0_i32 : i32, i32, i32
  }
  func.func @transform_1(%arg0: i32, %arg1: i32) -> (i32, i32, i32) {
    %c0_i32 = arith.constant 0 : i32
    %c0_i32_0 = arith.constant 0 : i32
    %c0_i32_1 = arith.constant 0 : i32
    return %arg0, %c0_i32, %c0_i32_0 : i32, i32, i32
  }
  func.func @transform_2(%arg0: i32, %arg1: i32) -> (i32, i32, i32) {
    %c0_i32 = arith.constant 0 : i32
    %c0_i32_0 = arith.constant 0 : i32
    %c0_i32_1 = arith.constant 0 : i32
    return %arg0, %c0_i32, %c0_i32_0 : i32, i32, i32
  }
  func.func @transform_3(%arg0: i32, %arg1: i32) -> (i32, i32, i32) {
    %c0_i32 = arith.constant 0 : i32
    %c0_i32_0 = arith.constant 0 : i32
    return %arg0, %arg1, %c0_i32 : i32, i32, i32
  }
  func.func @transform_4(%arg0: i32, %arg1: i32) -> (i32, i32) {
    %c0_i32 = arith.constant 0 : i32
    %c0_i32_0 = arith.constant 0 : i32
    %c0_i32_1 = arith.constant 0 : i32
    return %c0_i32, %c0_i32_0 : i32, i32
  }
  func.func @transform_5(%arg0: i32, %arg1: i32) -> (i32, i32) {
    %c0_i32 = arith.constant 0 : i32
    %c0_i32_0 = arith.constant 0 : i32
    %c0_i32_1 = arith.constant 0 : i32
    return %c0_i32, %c0_i32_0 : i32, i32
  }
  func.func @transform_6(%arg0: i32, %arg1: i32) -> (i32, i32) {
    %c0_i32 = arith.constant 0 : i32
    %c0_i32_0 = arith.constant 0 : i32
    %c0_i32_1 = arith.constant 0 : i32
    return %c0_i32, %c0_i32_0 : i32, i32
  }
  func.func @transform_7(%arg0: i32, %arg1: i32) -> (i32, i32) {
    %c0_i32 = arith.constant 0 : i32
    %c0_i32_0 = arith.constant 0 : i32
    %c0_i32_1 = arith.constant 0 : i32
    return %c0_i32, %c0_i32_0 : i32, i32
  }
  func.func @transform_8(%arg0: i32, %arg1: i32) -> (i32, i32) {
    %c0_i32 = arith.constant 0 : i32
    %c0_i32_0 = arith.constant 0 : i32
    %c0_i32_1 = arith.constant 0 : i32
    return %c0_i32, %c0_i32_0 : i32, i32
  }
  func.func @transform_9(%arg0: i32, %arg1: i32) -> (i32, i32) {
    %c0_i32 = arith.constant 0 : i32
    %c0_i32_0 = arith.constant 0 : i32
    %c0_i32_1 = arith.constant 0 : i32
    return %c0_i32, %c0_i32_0 : i32, i32
  }
  func.func @transform_10(%arg0: i32, %arg1: i32) -> (i32, i32) {
    %c0_i32 = arith.constant 0 : i32
    %c0_i32_0 = arith.constant 0 : i32
    %c0_i32_1 = arith.constant 0 : i32
    return %c0_i32, %c0_i32_0 : i32, i32
  }
  func.func @transform_11(%arg0: i32, %arg1: i32) -> (i32, i32) {
    %c0_i32 = arith.constant 0 : i32
    %c0_i32_0 = arith.constant 0 : i32
    %c0_i32_1 = arith.constant 0 : i32
    return %c0_i32, %c0_i32_0 : i32, i32
  }
  func.func @transform_12(%arg0: i32, %arg1: i32) -> (i32, i32) {
    %c0_i32 = arith.constant 0 : i32
    %c0_i32_0 = arith.constant 0 : i32
    %c0_i32_1 = arith.constant 0 : i32
    return %c0_i32, %c0_i32_0 : i32, i32
  }
  func.func @transform_13(%arg0: i32, %arg1: i32) -> (i32, i32) {
    %c0_i32 = arith.constant 0 : i32
    %c0_i32_0 = arith.constant 0 : i32
    %c0_i32_1 = arith.constant 0 : i32
    return %c0_i32, %c0_i32_0 : i32, i32
  }
  func.func @transform_14(%arg0: i32, %arg1: i32) -> (i32, i32) {
    %c0_i32 = arith.constant 0 : i32
    %c0_i32_0 = arith.constant 0 : i32
    %c0_i32_1 = arith.constant 0 : i32
    return %c0_i32, %c0_i32_0 : i32, i32
  }
  func.func @transform_15(%arg0: i32, %arg1: i32) -> (i32, i32) {
    %c0_i32 = arith.constant 0 : i32
    %c0_i32_0 = arith.constant 0 : i32
    %c0_i32_1 = arith.constant 0 : i32
    return %c0_i32, %c0_i32_0 : i32, i32
  }
  func.func @transform_16(%arg0: i32, %arg1: i32) -> (i32, i32) {
    %c0_i32 = arith.constant 0 : i32
    %c0_i32_0 = arith.constant 0 : i32
    %c0_i32_1 = arith.constant 0 : i32
    return %c0_i32, %c0_i32_0 : i32, i32
  }
  func.func @transform_17(%arg0: i32, %arg1: i32) -> (i32, i32) {
    %c0_i32 = arith.constant 0 : i32
    %c0_i32_0 = arith.constant 0 : i32
    %c0_i32_1 = arith.constant 0 : i32
    return %c0_i32, %c0_i32_0 : i32, i32
  }
  func.func @transform_18(%arg0: i32, %arg1: i32) -> (i32, i32) {
    %c0_i32 = arith.constant 0 : i32
    %c0_i32_0 = arith.constant 0 : i32
    %c0_i32_1 = arith.constant 0 : i32
    return %c0_i32, %c0_i32_0 : i32, i32
  }
  func.func @transform_19(%arg0: i32, %arg1: i32) -> (i32, i32) {
    %c0_i32 = arith.constant 0 : i32
    %c0_i32_0 = arith.constant 0 : i32
    %c0_i32_1 = arith.constant 0 : i32
    return %c0_i32, %c0_i32_0 : i32, i32
  }
  func.func @transform_20(%arg0: i32, %arg1: i32) -> (i32, i32) {
    %c0_i32 = arith.constant 0 : i32
    %c0_i32_0 = arith.constant 0 : i32
    %c0_i32_1 = arith.constant 0 : i32
    return %c0_i32, %c0_i32_0 : i32, i32
  }
  func.func @transform_21(%arg0: i32, %arg1: i32) -> (i32, i32) {
    %c0_i32 = arith.constant 0 : i32
    %c0_i32_0 = arith.constant 0 : i32
    %c0_i32_1 = arith.constant 0 : i32
    return %c0_i32, %c0_i32_0 : i32, i32
  }
  func.func @transform_22(%arg0: i32, %arg1: i32) -> (i32, i32) {
    %c0_i32 = arith.constant 0 : i32
    %c0_i32_0 = arith.constant 0 : i32
    %c0_i32_1 = arith.constant 0 : i32
    return %c0_i32, %c0_i32_0 : i32, i32
  }
  func.func @transform_23(%arg0: i32, %arg1: i32) -> (i32, i32) {
    %c0_i32 = arith.constant 0 : i32
    %c0_i32_0 = arith.constant 0 : i32
    %c0_i32_1 = arith.constant 0 : i32
    return %c0_i32, %c0_i32_0 : i32, i32
  }
  func.func @transform_24(%arg0: i32, %arg1: i32) -> (i32, i32) {
    %c0_i32 = arith.constant 0 : i32
    %c0_i32_0 = arith.constant 0 : i32
    %c0_i32_1 = arith.constant 0 : i32
    return %c0_i32, %c0_i32_0 : i32, i32
  }
  func.func @transform_25(%arg0: i32, %arg1: i32) -> (i32, i32) {
    %c0_i32 = arith.constant 0 : i32
    %c0_i32_0 = arith.constant 0 : i32
    %c0_i32_1 = arith.constant 0 : i32
    return %c0_i32, %c0_i32_0 : i32, i32
  }
  func.func @transform_26(%arg0: i32, %arg1: i32) -> (i32, i32) {
    %c0_i32 = arith.constant 0 : i32
    %c0_i32_0 = arith.constant 0 : i32
    %c0_i32_1 = arith.constant 0 : i32
    return %c0_i32, %c0_i32_0 : i32, i32
  }
  func.func @transform_27(%arg0: i32, %arg1: i32) -> (i32, i32) {
    %c0_i32 = arith.constant 0 : i32
    %c0_i32_0 = arith.constant 0 : i32
    %c0_i32_1 = arith.constant 0 : i32
    return %c0_i32, %c0_i32_0 : i32, i32
  }
  func.func @transform_28(%arg0: i32, %arg1: i32) -> (i32, i32) {
    %c0_i32 = arith.constant 0 : i32
    %c0_i32_0 = arith.constant 0 : i32
    %c0_i32_1 = arith.constant 0 : i32
    return %c0_i32, %c0_i32_0 : i32, i32
  }
  func.func @transform_29(%arg0: i32, %arg1: i32) -> (i32, i32) {
    %c0_i32 = arith.constant 0 : i32
    %c0_i32_0 = arith.constant 0 : i32
    %c0_i32_1 = arith.constant 0 : i32
    return %c0_i32, %c0_i32_0 : i32, i32
  }
  func.func @transform_30(%arg0: i32, %arg1: i32) -> (i32, i32, i32) {
    %c0_i32 = arith.constant 0 : i32
    %c0_i32_0 = arith.constant 0 : i32
    return %arg0, %arg1, %c0_i32 : i32, i32, i32
  }
}

</mosaic_0001>

<bundles_post_ra>
// kernel: tpu_custom_call.1
= control target key start
LH: loop header
LB: loop body
LE: loop exit
PB: predicated region body
PF: predicated region fallthrough
CT: control target
= control target key end

     0   :  { %s5522_s6 = smov 1   ;;  %s5523_s10 = smov 2   ;;  %s6661_s0 = inlined_call_operand.smem [shape: u32[31], index: -1, kind: input, shape index: {}] }
   0x1   :  { %s5601_s5 = sld [smem:[%s6661_s0]]   ;;  %s5524_s14 = smov 3  }
   0x2   :  { %s5606_s9 = sld [smem:[%s6661_s0 + %s5522_s6]]   ;;  %s5525_s18 = smov 4  }
   0x3   :  { %s5611_s13 = sld [smem:[%s6661_s0 + %s5523_s10]]   ;;  %s5526_s22 = smov 5  }
   0x4   :  { %s5616_s17 = sld [smem:[%s6661_s0 + %s5524_s14]]   ;;  %s5527_s26 = smov 6  }
   0x5   :  { %s5621_s21 = sld [smem:[%s6661_s0 + %s5525_s18]]   ;;  %s5528_s30 = smov 7  }
   0x6   :  { %s5626_s25 = sld [smem:[%s6661_s0 + %s5526_s22]]   ;;  %s5529_s4 = smov 8  }
   0x7   :  { %6723 = sst [smem:[#allocation72_spill]] %s5601_s5  ;;  %s5530_s10 = smov 9  }
   0x8   :  { %6724 = sst [smem:[#allocation73_spill]] %s5606_s9  ;;  %s5531_s15 = smov 10  }
   0x9   :  { %s5631_s29 = sld [smem:[%s6661_s0 + %s5527_s26]]   ;;  %s5532_s20 = smov 11  }
   0xa   :  { %6725 = sst [smem:[#allocation74_spill]] %s5616_s17  ;;  %s5533_s26 = smov 12  }
   0xb   :  { %6726 = sst [smem:[#allocation75_spill]] %s5621_s21  ;;  %s5534_s1 = smov 13  }
   0xc   :  { %6727 = sst [smem:[#allocation76_spill]] %s5626_s25  ;;  %s5535_s7 = smov 14  }
   0xd   :  { %s5636_s3 = sld [smem:[%s6661_s0 + %s5528_s30]]   ;;  %s5537_s22 = smov 16  }
   0xe   :  { %s5641_s8 = sld [smem:[%s6661_s0 + %s5529_s4]]   ;;  %s5538_s28 = smov 17  }
   0xf   :  { %6728 = sst [smem:[#allocation77_spill]] %s5631_s29 }
  0x10   :  { %s5646_s14 = sld [smem:[%s6661_s0 + %s5530_s10]]  }
  0x11   :  { %s5651_s19 = sld [smem:[%s6661_s0 + %s5531_s15]]   ;;  %s5536_s15 = smov 15  }
  0x12   :  { %s5656_s24 = sld [smem:[%s6661_s0 + %s5532_s20]]  }
  0x13   :  { %6729 = sst [smem:[#allocation78_spill]] %s5636_s3 }
  0x14   :  { %6730 = sst [smem:[#allocation79_spill]] %s5641_s8 }
  0x15   :  { %s5661_s30 = sld [smem:[%s6661_s0 + %s5533_s26]]  }
  0x16   :  { %6731 = sst [smem:[#allocation80_spill]] %s5646_s14 }
  0x17   :  { %6732 = sst [smem:[#allocation81_spill]] %s5651_s19 }
  0x18   :  { %6733 = sst [smem:[#allocation82_spill]] %s5656_s24 }
  0x19   :  { %s5666_s6 = sld [smem:[%s6661_s0 + %s5534_s1]]  }
  0x1a   :  { %s5671_s12 = sld [smem:[%s6661_s0 + %s5535_s7]]   ;;  %s5539_s7 = smov 18  }
  0x1b   :  { %6734 = sst [smem:[#allocation83_spill]] %s5661_s30 }
  0x1c   :  { %s5676_s20 = sld [smem:[%s6661_s0 + %s5536_s15]]   ;;  %s5540_s15 = smov 19  }
  0x1d   :  { %s5681_s27 = sld [smem:[%s6661_s0 + %s5537_s22]]   ;;  %s5541_s22 = smov 20  }
  0x1e   :  { %s5686_s4 = sld [smem:[%s6661_s0 + %s5538_s28]]   ;;  %s5542_s28 = smov 21  }
  0x1f   :  { %6735 = sst [smem:[#allocation84_spill]] %s5666_s6 }
  0x20   :  { %6736 = sst [smem:[#allocation85_spill]] %s5671_s12 }
  0x21   :  { %s5691_s17 = sld [smem:[%s6661_s0 + %s5539_s7]]   ;;  %s5543_s7 = smov 22  }
  0x22   :  { %6737 = sst [smem:[#allocation86_spill]] %s5676_s20 }
  0x23   :  { %6738 = sst [smem:[#allocation87_spill]] %s5681_s27 }
  0x24   :  { %6739 = sst [smem:[#allocation88_spill]] %s5686_s4 }
  0x25   :  { %s5696_s5 = sld [smem:[%s6661_s0 + %s5540_s15]]   ;;  %s5544_s15 = smov 23  }
  0x26   :  { %s5701_s27 = sld [smem:[%s6661_s0 + %s5541_s22]]   ;;  %s5545_s22 = smov 24  }
  0x27   :  { %6740 = sst [smem:[#allocation89_spill]] %s5691_s17 }
  0x28   :  { %s5706_s12 = sld [smem:[%s6661_s0 + %s5542_s28]]   ;;  %s5546_s28 = smov 25  }
  0x29   :  { %s5711_s17 = sld [smem:[%s6661_s0 + %s5543_s7]]   ;;  %s5547_s7 = smov 26  }
  0x2a   :  { %s5716_s30 = sld [smem:[%s6661_s0 + %s5544_s15]]   ;;  %s5548_s15 = smov 27  }
  0x2b   :  { %6741 = sst [smem:[#allocation90_spill]] %s5696_s5 }
  0x2c   :  { %6742 = sst [smem:[#allocation91_spill]] %s5701_s27 }
  0x2d   :  { %s5721_s27 = sld [smem:[%s6661_s0 + %s5545_s22]]   ;;  %s5549_s22 = smov 28  }
  0x2e   :  { %6743 = sst [smem:[#allocation92_spill]] %s5706_s12 }
  0x2f   :  { %6744 = sst [smem:[#allocation93_spill]] %s5711_s17 }
  0x30   :  { %6745 = sst [smem:[#allocation94_spill]] %s5716_s30 }
  0x31   :  { %s5726_s19 = sld [smem:[%s6661_s0 + %s5546_s28]]   ;;  %s5550_s28 = smov 29  }
  0x32   :  { %s5731_s17 = sld [smem:[%s6661_s0 + %s5547_s7]]   ;;  %s5551_s7 = smov 30  }
  0x33   :  { %6746 = sst [smem:[#allocation95_spill]] %s5721_s27 }
  0x34   :  { %s5736_s8 = sld [smem:[%s6661_s0 + %s5548_s15]]  }
  0x35   :  { %s5741_s27 = sld [smem:[%s6661_s0 + %s5549_s22]]  }
  0x36   :  { %s5746_s29 = sld [smem:[%s6661_s0 + %s5550_s28]]  }
  0x37   :  { %6747 = sst [smem:[#allocation96_spill]] %s5726_s19 }
  0x38   :  { %6748 = sst [smem:[#allocation97_spill]] %s5731_s17 }
  0x39   :  { %s5751_s17 = sld [smem:[%s6661_s0 + %s5551_s7]]  }
  0x3a   :  { %6749 = sst [smem:[#allocation98_spill]] %s5736_s8 }
  0x3b   :  { %6750 = sst [smem:[#allocation99_spill]] %s5741_s27 }
  0x3c   :  { %6751 = sst [smem:[#allocation100_spill]] %s5746_s29 }
  0x3f   :  { %6752 = sst [smem:[#allocation101_spill]] %s5751_s17 }
  0x40   :  { %66 = vsyncpa [#allocation7], 0 }
  0x41   :  { %68 = vsyncpa [#allocation7 + $0x1], 0 }
  0x42   :  { %69 = vsyncpa [#allocation10], 0 }
  0x43   :  { %71 = vsyncpa [#allocation10 + $0x1], 0 }
  0x44   :  { %72 = vsyncpa [#allocation13], 0 }
  0x45   :  { %74 = vsyncpa [#allocation13 + $0x1], 0 }
  0x46   :  { %75 = vsyncpa [#allocation16], 0 }
  0x47   :  { %76 = vsyncpa [#allocation19], 0 }
  0x48   :  { %77 = vsyncpa [#allocation22], 0 }
  0x49   :  { %78 = vsyncpa [#allocation25], 0 }
  0x4a   :  { %79 = vsyncpa [#allocation28], 0 }
  0x4b   :  { %80 = vsyncpa [#allocation31], 0 }
  0x4c   :  { %81 = vsyncpa [#allocation34], 0 }
  0x4d   :  { %82 = vsyncpa [#allocation37], 0 }
  0x4e   :  { %83 = vsyncpa [#allocation40], 0 }
  0x4f   :  { %84 = vsyncpa [#allocation43], 0 }
  0x50   :  { %85 = vsyncpa [#allocation46], 0 }
  0x51   :  { %86 = vsyncpa [#allocation49], 0 }
  0x52   :  { %87 = vsyncpa [#allocation52], 0 }
  0x53   :  { %88 = vsyncpa [#allocation8], 0 }
  0x54   :  { %90 = vsyncpa [#allocation8 + $0x1], 0  ;;  %s5753_s0 = smov 0   ;;  %s5755_s15 = smov 0  }
  0x55   :  { %s5757_s16 = smov 0   ;;  %s5759_s18 = smov 0  }
  0x56   :  { %s5761_s22 = smov 0   ;;  %s5763_s23 = smov 0  }
  0x57 LB: > { %s6753_s30 = sld [smem:[#allocation94_spill]]  ;;  %s6754_s25 = sld [smem:[#allocation76_spill]]  ;;  %s5504_s15 = sphi %s5755_s15, %s6842_s15   ;;  %s5500_s0 = sphi %s5753_s0, %s6841_s0   ;;  %s5520_s23 = sphi %s5763_s23, %s96_s23   ;;  %s5516_s22 = sphi %s5761_s22, %s6845_s22   ;;  %s5512_s18 = sphi %s5759_s18, %s6844_s18   ;;  %s5508_s16 = sphi %s5757_s16, %s6843_s16  }
  0x58   : > { %s6755_s24 = sld [smem:[#allocation82_spill]]  ;;  %s6756_s21 = sld [smem:[#allocation75_spill]] }
  0x59   : > { %s6757_s9 = sld [smem:[#allocation73_spill]]  ;;  %s6758_s20 = sld [smem:[#allocation86_spill]] }
  0x5a   : > { %s6759_s19 = sld [smem:[#allocation96_spill]]  ;;  %s6761_s12 = sld [smem:[#allocation92_spill]] }
  0x5b   : > { %s6760_s14 = sld [smem:[#allocation80_spill]]  ;;  %s6762_s8 = sld [smem:[#allocation98_spill]] }
  0x5c   : > { %s6763_s6 = sld [smem:[#allocation84_spill]]  ;;  %s6764_s5 = sld [smem:[#allocation90_spill]] }
  0x5d   : > { %s6765_s4 = sld [smem:[#allocation88_spill]]  ;;  %s6766_s3 = sld [smem:[#allocation78_spill]] }
  0x5e   : > { %6767 = sst [smem:[#allocation102_spill]] %s5512_s18  ;;  %s5784_s26 = sadd.s32 4294967295, %s5520_s23  }
  0x5f   : > { %p3684_p0 = scmp.ge.s32.totalorder %s5520_s23, 1  ;;  %p6677_p1 = scmp.eq.s32.totalorder %s5784_s26, 0 }
  0x60   : > { %p795_p2 = scmp.lt.s32.totalorder %s5520_s23, 3  ;;  %s5552_s1 = smov [#allocation14]  }
  0x61   : > { %s807_s2 = sshll.u32 %s5552_s1, 4  ;;  %s5553_s10 = smov [#allocation15]   ;;  %s5793_s2 = int_to_ptr.vmem [resolvable:$true] %s807_s2 }
  0x62   : > { %p5789_p3 = pnand %p3684_p0, %p795_p2  ;;  %s821_s11 = sshll.u32 %s5553_s10, 4  ;;  %s5804_s11 = int_to_ptr.vmem [resolvable:$true] %s821_s11 }
  0x63   : > { %s5554_s17 = smov [#allocation18]   ;;  %s4526_s29 = scalar_lea.hbm %s6756_s21, 256 }
  0x64   : > { %s6768_s28 = scalar_select %p5789_p3, 1, 0 }
  0x65   : > { %p4186_p4 = pneg %p5789_p3  ;;  %s5806_s18 = sshll.u32 %s5554_s17, 4  ;;  %s846_s18 = int_to_ptr.vmem [resolvable:$true] %s5806_s18 }
  0x66   : > { %6769 = sst [smem:[#allocation103_spill]] %s6768_s28  ;;  %p4527_p7 = scmp.ne.s32.totalorder %s6756_s21, %s4526_s29 }
  0x67   : > { %p5800_p6 = pnand %p4186_p4, %p6677_p1  ;;  %p4533_p11 = scmp.lt.u32.totalorder %s4526_s29, %s6756_s21 }
  0x69   : > { %s6770_s7 = scalar_select %p5800_p6, 1, 0 }
  0x6a   : > { %p5812_p8 = pneg %p5800_p6 }
  0x6c   : > { %s6771_s1 = scalar_select %p5812_p8, 1, 0 }
  0x6d   : > { %p4529_p9 = pnand %p5812_p8, %p4527_p7 }
  0x6f   : > { %p4530_p10 = pneg %p4529_p9 }
  0x71   : > { %p4535_p12 = pnand %p4533_p11, %p4530_p10 }
  0x73   : > { %4538 = shalt.err (!%p4535_p12)
}
  0x74   : > { %s4539_s17 = scalar_lea.vmem %s5793_s2, 256  ;;  %p4547_p4 = scmp.lt.s32.totalorder %s5793_s2, %s5793_s2 }
  0x75   : > { %p4540_p13 = scmp.ne.s32.totalorder %s5793_s2, %s4539_s17  ;;  %p4548_p5 = scmp.lt.s32.totalorder %s4539_s17, %s4539_s17 }
  0x77   : > { %p4542_p0 = pnand %p4540_p13, %p5812_p8  ;;  %p4549_p1 = por %p4548_p5, %p4547_p4 }
  0x79   : > { %p4543_p2 = pneg %p4542_p0 }
  0x7b   : > { %p4550_p3 = pnand %p4549_p1, %p4543_p2 }
  0x7d   : > { %4553 = shalt.err (!%p4550_p3)
}
  0x7e   : > { %s6681_s10 = smov 64   ;;  %s6683_s29 = smov 4  }
  0x7f   : > { %4189 = dma.hbm_to_vmem [thread:$0]  (!%p5800_p6), %s6756_s21, 256, %s5793_s2, [#allocation13], %s6681_s10, %s6681_s10, %s6683_s29  }
  0x80   : > { %s4554_s28 = scalar_lea.hbm %s6754_s25, 16 }
  0x81   : > { %p4555_p7 = scmp.ne.s32.totalorder %s6754_s25, %s4554_s28  ;;  %p4561_p3 = scmp.lt.u32.totalorder %s4554_s28, %s6754_s25 }
  0x83   : > { %p4557_p5 = pnand %p4555_p7, %p5812_p8 }
  0x85   : > { %p4558_p1 = pneg %p4557_p5 }
  0x87   : > { %p4563_p9 = pnand %p4561_p3, %p4558_p1 }
  0x89   : > { %4566 = shalt.err (!%p4563_p9)
}
  0x8a   : > { %s4567_s17 = scalar_lea.vmem %s5804_s11, 16  ;;  %s4574_s27 = scalar_lea.vmem %s5804_s11, 32 }
  0x8b   : > { %p4568_p10 = scmp.ne.s32.totalorder %s5804_s11, %s4567_s17  ;;  %p4575_p13 = scmp.lt.s32.totalorder %s5804_s11, %s5804_s11 }
  0x8c   : > { %p4576_p0 = scmp.lt.s32.totalorder %s4574_s27, %s4567_s17 }
  0x8d   : > { %p4570_p11 = pnand %p4568_p10, %p5812_p8 }
  0x8e   : > { %p4577_p2 = por %p4576_p0, %p4575_p13 }
  0x8f   : > { %p4571_p12 = pneg %p4570_p11 }
  0x91   : > { %p4578_p4 = pnand %p4577_p2, %p4571_p12 }
  0x93   : > { %4581 = shalt.err (!%p4578_p4)
}
  0x94   : > { %4192 = dma.hbm_to_vmem [thread:$0]  (!%p5800_p6), %s6754_s25, 16, %s5804_s11, [#allocation16]  }
  0x95   : > { %s4582_s28 = scalar_lea.hbm %s6766_s3, 16 }
  0x96   : > { %p4583_p7 = scmp.ne.s32.totalorder %s6766_s3, %s4582_s28  ;;  %p4589_p3 = scmp.lt.u32.totalorder %s4582_s28, %s6766_s3 }
  0x98   : > { %p4585_p5 = pnand %p4583_p7, %p5812_p8 }
  0x9a   : > { %p4586_p1 = pneg %p4585_p5 }
  0x9c   : > { %p4591_p9 = pnand %p4589_p3, %p4586_p1 }
  0x9e   : > { %4594 = shalt.err (!%p4591_p9)
}
  0x9f   : > { %s4595_s27 = scalar_lea.vmem %s846_s18, 16  ;;  %s4602_s2 = scalar_lea.vmem %s846_s18, 32 }
  0xa0   : > { %p4596_p10 = scmp.ne.s32.totalorder %s846_s18, %s4595_s27  ;;  %p4603_p13 = scmp.lt.s32.totalorder %s846_s18, %s846_s18 }
  0xa1   : > { %p4604_p0 = scmp.lt.s32.totalorder %s4602_s2, %s4595_s27 }
  0xa2   : > { %p4598_p11 = pnand %p4596_p10, %p5812_p8 }
  0xa3   : > { %p4605_p2 = por %p4604_p0, %p4603_p13 }
  0xa4   : > { %p4599_p12 = pneg %p4598_p11 }
  0xa6   : > { %p4606_p4 = pnand %p4605_p2, %p4599_p12 }
  0xa8   : > { %4609 = shalt.err (!%p4606_p4)
}
  0xa9   : > { %4198 = dma.hbm_to_vmem [thread:$0]  (!%p5800_p6), %s6766_s3, 16, %s846_s18, [#allocation19]  }
  0xaa   : > { %s5557_s11 = smov [#allocation21]   ;;  %s5558_s28 = smov [#allocation24]  }
  0xab   : > { %s869_s17 = sshll.u32 %s5557_s11, 4  ;;  %s893_s10 = sshll.u32 %s5558_s28, 4  ;;  %s870_s17 = int_to_ptr.vmem [resolvable:$true] %s869_s17  ;;  %s894_s10 = int_to_ptr.vmem [resolvable:$true] %s893_s10 }
  0xac   : > { %s4610_s29 = scalar_lea.hbm %s6760_s14, 16 }
  0xad   : > { %p4611_p7 = scmp.ne.s32.totalorder %s6760_s14, %s4610_s29  ;;  %p4617_p3 = scmp.lt.u32.totalorder %s4610_s29, %s6760_s14 }
  0xaf   : > { %p4613_p5 = pnand %p4611_p7, %p5812_p8 }
  0xb1   : > { %p4614_p1 = pneg %p4613_p5 }
  0xb3   : > { %p4619_p9 = pnand %p4617_p3, %p4614_p1 }
  0xb5   : > { %4622 = shalt.err (!%p4619_p9)
}
  0xb6   : > { %s4623_s27 = scalar_lea.vmem %s870_s17, 16  ;;  %s4630_s18 = scalar_lea.vmem %s870_s17, 32 }
  0xb7   : > { %p4624_p10 = scmp.ne.s32.totalorder %s870_s17, %s4623_s27  ;;  %p4631_p13 = scmp.lt.s32.totalorder %s870_s17, %s870_s17 }
  0xb8   : > { %p4632_p0 = scmp.lt.s32.totalorder %s4630_s18, %s4623_s27 }
  0xb9   : > { %p4626_p11 = pnand %p4624_p10, %p5812_p8 }
  0xba   : > { %p4633_p2 = por %p4632_p0, %p4631_p13 }
  0xbb   : > { %p4627_p12 = pneg %p4626_p11 }
  0xbd   : > { %p4634_p4 = pnand %p4633_p2, %p4627_p12 }
  0xbf   : > { %4637 = shalt.err (!%p4634_p4)
}
  0xc0   : > { %4204 = dma.hbm_to_vmem [thread:$0]  (!%p5800_p6), %s6760_s14, 16, %s870_s17, [#allocation22]  }
  0xc1   : > { %s4638_s29 = scalar_lea.hbm %s6755_s24, 16 }
  0xc2   : > { %p4639_p7 = scmp.ne.s32.totalorder %s6755_s24, %s4638_s29  ;;  %p4645_p3 = scmp.lt.u32.totalorder %s4638_s29, %s6755_s24 }
  0xc4   : > { %p4641_p5 = pnand %p4639_p7, %p5812_p8 }
  0xc6   : > { %p4642_p1 = pneg %p4641_p5 }
  0xc8   : > { %p4647_p9 = pnand %p4645_p3, %p4642_p1 }
  0xca   : > { %4650 = shalt.err (!%p4647_p9)
}
  0xcb   : > { %s4651_s2 = scalar_lea.vmem %s894_s10, 16  ;;  %s4658_s11 = scalar_lea.vmem %s894_s10, 32 }
  0xcc   : > { %p4652_p10 = scmp.ne.s32.totalorder %s894_s10, %s4651_s2  ;;  %p4659_p13 = scmp.lt.s32.totalorder %s894_s10, %s894_s10 }
  0xcd   : > { %p4660_p0 = scmp.lt.s32.totalorder %s4658_s11, %s4651_s2 }
  0xce   : > { %p4654_p11 = pnand %p4652_p10, %p5812_p8 }
  0xcf   : > { %p4661_p2 = por %p4660_p0, %p4659_p13 }
  0xd0   : > { %p4655_p12 = pneg %p4654_p11 }
  0xd2   : > { %p4662_p4 = pnand %p4661_p2, %p4655_p12 }
  0xd4   : > { %4665 = shalt.err (!%p4662_p4)
}
  0xd5   : > { %4210 = dma.hbm_to_vmem [thread:$0]  (!%p5800_p6), %s6755_s24, 16, %s894_s10, [#allocation25]  }
  0xd6   : > { %s5559_s17 = smov [#allocation27]   ;;  %s5560_s27 = smov [#allocation30]  }
  0xd7   : > { %s915_s28 = sshll.u32 %s5559_s17, 4  ;;  %s939_s18 = sshll.u32 %s5560_s27, 4  ;;  %s916_s28 = int_to_ptr.vmem [resolvable:$true] %s915_s28  ;;  %s940_s18 = int_to_ptr.vmem [resolvable:$true] %s939_s18 }
  0xd8   : > { %s4666_s29 = scalar_lea.hbm %s6763_s6, 16 }
  0xd9   : > { %p4667_p7 = scmp.ne.s32.totalorder %s6763_s6, %s4666_s29  ;;  %p4673_p3 = scmp.lt.u32.totalorder %s4666_s29, %s6763_s6 }
  0xdb   : > { %p4669_p5 = pnand %p4667_p7, %p5812_p8 }
  0xdd   : > { %p4670_p1 = pneg %p4669_p5 }
  0xdf   : > { %p4675_p9 = pnand %p4673_p3, %p4670_p1 }
  0xe1   : > { %4678 = shalt.err (!%p4675_p9)
}
  0xe2   : > { %s4679_s2 = scalar_lea.vmem %s916_s28, 16  ;;  %s4686_s10 = scalar_lea.vmem %s916_s28, 32 }
  0xe3   : > { %p4680_p10 = scmp.ne.s32.totalorder %s916_s28, %s4679_s2  ;;  %p4687_p13 = scmp.lt.s32.totalorder %s916_s28, %s916_s28 }
  0xe4   : > { %p4688_p0 = scmp.lt.s32.totalorder %s4686_s10, %s4679_s2 }
  0xe5   : > { %p4682_p11 = pnand %p4680_p10, %p5812_p8 }
  0xe6   : > { %p4689_p2 = por %p4688_p0, %p4687_p13 }
  0xe7   : > { %p4683_p12 = pneg %p4682_p11 }
  0xe9   : > { %p4690_p4 = pnand %p4689_p2, %p4683_p12 }
  0xeb   : > { %4693 = shalt.err (!%p4690_p4)
}
  0xec   : > { %4216 = dma.hbm_to_vmem [thread:$0]  (!%p5800_p6), %s6763_s6, 16, %s916_s28, [#allocation28]  }
  0xed   : > { %s4694_s11 = scalar_lea.hbm %s6758_s20, 16 }
  0xee   : > { %p4695_p7 = scmp.ne.s32.totalorder %s6758_s20, %s4694_s11  ;;  %p4701_p3 = scmp.lt.u32.totalorder %s4694_s11, %s6758_s20 }
  0xf0   : > { %p4697_p5 = pnand %p4695_p7, %p5812_p8 }
  0xf2   : > { %p4698_p1 = pneg %p4697_p5 }
  0xf4   : > { %p4703_p9 = pnand %p4701_p3, %p4698_p1 }
  0xf6   : > { %4706 = shalt.err (!%p4703_p9)
}
  0xf7   : > { %s4707_s17 = scalar_lea.vmem %s940_s18, 16  ;;  %s4714_s27 = scalar_lea.vmem %s940_s18, 32 }
  0xf8   : > { %p4708_p10 = scmp.ne.s32.totalorder %s940_s18, %s4707_s17  ;;  %p4715_p13 = scmp.lt.s32.totalorder %s940_s18, %s940_s18 }
  0xf9   : > { %p4716_p0 = scmp.lt.s32.totalorder %s4714_s27, %s4707_s17 }
  0xfa   : > { %p4710_p11 = pnand %p4708_p10, %p5812_p8 }
  0xfb   : > { %p4717_p2 = por %p4716_p0, %p4715_p13 }
  0xfc   : > { %p4711_p12 = pneg %p4710_p11 }
  0xfe   : > { %p4718_p4 = pnand %p4717_p2, %p4711_p12 }
 0x100   : > { %4721 = shalt.err (!%p4718_p4)
}
 0x101   : > { %4222 = dma.hbm_to_vmem [thread:$0]  (!%p5800_p6), %s6758_s20, 16, %s940_s18, [#allocation31]  }
 0x102   : > { %s5561_s28 = smov [#allocation33]   ;;  %s5562_s2 = smov [#allocation36]  }
 0x103   : > { %s963_s29 = sshll.u32 %s5561_s28, 4  ;;  %s987_s10 = sshll.u32 %s5562_s2, 4  ;;  %s964_s29 = int_to_ptr.vmem [resolvable:$true] %s963_s29  ;;  %s988_s10 = int_to_ptr.vmem [resolvable:$true] %s987_s10 }
 0x104   : > { %s4722_s11 = scalar_lea.hbm %s6765_s4, 16 }
 0x105   : > { %p4723_p7 = scmp.ne.s32.totalorder %s6765_s4, %s4722_s11  ;;  %p4729_p3 = scmp.lt.u32.totalorder %s4722_s11, %s6765_s4 }
 0x107   : > { %p4725_p5 = pnand %p4723_p7, %p5812_p8 }
 0x109   : > { %p4726_p1 = pneg %p4725_p5 }
 0x10b   : > { %p4731_p9 = pnand %p4729_p3, %p4726_p1 }
 0x10d   : > { %4734 = shalt.err (!%p4731_p9)
}
 0x10e   : > { %s4735_s17 = scalar_lea.vmem %s964_s29, 16  ;;  %s4742_s18 = scalar_lea.vmem %s964_s29, 32 }
 0x10f   : > { %p4736_p10 = scmp.ne.s32.totalorder %s964_s29, %s4735_s17  ;;  %p4743_p13 = scmp.lt.s32.totalorder %s964_s29, %s964_s29 }
 0x110   : > { %p4744_p0 = scmp.lt.s32.totalorder %s4742_s18, %s4735_s17 }
 0x111   : > { %p4738_p11 = pnand %p4736_p10, %p5812_p8 }
 0x112   : > { %p4745_p2 = por %p4744_p0, %p4743_p13 }
 0x113   : > { %p4739_p12 = pneg %p4738_p11 }
 0x115   : > { %p4746_p4 = pnand %p4745_p2, %p4739_p12 }
 0x117   : > { %4749 = shalt.err (!%p4746_p4)
}
 0x118   : > { %4228 = dma.hbm_to_vmem [thread:$0]  (!%p5800_p6), %s6765_s4, 16, %s964_s29, [#allocation34]  }
 0x119   : > { %s4750_s27 = scalar_lea.hbm %s6764_s5, 16 }
 0x11a   : > { %p4751_p7 = scmp.ne.s32.totalorder %s6764_s5, %s4750_s27  ;;  %p4757_p3 = scmp.lt.u32.totalorder %s4750_s27, %s6764_s5 }
 0x11c   : > { %p4753_p5 = pnand %p4751_p7, %p5812_p8 }
 0x11e   : > { %p4754_p1 = pneg %p4753_p5 }
 0x120   : > { %p4759_p9 = pnand %p4757_p3, %p4754_p1 }
 0x122   : > { %4762 = shalt.err (!%p4759_p9)
}
 0x123   : > { %s4763_s28 = scalar_lea.vmem %s988_s10, 16  ;;  %s4770_s2 = scalar_lea.vmem %s988_s10, 32 }
 0x124   : > { %p4764_p10 = scmp.ne.s32.totalorder %s988_s10, %s4763_s28  ;;  %p4771_p13 = scmp.lt.s32.totalorder %s988_s10, %s988_s10 }
 0x125   : > { %p4772_p0 = scmp.lt.s32.totalorder %s4770_s2, %s4763_s28 }
 0x126   : > { %p4766_p11 = pnand %p4764_p10, %p5812_p8 }
 0x127   : > { %p4773_p2 = por %p4772_p0, %p4771_p13 }
 0x128   : > { %p4767_p12 = pneg %p4766_p11 }
 0x12a   : > { %p4774_p4 = pnand %p4773_p2, %p4767_p12 }
 0x12c   : > { %4777 = shalt.err (!%p4774_p4)
}
 0x12d   : > { %4234 = dma.hbm_to_vmem [thread:$0]  (!%p5800_p6), %s6764_s5, 16, %s988_s10, [#allocation37]  }
 0x12e   : > { %s5563_s29 = smov [#allocation39]   ;;  %s5564_s17 = smov [#allocation42]  }
 0x12f   : > { %s1011_s11 = sshll.u32 %s5563_s29, 4  ;;  %s1033_s18 = sshll.u32 %s5564_s17, 4  ;;  %s1012_s11 = int_to_ptr.vmem [resolvable:$true] %s1011_s11  ;;  %s1034_s18 = int_to_ptr.vmem [resolvable:$true] %s1033_s18 }
 0x130   : > { %s4778_s27 = scalar_lea.hbm %s6761_s12, 16 }
 0x131   : > { %p4779_p7 = scmp.ne.s32.totalorder %s6761_s12, %s4778_s27  ;;  %p4785_p3 = scmp.lt.u32.totalorder %s4778_s27, %s6761_s12 }
 0x133   : > { %p4781_p5 = pnand %p4779_p7, %p5812_p8 }
 0x135   : > { %p4782_p1 = pneg %p4781_p5 }
 0x137   : > { %p4787_p9 = pnand %p4785_p3, %p4782_p1 }
 0x139   : > { %4790 = shalt.err (!%p4787_p9)
}
 0x13a   : > { %s4791_s28 = scalar_lea.vmem %s1012_s11, 16  ;;  %s4798_s10 = scalar_lea.vmem %s1012_s11, 32 }
 0x13b   : > { %p4792_p10 = scmp.ne.s32.totalorder %s1012_s11, %s4791_s28  ;;  %p4799_p13 = scmp.lt.s32.totalorder %s1012_s11, %s1012_s11 }
 0x13c   : > { %p4800_p0 = scmp.lt.s32.totalorder %s4798_s10, %s4791_s28 }
 0x13d   : > { %p4794_p11 = pnand %p4792_p10, %p5812_p8 }
 0x13e   : > { %p4801_p2 = por %p4800_p0, %p4799_p13 }
 0x13f   : > { %p4795_p12 = pneg %p4794_p11 }
 0x141   : > { %p4802_p4 = pnand %p4801_p2, %p4795_p12 }
 0x143   : > { %4805 = shalt.err (!%p4802_p4)
}
 0x144   : > { %4240 = dma.hbm_to_vmem [thread:$0]  (!%p5800_p6), %s6761_s12, 16, %s1012_s11, [#allocation40]  }
 0x145   : > { %s4806_s2 = scalar_lea.hbm %s6753_s30, 16 }
 0x146   : > { %p4807_p7 = scmp.ne.s32.totalorder %s6753_s30, %s4806_s2  ;;  %p4813_p3 = scmp.lt.u32.totalorder %s4806_s2, %s6753_s30 }
 0x148   : > { %p4809_p5 = pnand %p4807_p7, %p5812_p8 }
 0x14a   : > { %p4810_p1 = pneg %p4809_p5 }
 0x14c   : > { %p4815_p9 = pnand %p4813_p3, %p4810_p1 }
 0x14e   : > { %4818 = shalt.err (!%p4815_p9)
}
 0x14f   : > { %s4819_s29 = scalar_lea.vmem %s1034_s18, 16  ;;  %s4826_s17 = scalar_lea.vmem %s1034_s18, 32 }
 0x150   : > { %p4820_p10 = scmp.ne.s32.totalorder %s1034_s18, %s4819_s29  ;;  %p4827_p13 = scmp.lt.s32.totalorder %s1034_s18, %s1034_s18 }
 0x151   : > { %p4828_p0 = scmp.lt.s32.totalorder %s4826_s17, %s4819_s29 }
 0x152   : > { %p4822_p11 = pnand %p4820_p10, %p5812_p8 }
 0x153   : > { %p4829_p2 = por %p4828_p0, %p4827_p13 }
 0x154   : > { %p4823_p12 = pneg %p4822_p11 }
 0x156   : > { %p4830_p4 = pnand %p4829_p2, %p4823_p12 }
 0x158   : > { %4833 = shalt.err (!%p4830_p4)
}
 0x159   : > { %4246 = dma.hbm_to_vmem [thread:$0]  (!%p5800_p6), %s6753_s30, 16, %s1034_s18, [#allocation43]  }
 0x15a   : > { %s5565_s11 = smov [#allocation45]   ;;  %s5566_s28 = smov [#allocation48]  }
 0x15b   : > { %s1057_s27 = sshll.u32 %s5565_s11, 4  ;;  %s1081_s10 = sshll.u32 %s5566_s28, 4  ;;  %s1058_s27 = int_to_ptr.vmem [resolvable:$true] %s1057_s27  ;;  %s1082_s10 = int_to_ptr.vmem [resolvable:$true] %s1081_s10 }
 0x15c   : > { %s4834_s2 = scalar_lea.hbm %s6759_s19, 16 }
 0x15d   : > { %p4835_p7 = scmp.ne.s32.totalorder %s6759_s19, %s4834_s2  ;;  %p4841_p3 = scmp.lt.u32.totalorder %s4834_s2, %s6759_s19 }
 0x15f   : > { %p4837_p5 = pnand %p4835_p7, %p5812_p8 }
 0x161   : > { %p4838_p1 = pneg %p4837_p5 }
 0x163   : > { %p4843_p9 = pnand %p4841_p3, %p4838_p1 }
 0x165   : > { %4846 = shalt.err (!%p4843_p9)
}
 0x166   : > { %s4847_s29 = scalar_lea.vmem %s1058_s27, 16  ;;  %s4854_s18 = scalar_lea.vmem %s1058_s27, 32 }
 0x167   : > { %p4848_p10 = scmp.ne.s32.totalorder %s1058_s27, %s4847_s29  ;;  %p4855_p13 = scmp.lt.s32.totalorder %s1058_s27, %s1058_s27 }
 0x168   : > { %p4856_p0 = scmp.lt.s32.totalorder %s4854_s18, %s4847_s29 }
 0x169   : > { %p4850_p11 = pnand %p4848_p10, %p5812_p8 }
 0x16a   : > { %p4857_p2 = por %p4856_p0, %p4855_p13 }
 0x16b   : > { %p4851_p12 = pneg %p4850_p11 }
 0x16d   : > { %p4858_p4 = pnand %p4857_p2, %p4851_p12 }
 0x16f   : > { %4861 = shalt.err (!%p4858_p4)
}
 0x170   : > { %4252 = dma.hbm_to_vmem [thread:$0]  (!%p5800_p6), %s6759_s19, 16, %s1058_s27, [#allocation46]  }
 0x171   : > { %s4862_s17 = scalar_lea.hbm %s6762_s8, 16 }
 0x172   : > { %p4863_p7 = scmp.ne.s32.totalorder %s6762_s8, %s4862_s17  ;;  %p4869_p3 = scmp.lt.u32.totalorder %s4862_s17, %s6762_s8 }
 0x174   : > { %p4865_p5 = pnand %p4863_p7, %p5812_p8 }
 0x176   : > { %p4866_p1 = pneg %p4865_p5 }
 0x178   : > { %p4871_p9 = pnand %p4869_p3, %p4866_p1 }
 0x17a   : > { %4874 = shalt.err (!%p4871_p9)
}
 0x17b   : > { %s4875_s11 = scalar_lea.vmem %s1082_s10, 16  ;;  %s4882_s28 = scalar_lea.vmem %s1082_s10, 32 }
 0x17c   : > { %p4876_p10 = scmp.ne.s32.totalorder %s1082_s10, %s4875_s11  ;;  %p4883_p13 = scmp.lt.s32.totalorder %s1082_s10, %s1082_s10 }
 0x17d   : > { %p4884_p0 = scmp.lt.s32.totalorder %s4882_s28, %s4875_s11 }
 0x17e   : > { %p4878_p11 = pnand %p4876_p10, %p5812_p8 }
 0x17f   : > { %p4885_p2 = por %p4884_p0, %p4883_p13 }
 0x180   : > { %p4879_p12 = pneg %p4878_p11 }
 0x182   : > { %p4886_p4 = pnand %p4885_p2, %p4879_p12 }
 0x184   : > { %4889 = shalt.err (!%p4886_p4)
}
 0x185   : > { %4258 = dma.hbm_to_vmem [thread:$0]  (!%p5800_p6), %s6762_s8, 16, %s1082_s10, [#allocation49]  }
 0x186   : > { %s3683_s27 = sadd.s32 4294967294, %s5520_s23   ;;  %s108_s2 = sadd.s32 1, %s5516_s22 }
 0x187   : > { %s117_s29 = sadd.s32 1, %s5508_s16  ;;  %p110_p7 = scmp.ge.s32.totalorder %s108_s2, 2 }
 0x188   : > { %p124_p5 = scmp.ne.s32.totalorder %s5508_s16, %s5504_s15  ;;  %p125_p1 = scmp.eq.s32.totalorder %s5520_s23, 0 }
 0x189   : > { %p130_p3 = scmp.ne.s32.totalorder %s5504_s15, %s5500_s0  ;;  %s6847_s2 = smov (%p110_p7, %s108_s2), 0 }
 0x18a   : > { %p126_p9 = por %p125_p1, %p124_p5  ;;  %p6772_p10 = scmp.eq.s32.totalorder %s5784_s26, 0 }
 0x18b   : > { %s112_s10 = ssub.s32 %s5516_s22, %s6847_s2  ;;  %p782_p12 = scmp.eq.s32.totalorder %s5784_s26, 1 }
 0x18c   : > { %p5971_p11 = por %p6772_p10, %p130_p3  ;;  %p115_p13 = scmp.eq.s32.totalorder %s112_s10, 0 }
 0x18d   : > { %p788_p0 = scmp.eq.s32.totalorder %s3683_s27, 1  ;;  %p5978_p2 = por %p782_p12, %p124_p5 }
 0x18e   : > { %s6773_s18 = scalar_select %p5971_p11, 1, 0 }
 0x18f   : > { %s6774_s17 = scalar_select %p5978_p2, 1, 0 }
 0x190   : > { %p4308_p4 = scmp.lt.s32.totalorder %s5520_s23, 2  ;;  %p5986_p7 = por %p788_p0, %p130_p3 }
 0x191   : > { %s5984_s11 = scalar_select %p115_p13, %s5508_s16, %s117_s29  }
 0x192   : > { %s6775_s28 = scalar_select %p5986_p7, 1, 0 }
 0x193   : > { %s5991_s3 = sand.u32 1, %s5508_s16   ;;  %p5993_p1 = pnand %p4308_p4, %p126_p9 }
 0x194   : > { %s6694_s27 = sand.u32 1, %s5520_s23   ;;  %s6700_s4 = sshll.u32 %s5991_s3, 2 }
 0x195   : > { %s6776_s10 = scalar_select %p5993_p1, 1, 0 }
 0x196   : > { %s6701_s5 = sshll.u32 %s5516_s22, 6  ;;  %s1137_s29 = scalar_lea.vmem [#allocation9], %s6700_s4 }
 0x197   : > { %s1144_s6 = sshll.u32 %s1137_s29, 4  ;;  %s6005_s8 = scalar_lea.hbm %s6757_s9, %s6701_s5  ;;  %s6007_s6 = int_to_ptr.vmem [resolvable:$true] %s1144_s6 }
 0x198   : > { %s6011_s12 = scalar_lea.sflag [#allocation10], %s6694_s27  ;;  %s4890_s14 = scalar_lea.hbm %s6005_s8, 64 }
 0x199   : > { %p4891_p5 = scmp.ne.s32.totalorder %s6005_s8, %s4890_s14  ;;  %p6017_p3 = pneg %p5993_p1 }
 0x19a   : > { %s4895_s29 = scalar_lea.hbm %s6757_s9, 128  ;;  %p4896_p12 = scmp.lt.u32.totalorder %s6005_s8, %s6757_s9 }
 0x19b   : > { %s6777_s19 = scalar_select %p6017_p3, 1, 0 }
 0x19c   : > { %p4893_p9 = pnand %p6017_p3, %p4891_p5  ;;  %p4897_p13 = scmp.lt.u32.totalorder %s4895_s29, %s4890_s14 }
 0x19d   : > { %p4899_p4 = scmp.lt.u32.totalorder %s4890_s14, %s6005_s8 }
 0x19e   : > { %p4894_p10 = pneg %p4893_p9  ;;  %p4898_p0 = por %p4897_p13, %p4896_p12 }
 0x1a0   : > { %p4900_p7 = por %p4899_p4, %p4898_p0 }
 0x1a2   : > { %p4901_p2 = pnand %p4900_p7, %p4894_p10 }
 0x1a4   : > { %4904 = shalt.err (!%p4901_p2)
}
 0x1a5   : > { %s4905_s27 = scalar_lea.vmem %s6007_s6, 64  ;;  %s5567_s4 = smov [#allocation9]  }
 0x1a6   : > { %p4906_p11 = scmp.ne.s32.totalorder %s6007_s6, %s4905_s27  ;;  %s4910_s5 = sshll.u32 %s5567_s4, 4  ;;  %s4911_s5 = int_to_ptr.vmem [resolvable:$false] %s4910_s5 }
 0x1a7   : > { %s4912_s20 = scalar_lea.vmem %s4911_s5, 128  ;;  %p4913_p5 = scmp.lt.s32.totalorder %s6007_s6, %s4911_s5 }
 0x1a8   : > { %p4908_p6 = pnand %p4906_p11, %p6017_p3  ;;  %p4914_p9 = scmp.lt.s32.totalorder %s4912_s20, %s4905_s27 }
 0x1aa   : > { %p4909_p8 = pneg %p4908_p6  ;;  %p4915_p12 = por %p4914_p9, %p4913_p5 }
 0x1ac   : > { %p4916_p13 = pnand %p4915_p12, %p4909_p8 }
 0x1ae   : > { %4919 = shalt.err (!%p4916_p13)
}
 0x1af   : > { %s6778_s14 = sld [smem:[#allocation77_spill]]  ;;  %s6779_s4 = sshll.u32 %s5516_s22, 6 }
 0x1b0   : > { %4271 = dma.hbm_to_vmem [thread:$0]  (!%p5993_p1), %s6005_s8, 64, %s6007_s6, %s6011_s12  }
 0x1b1   : > { %s6040_s29 = scalar_lea.hbm %s5611_s13, %s6779_s4  ;;  %s5568_s5 = smov [#allocation17]  }
 0x1b2   : > { %s831_s20 = sshll.u32 %s5568_s5, 4  ;;  %s5569_s27 = smov [#allocation20]   ;;  %s832_s20 = int_to_ptr.vmem [resolvable:$true] %s831_s20 }
 0x1b3   : > { %s855_s9 = sshll.u32 %s5569_s27, 4  ;;  %p6780_p8 = scmp.ne.s32.totalorder %s6771_s1, 0  ;;  %s856_s9 = int_to_ptr.vmem [resolvable:$true] %s855_s9 }
 0x1b5   : > { %s4920_s21 = scalar_lea.hbm %s6778_s14, 256 }
 0x1b6   : > { %p4921_p6 = scmp.ne.s32.totalorder %s6778_s14, %s4920_s21  ;;  %p4927_p7 = scmp.lt.u32.totalorder %s4920_s21, %s6778_s14 }
 0x1b8   : > { %p4923_p11 = pnand %p4921_p6, %p6780_p8 }
 0x1ba   : > { %p4924_p2 = pneg %p4923_p11 }
 0x1bc   : > { %p4929_p10 = pnand %p4927_p7, %p4924_p2 }
 0x1be   : > { %4932 = shalt.err (!%p4929_p10)
}
 0x1bf   : > { %s4933_s24 = scalar_lea.vmem %s832_s20, 256  ;;  %p4941_p9 = scmp.lt.s32.totalorder %s832_s20, %s832_s20 }
 0x1c0   : > { %p4934_p0 = scmp.ne.s32.totalorder %s832_s20, %s4933_s24  ;;  %p4942_p12 = scmp.lt.s32.totalorder %s4933_s24, %s4933_s24 }
 0x1c2   : > { %p4936_p4 = pnand %p4934_p0, %p6780_p8  ;;  %p4943_p13 = por %p4942_p12, %p4941_p9 }
 0x1c4   : > { %p4937_p5 = pneg %p4936_p4 }
 0x1c6   : > { %p4944_p1 = pnand %p4943_p13, %p4937_p5 }
 0x1c8   : > { %4947 = shalt.err (!%p4944_p1)
}
 0x1c9   : > { %p6781_p3 = scmp.ne.s32.totalorder %s6770_s7, 0  ;;  %s6782_s8 = smov 4  }
 0x1ca   : > { %s6783_s6 = smov 64   ;;  %s6784_s21 = sld [smem:[#allocation79_spill]] }
 0x1cb   : > { %4195 = dma.hbm_to_vmem [thread:$0]  (!%p6781_p3), %s6778_s14, 256, %s832_s20, [#allocation16], %s6783_s6, %s6783_s6, %s6782_s8  }
 0x1d0   : > { %s4948_s4 = scalar_lea.hbm %s6784_s21, 256 }
 0x1d1   : > { %p4949_p6 = scmp.ne.s32.totalorder %s6784_s21, %s4948_s4  ;;  %p4955_p7 = scmp.lt.u32.totalorder %s4948_s4, %s6784_s21 }
 0x1d3   : > { %p4951_p11 = pnand %p4949_p6, %p6780_p8 }
 0x1d5   : > { %p4952_p2 = pneg %p4951_p11 }
 0x1d7   : > { %p4957_p10 = pnand %p4955_p7, %p4952_p2 }
 0x1d9   : > { %4960 = shalt.err (!%p4957_p10)
}
 0x1da   : > { %s4961_s24 = scalar_lea.vmem %s856_s9, 256  ;;  %p4969_p5 = scmp.lt.s32.totalorder %s856_s9, %s856_s9 }
 0x1db   : > { %p4962_p1 = scmp.ne.s32.totalorder %s856_s9, %s4961_s24  ;;  %p4970_p9 = scmp.lt.s32.totalorder %s4961_s24, %s4961_s24 }
 0x1dd   : > { %p4964_p0 = pnand %p4962_p1, %p6780_p8  ;;  %p4971_p12 = por %p4970_p9, %p4969_p5 }
 0x1df   : > { %p4965_p4 = pneg %p4964_p0 }
 0x1e1   : > { %p4972_p13 = pnand %p4971_p12, %p4965_p4 }
 0x1e3   : > { %4975 = shalt.err (!%p4972_p13)
}
 0x1e4   : > { %s6785_s5 = sld [smem:[#allocation81_spill]]  ;;  %s5570_s20 = smov [#allocation23]  }
 0x1e5   : > { %4201 = dma.hbm_to_vmem [thread:$0]  (!%p6781_p3), %s6784_s21, 256, %s856_s9, [#allocation19], %s6783_s6, %s6783_s6, %s6782_s8  }
 0x1e6   : > { %s879_s27 = sshll.u32 %s5570_s20, 4  ;;  %s5571_s4 = smov [#allocation26]   ;;  %s880_s27 = int_to_ptr.vmem [resolvable:$true] %s879_s27 }
 0x1e7   : > { %s904_s14 = sshll.u32 %s5571_s4, 4  ;;  %s905_s14 = int_to_ptr.vmem [resolvable:$true] %s904_s14 }
 0x1ea   : > { %s4976_s24 = scalar_lea.hbm %s6785_s5, 256 }
 0x1eb   : > { %p4977_p6 = scmp.ne.s32.totalorder %s6785_s5, %s4976_s24  ;;  %p4983_p7 = scmp.lt.u32.totalorder %s4976_s24, %s6785_s5 }
 0x1ed   : > { %p4979_p11 = pnand %p4977_p6, %p6780_p8 }
 0x1ef   : > { %p4980_p2 = pneg %p4979_p11 }
 0x1f1   : > { %p4985_p10 = pnand %p4983_p7, %p4980_p2 }
 0x1f3   : > { %4988 = shalt.err (!%p4985_p10)
}
 0x1f4   : > { %s4989_s25 = scalar_lea.vmem %s880_s27, 256  ;;  %p4997_p5 = scmp.lt.s32.totalorder %s880_s27, %s880_s27 }
 0x1f5   : > { %p4990_p1 = scmp.ne.s32.totalorder %s880_s27, %s4989_s25  ;;  %p4998_p9 = scmp.lt.s32.totalorder %s4989_s25, %s4989_s25 }
 0x1f7   : > { %p4992_p0 = pnand %p4990_p1, %p6780_p8  ;;  %p4999_p12 = por %p4998_p9, %p4997_p5 }
 0x1f9   : > { %p4993_p4 = pneg %p4992_p0 }
 0x1fb   : > { %p5000_p13 = pnand %p4999_p12, %p4993_p4 }
 0x1fd   : > { %5003 = shalt.err (!%p5000_p13)
}
 0x1fe   : > { %s6786_s9 = sld [smem:[#allocation83_spill]] }
 0x1ff   : > { %4207 = dma.hbm_to_vmem [thread:$0]  (!%p6781_p3), %s6785_s5, 256, %s880_s27, [#allocation22], %s6783_s6, %s6783_s6, %s6782_s8  }
 0x204   : > { %s5004_s20 = scalar_lea.hbm %s6786_s9, 16 }
 0x205   : > { %p5005_p6 = scmp.ne.s32.totalorder %s6786_s9, %s5004_s20  ;;  %p5011_p7 = scmp.lt.u32.totalorder %s5004_s20, %s6786_s9 }
 0x207   : > { %p5007_p11 = pnand %p5005_p6, %p6780_p8 }
 0x209   : > { %p5008_p2 = pneg %p5007_p11 }
 0x20b   : > { %p5013_p10 = pnand %p5011_p7, %p5008_p2 }
 0x20d   : > { %5016 = shalt.err (!%p5013_p10)
}
 0x20e   : > { %s5017_s25 = scalar_lea.vmem %s905_s14, 16  ;;  %s5024_s4 = scalar_lea.vmem %s905_s14, 32 }
 0x20f   : > { %p5018_p1 = scmp.ne.s32.totalorder %s905_s14, %s5017_s25  ;;  %p5025_p5 = scmp.lt.s32.totalorder %s905_s14, %s905_s14 }
 0x210   : > { %p5026_p9 = scmp.lt.s32.totalorder %s5024_s4, %s5017_s25 }
 0x211   : > { %p5020_p0 = pnand %p5018_p1, %p6780_p8 }
 0x212   : > { %p5027_p12 = por %p5026_p9, %p5025_p5 }
 0x213   : > { %p5021_p4 = pneg %p5020_p0 }
 0x215   : > { %p5028_p13 = pnand %p5027_p12, %p5021_p4 }
 0x217   : > { %5031 = shalt.err (!%p5028_p13)
}
 0x218   : > { %s6787_s27 = sld [smem:[#allocation85_spill]]  ;;  %s5572_s24 = smov [#allocation29]  }
 0x219   : > { %4213 = dma.hbm_to_vmem [thread:$0]  (!%p6781_p3), %s6786_s9, 16, %s905_s14, [#allocation25]  }
 0x21a   : > { %s925_s20 = sshll.u32 %s5572_s24, 4  ;;  %s5573_s5 = smov [#allocation32]   ;;  %s926_s20 = int_to_ptr.vmem [resolvable:$true] %s925_s20 }
 0x21b   : > { %s949_s21 = sshll.u32 %s5573_s5, 4  ;;  %s950_s21 = int_to_ptr.vmem [resolvable:$true] %s949_s21 }
 0x21e   : > { %s5032_s30 = scalar_lea.hbm %s6787_s27, 256 }
 0x21f   : > { %p5033_p6 = scmp.ne.s32.totalorder %s6787_s27, %s5032_s30  ;;  %p5039_p7 = scmp.lt.u32.totalorder %s5032_s30, %s6787_s27 }
 0x221   : > { %p5035_p11 = pnand %p5033_p6, %p6780_p8 }
 0x223   : > { %p5036_p2 = pneg %p5035_p11 }
 0x225   : > { %p5041_p10 = pnand %p5039_p7, %p5036_p2 }
 0x227   : > { %5044 = shalt.err (!%p5041_p10)
}
 0x228   : > { %s5045_s25 = scalar_lea.vmem %s926_s20, 256  ;;  %p5053_p5 = scmp.lt.s32.totalorder %s926_s20, %s926_s20 }
 0x229   : > { %p5046_p1 = scmp.ne.s32.totalorder %s926_s20, %s5045_s25  ;;  %p5054_p9 = scmp.lt.s32.totalorder %s5045_s25, %s5045_s25 }
 0x22b   : > { %p5048_p0 = pnand %p5046_p1, %p6780_p8  ;;  %p5055_p12 = por %p5054_p9, %p5053_p5 }
 0x22d   : > { %p5049_p4 = pneg %p5048_p0 }
 0x22f   : > { %p5056_p13 = pnand %p5055_p12, %p5049_p4 }
 0x231   : > { %5059 = shalt.err (!%p5056_p13)
}
 0x232   : > { %s6788_s30 = sld [smem:[#allocation87_spill]] }
 0x233   : > { %4219 = dma.hbm_to_vmem [thread:$0]  (!%p6781_p3), %s6787_s27, 256, %s926_s20, [#allocation28], %s6783_s6, %s6783_s6, %s6782_s8  }
 0x238   : > { %s5060_s14 = scalar_lea.hbm %s6788_s30, 256 }
 0x239   : > { %p5061_p6 = scmp.ne.s32.totalorder %s6788_s30, %s5060_s14  ;;  %p5067_p7 = scmp.lt.u32.totalorder %s5060_s14, %s6788_s30 }
 0x23b   : > { %p5063_p11 = pnand %p5061_p6, %p6780_p8 }
 0x23d   : > { %p5064_p2 = pneg %p5063_p11 }
 0x23f   : > { %p5069_p10 = pnand %p5067_p7, %p5064_p2 }
 0x241   : > { %5072 = shalt.err (!%p5069_p10)
}
 0x242   : > { %s5073_s5 = scalar_lea.vmem %s950_s21, 256  ;;  %p5081_p5 = scmp.lt.s32.totalorder %s950_s21, %s950_s21 }
 0x243   : > { %p5074_p1 = scmp.ne.s32.totalorder %s950_s21, %s5073_s5  ;;  %p5082_p9 = scmp.lt.s32.totalorder %s5073_s5, %s5073_s5 }
 0x245   : > { %p5076_p0 = pnand %p5074_p1, %p6780_p8  ;;  %p5083_p12 = por %p5082_p9, %p5081_p5 }
 0x247   : > { %p5077_p4 = pneg %p5076_p0 }
 0x249   : > { %p5084_p13 = pnand %p5083_p12, %p5077_p4 }
 0x24b   : > { %5087 = shalt.err (!%p5084_p13)
}
 0x24c   : > { %s6789_s4 = sld [smem:[#allocation89_spill]]  ;;  %s5574_s24 = smov [#allocation35]  }
 0x24d   : > { %4225 = dma.hbm_to_vmem [thread:$0]  (!%p6781_p3), %s6788_s30, 256, %s950_s21, [#allocation31], %s6783_s6, %s6783_s6, %s6782_s8  }
 0x24e   : > { %s973_s20 = sshll.u32 %s5574_s24, 4  ;;  %s5575_s25 = smov [#allocation38]   ;;  %s974_s20 = int_to_ptr.vmem [resolvable:$true] %s973_s20 }
 0x24f   : > { %s997_s14 = sshll.u32 %s5575_s25, 4  ;;  %s998_s14 = int_to_ptr.vmem [resolvable:$true] %s997_s14 }
 0x252   : > { %s5088_s5 = scalar_lea.hbm %s6789_s4, 256 }
 0x253   : > { %p5089_p6 = scmp.ne.s32.totalorder %s6789_s4, %s5088_s5  ;;  %p5095_p7 = scmp.lt.u32.totalorder %s5088_s5, %s6789_s4 }
 0x255   : > { %p5091_p11 = pnand %p5089_p6, %p6780_p8 }
 0x257   : > { %p5092_p2 = pneg %p5091_p11 }
 0x259   : > { %p5097_p10 = pnand %p5095_p7, %p5092_p2 }
 0x25b   : > { %5100 = shalt.err (!%p5097_p10)
}
 0x25c   : > { %s5101_s9 = scalar_lea.vmem %s974_s20, 256  ;;  %p5109_p5 = scmp.lt.s32.totalorder %s974_s20, %s974_s20 }
 0x25d   : > { %p5102_p1 = scmp.ne.s32.totalorder %s974_s20, %s5101_s9  ;;  %p5110_p9 = scmp.lt.s32.totalorder %s5101_s9, %s5101_s9 }
 0x25f   : > { %p5104_p0 = pnand %p5102_p1, %p6780_p8  ;;  %p5111_p12 = por %p5110_p9, %p5109_p5 }
 0x261   : > { %p5105_p4 = pneg %p5104_p0 }
 0x263   : > { %p5112_p13 = pnand %p5111_p12, %p5105_p4 }
 0x265   : > { %5115 = shalt.err (!%p5112_p13)
}
 0x266   : > { %s6790_s21 = sld [smem:[#allocation91_spill]] }
 0x267   : > { %4231 = dma.hbm_to_vmem [thread:$0]  (!%p6781_p3), %s6789_s4, 256, %s974_s20, [#allocation34], %s6783_s6, %s6783_s6, %s6782_s8  }
 0x26c   : > { %s5116_s24 = scalar_lea.hbm %s6790_s21, 256 }
 0x26d   : > { %p5117_p6 = scmp.ne.s32.totalorder %s6790_s21, %s5116_s24  ;;  %p5123_p7 = scmp.lt.u32.totalorder %s5116_s24, %s6790_s21 }
 0x26f   : > { %p5119_p11 = pnand %p5117_p6, %p6780_p8 }
 0x271   : > { %p5120_p2 = pneg %p5119_p11 }
 0x273   : > { %p5125_p10 = pnand %p5123_p7, %p5120_p2 }
 0x275   : > { %5128 = shalt.err (!%p5125_p10)
}
 0x276   : > { %s5129_s9 = scalar_lea.vmem %s998_s14, 256  ;;  %p5137_p5 = scmp.lt.s32.totalorder %s998_s14, %s998_s14 }
 0x277   : > { %p5130_p1 = scmp.ne.s32.totalorder %s998_s14, %s5129_s9  ;;  %p5138_p9 = scmp.lt.s32.totalorder %s5129_s9, %s5129_s9 }
 0x279   : > { %p5132_p0 = pnand %p5130_p1, %p6780_p8  ;;  %p5139_p12 = por %p5138_p9, %p5137_p5 }
 0x27b   : > { %p5133_p4 = pneg %p5132_p0 }
 0x27d   : > { %p5140_p13 = pnand %p5139_p12, %p5133_p4 }
 0x27f   : > { %5143 = shalt.err (!%p5140_p13)
}
 0x280   : > { %s6791_s20 = sld [smem:[#allocation93_spill]]  ;;  %s5576_s25 = smov [#allocation41]  }
 0x281   : > { %4237 = dma.hbm_to_vmem [thread:$0]  (!%p6781_p3), %s6790_s21, 256, %s998_s14, [#allocation37], %s6783_s6, %s6783_s6, %s6782_s8  }
 0x282   : > { %s1022_s5 = sshll.u32 %s5576_s25, 4  ;;  %s5577_s24 = smov [#allocation44]   ;;  %s1023_s5 = int_to_ptr.vmem [resolvable:$true] %s1022_s5 }
 0x283   : > { %s1043_s4 = sshll.u32 %s5577_s24, 4  ;;  %s1044_s4 = int_to_ptr.vmem [resolvable:$true] %s1043_s4 }
 0x286   : > { %s5144_s9 = scalar_lea.hbm %s6791_s20, 16 }
 0x287   : > { %p5145_p6 = scmp.ne.s32.totalorder %s6791_s20, %s5144_s9  ;;  %p5151_p7 = scmp.lt.u32.totalorder %s5144_s9, %s6791_s20 }
 0x289   : > { %p5147_p11 = pnand %p5145_p6, %p6780_p8 }
 0x28b   : > { %p5148_p2 = pneg %p5147_p11 }
 0x28d   : > { %p5153_p10 = pnand %p5151_p7, %p5148_p2 }
 0x28f   : > { %5156 = shalt.err (!%p5153_p10)
}
 0x290   : > { %s5157_s27 = scalar_lea.vmem %s1023_s5, 16  ;;  %s5164_s14 = scalar_lea.vmem %s1023_s5, 32 }
 0x291   : > { %p5158_p1 = scmp.ne.s32.totalorder %s1023_s5, %s5157_s27  ;;  %p5165_p5 = scmp.lt.s32.totalorder %s1023_s5, %s1023_s5 }
 0x292   : > { %p5166_p9 = scmp.lt.s32.totalorder %s5164_s14, %s5157_s27 }
 0x293   : > { %p5160_p0 = pnand %p5158_p1, %p6780_p8 }
 0x294   : > { %p5167_p12 = por %p5166_p9, %p5165_p5 }
 0x295   : > { %p5161_p4 = pneg %p5160_p0 }
 0x297   : > { %p5168_p13 = pnand %p5167_p12, %p5161_p4 }
 0x299   : > { %5171 = shalt.err (!%p5168_p13)
}
 0x29a   : > { %s6792_s25 = sld [smem:[#allocation95_spill]] }
 0x29b   : > { %4243 = dma.hbm_to_vmem [thread:$0]  (!%p6781_p3), %s6791_s20, 16, %s1023_s5, [#allocation40]  }
 0x2a0   : > { %s5172_s24 = scalar_lea.hbm %s6792_s25, 256 }
 0x2a1   : > { %p5173_p6 = scmp.ne.s32.totalorder %s6792_s25, %s5172_s24  ;;  %p5179_p7 = scmp.lt.u32.totalorder %s5172_s24, %s6792_s25 }
 0x2a3   : > { %p5175_p11 = pnand %p5173_p6, %p6780_p8 }
 0x2a5   : > { %p5176_p2 = pneg %p5175_p11 }
 0x2a7   : > { %p5181_p10 = pnand %p5179_p7, %p5176_p2 }
 0x2a9   : > { %5184 = shalt.err (!%p5181_p10)
}
 0x2aa   : > { %s5185_s27 = scalar_lea.vmem %s1044_s4, 256  ;;  %p5193_p5 = scmp.lt.s32.totalorder %s1044_s4, %s1044_s4 }
 0x2ab   : > { %p5186_p1 = scmp.ne.s32.totalorder %s1044_s4, %s5185_s27  ;;  %p5194_p9 = scmp.lt.s32.totalorder %s5185_s27, %s5185_s27 }
 0x2ad   : > { %p5188_p0 = pnand %p5186_p1, %p6780_p8  ;;  %p5195_p12 = por %p5194_p9, %p5193_p5 }
 0x2af   : > { %p5189_p4 = pneg %p5188_p0 }
 0x2b1   : > { %p5196_p13 = pnand %p5195_p12, %p5189_p4 }
 0x2b3   : > { %5199 = shalt.err (!%p5196_p13)
}
 0x2b4   : > { %s6793_s5 = sld [smem:[#allocation97_spill]]  ;;  %s5578_s9 = smov [#allocation47]  }
 0x2b5   : > { %4249 = dma.hbm_to_vmem [thread:$0]  (!%p6781_p3), %s6792_s25, 256, %s1044_s4, [#allocation43], %s6783_s6, %s6783_s6, %s6782_s8  }
 0x2b6   : > { %s1067_s14 = sshll.u32 %s5578_s9, 4  ;;  %s5579_s24 = smov [#allocation50]   ;;  %s1068_s14 = int_to_ptr.vmem [resolvable:$true] %s1067_s14 }
 0x2b7   : > { %s1092_s20 = sshll.u32 %s5579_s24, 4  ;;  %s1093_s20 = int_to_ptr.vmem [resolvable:$true] %s1092_s20 }
 0x2ba   : > { %s5200_s27 = scalar_lea.hbm %s6793_s5, 512 }
 0x2bb   : > { %p5201_p6 = scmp.ne.s32.totalorder %s6793_s5, %s5200_s27  ;;  %p5207_p7 = scmp.lt.u32.totalorder %s5200_s27, %s6793_s5 }
 0x2bd   : > { %p5203_p11 = pnand %p5201_p6, %p6780_p8 }
 0x2bf   : > { %p5204_p2 = pneg %p5203_p11 }
 0x2c1   : > { %p5209_p10 = pnand %p5207_p7, %p5204_p2 }
 0x2c3   : > { %5212 = shalt.err (!%p5209_p10)
}
 0x2c4   : > { %s5213_s21 = scalar_lea.vmem %s1068_s14, 512  ;;  %p5221_p5 = scmp.lt.s32.totalorder %s1068_s14, %s1068_s14 }
 0x2c5   : > { %p5214_p1 = scmp.ne.s32.totalorder %s1068_s14, %s5213_s21  ;;  %p5222_p9 = scmp.lt.s32.totalorder %s5213_s21, %s5213_s21 }
 0x2c7   : > { %p5216_p0 = pnand %p5214_p1, %p6780_p8  ;;  %p5223_p12 = por %p5222_p9, %p5221_p5 }
 0x2c9   : > { %p5217_p4 = pneg %p5216_p0 }
 0x2cb   : > { %p5224_p13 = pnand %p5223_p12, %p5217_p4 }
 0x2cd   : > { %5227 = shalt.err (!%p5224_p13)
}
 0x2ce   : > { %s6794_s4 = sld [smem:[#allocation99_spill]] }
 0x2cf   : > { %4255 = dma.hbm_to_vmem [thread:$0]  (!%p6781_p3), %s6793_s5, 512, %s1068_s14, [#allocation46], %s6783_s6, %s6783_s6, %s6782_s8  }
 0x2d4   : > { %s5228_s9 = scalar_lea.hbm %s6794_s4, 16 }
 0x2d5   : > { %p5229_p6 = scmp.ne.s32.totalorder %s6794_s4, %s5228_s9  ;;  %p5235_p7 = scmp.lt.u32.totalorder %s5228_s9, %s6794_s4 }
 0x2d7   : > { %p5231_p11 = pnand %p5229_p6, %p6780_p8 }
 0x2d9   : > { %p5232_p2 = pneg %p5231_p11 }
 0x2db   : > { %p5237_p10 = pnand %p5235_p7, %p5232_p2 }
 0x2dd   : > { %5240 = shalt.err (!%p5237_p10)
}
 0x2de   : > { %s5241_s21 = scalar_lea.vmem %s1093_s20, 16  ;;  %s5248_s24 = scalar_lea.vmem %s1093_s20, 32 }
 0x2df   : > { %p5242_p1 = scmp.ne.s32.totalorder %s1093_s20, %s5241_s21  ;;  %p5249_p5 = scmp.lt.s32.totalorder %s1093_s20, %s1093_s20 }
 0x2e0   : > { %p5250_p9 = scmp.lt.s32.totalorder %s5248_s24, %s5241_s21 }
 0x2e1   : > { %p5244_p0 = pnand %p5242_p1, %p6780_p8 }
 0x2e2   : > { %p5251_p12 = por %p5250_p9, %p5249_p5 }
 0x2e3   : > { %p5245_p4 = pneg %p5244_p0 }
 0x2e5   : > { %p5252_p13 = pnand %p5251_p12, %p5245_p4 }
 0x2e7   : > { %5255 = shalt.err (!%p5252_p13)
}
 0x2e8   : > { %s6795_s8 = sld [smem:[#allocation100_spill]]  ;;  %s5580_s6 = smov [#allocation51]  }
 0x2e9   : > { %4261 = dma.hbm_to_vmem [thread:$0]  (!%p6781_p3), %s6794_s4, 16, %s1093_s20, [#allocation49]  }
 0x2ea   : > { %s1103_s14 = sshll.u32 %s5580_s6, 4  ;;  %s3712_s27 = sshll.u32 %s5991_s3, 3  ;;  %s1104_s14 = int_to_ptr.vmem [resolvable:$true] %s1103_s14 }
 0x2ee   : > { %s5256_s9 = scalar_lea.hbm %s6795_s8, 16 }
 0x2ef   : > { %p5257_p6 = scmp.ne.s32.totalorder %s6795_s8, %s5256_s9  ;;  %p5263_p7 = scmp.lt.u32.totalorder %s5256_s9, %s6795_s8 }
 0x2f1   : > { %p5259_p11 = pnand %p5257_p6, %p6780_p8 }
 0x2f3   : > { %p5260_p2 = pneg %p5259_p11 }
 0x2f5   : > { %p5265_p10 = pnand %p5263_p7, %p5260_p2 }
 0x2f7   : > { %5268 = shalt.err (!%p5265_p10)
}
 0x2f8   : > { %s5269_s21 = scalar_lea.vmem %s1104_s14, 16  ;;  %s5276_s24 = scalar_lea.vmem %s1104_s14, 32 }
 0x2f9   : > { %p5270_p1 = scmp.ne.s32.totalorder %s1104_s14, %s5269_s21  ;;  %p5277_p5 = scmp.lt.s32.totalorder %s1104_s14, %s1104_s14 }
 0x2fa   : > { %p5278_p9 = scmp.lt.s32.totalorder %s5276_s24, %s5269_s21 }
 0x2fb   : > { %p5272_p0 = pnand %p5270_p1, %p6780_p8 }
 0x2fc   : > { %p5279_p12 = por %p5278_p9, %p5277_p5 }
 0x2fd   : > { %p5273_p4 = pneg %p5272_p0 }
 0x2ff   : > { %p5280_p13 = pnand %p5279_p12, %p5273_p4 }
 0x301   : > { %5283 = shalt.err (!%p5280_p13)
}
 0x302   : > { %s6796_s20 = sld [smem:[#allocation72_spill]]  ;;  %s3713_s1 = sshll.u32 %s5516_s22, 7 }
 0x303   : > { %4264 = dma.hbm_to_vmem [thread:$0]  (!%p6781_p3), %s6795_s8, 16, %s1104_s14, [#allocation52]  }
 0x304   : > { %s1118_s9 = scalar_lea.vmem [#allocation6], %s3712_s27  ;;  %s6797_s7 = sshll.u32 %s5991_s3, 2 }
 0x305   : > { %s1126_s21 = sshll.u32 %s1118_s9, 4  ;;  %s6208_s24 = scalar_lea.vmem [#allocation11], %s6797_s7  ;;  %s6204_s21 = int_to_ptr.vmem [resolvable:$true] %s1126_s21 }
 0x306   : > { %s1162_s4 = sshll.u32 %s6208_s24, 4  ;;  %s1115_s5 = scalar_lea.sflag [#allocation7], %s5991_s3  ;;  %s1163_s4 = int_to_ptr.vmem [resolvable:$true] %s1162_s4 }
 0x307   : > { %p6798_p3 = scmp.ne.s32.totalorder %s6777_s19, 0 }
 0x308   : > { %s6202_s6 = scalar_lea.hbm %s6796_s20, %s3713_s1  ;;  %s5289_s14 = scalar_lea.hbm %s6796_s20, 256 }
 0x309   : > { %s5284_s25 = scalar_lea.hbm %s6202_s6, 128  ;;  %p5290_p2 = scmp.lt.u32.totalorder %s6202_s6, %s6796_s20 }
 0x30a   : > { %p5285_p8 = scmp.ne.s32.totalorder %s6202_s6, %s5284_s25  ;;  %p5291_p7 = scmp.lt.u32.totalorder %s5289_s14, %s5284_s25 }
 0x30b   : > { %p5293_p1 = scmp.lt.u32.totalorder %s5284_s25, %s6202_s6 }
 0x30c   : > { %p5287_p6 = pnand %p5285_p8, %p6798_p3  ;;  %p5292_p10 = por %p5291_p7, %p5290_p2 }
 0x30e   : > { %p5288_p11 = pneg %p5287_p6  ;;  %p5294_p0 = por %p5293_p1, %p5292_p10 }
 0x310   : > { %p5295_p4 = pnand %p5294_p0, %p5288_p11 }
 0x312   : > { %5298 = shalt.err (!%p5295_p4)
}
 0x313   : > { %s5299_s27 = scalar_lea.vmem %s6204_s21, 128  ;;  %s5581_s1 = smov [#allocation6]  }
 0x314   : > { %p5300_p5 = scmp.ne.s32.totalorder %s6204_s21, %s5299_s27  ;;  %s5304_s9 = sshll.u32 %s5581_s1, 4  ;;  %s5305_s9 = int_to_ptr.vmem [resolvable:$false] %s5304_s9 }
 0x315   : > { %s5306_s7 = scalar_lea.vmem %s5305_s9, 256  ;;  %p5307_p13 = scmp.lt.s32.totalorder %s6204_s21, %s5305_s9 }
 0x316   : > { %p5302_p9 = pnand %p5300_p5, %p6798_p3  ;;  %p5308_p8 = scmp.lt.s32.totalorder %s5306_s7, %s5299_s27 }
 0x318   : > { %p5303_p12 = pneg %p5302_p9  ;;  %p5309_p6 = por %p5308_p8, %p5307_p13 }
 0x31a   : > { %p5310_p2 = pnand %p5309_p6, %p5303_p12 }
 0x31c   : > { %5313 = shalt.err (!%p5310_p2)
}
 0x31d   : > { %p6799_p11 = scmp.ne.s32.totalorder %s6776_s10, 0  ;;  %s3718_s25 = sshll.u32 %s5991_s3, 1 }
 0x31e   : > { %s5314_s14 = scalar_lea.hbm %s6040_s29, 64  ;;  %s5319_s27 = scalar_lea.hbm %s5611_s13, 128 }
 0x31f   : > { %4268 = dma.hbm_to_vmem [thread:$0]  (!%p6799_p11), %s6202_s6, 128, %s6204_s21, %s1115_s5  }
 0x320   : > { %p5315_p7 = scmp.ne.s32.totalorder %s6040_s29, %s5314_s14  ;;  %p5320_p0 = scmp.lt.u32.totalorder %s6040_s29, %s5611_s13 }
 0x321   : > { %p5321_p4 = scmp.lt.u32.totalorder %s5319_s27, %s5314_s14  ;;  %p5323_p9 = scmp.lt.u32.totalorder %s5314_s14, %s6040_s29 }
 0x322   : > { %p5317_p10 = pnand %p5315_p7, %p6798_p3 }
 0x323   : > { %p5322_p5 = por %p5321_p4, %p5320_p0 }
 0x324   : > { %p5318_p1 = pneg %p5317_p10 }
 0x325   : > { %p5324_p12 = por %p5323_p9, %p5322_p5 }
 0x327   : > { %p5325_p13 = pnand %p5324_p12, %p5318_p1 }
 0x329   : > { %5328 = shalt.err (!%p5325_p13)
}
 0x32a   : > { %s5329_s1 = scalar_lea.vmem %s1163_s4, 64  ;;  %s5582_s5 = smov [#allocation11]  }
 0x32b   : > { %p5330_p8 = scmp.ne.s32.totalorder %s1163_s4, %s5329_s1  ;;  %s5334_s6 = sshll.u32 %s5582_s5, 4  ;;  %s5335_s6 = int_to_ptr.vmem [resolvable:$false] %s5334_s6 }
 0x32c   : > { %s5336_s21 = scalar_lea.vmem %s5335_s6, 128  ;;  %p5337_p7 = scmp.lt.s32.totalorder %s1163_s4, %s5335_s6 }
 0x32d   : > { %p5332_p6 = pnand %p5330_p8, %p6798_p3  ;;  %p5338_p10 = scmp.lt.s32.totalorder %s5336_s21, %s5329_s1 }
 0x32f   : > { %p5333_p2 = pneg %p5332_p6  ;;  %p5339_p11 = por %p5338_p10, %p5337_p7 }
 0x331   : > { %p5340_p0 = pnand %p5339_p11, %p5333_p2 }
 0x333   : > { %5343 = shalt.err (!%p5340_p0)
}
 0x334   : > { %p6800_p4 = scmp.ne.s32.totalorder %s6776_s10, 0  ;;  %s6801_s24 = sld [smem:[#allocation74_spill]] }
 0x335   : > { %s3719_s9 = sshll.u32 %s5516_s22, 5  ;;  %s1173_s14 = scalar_lea.vmem [#allocation12], %s3718_s25 }
 0x336   : > { %4274 = dma.hbm_to_vmem [thread:$0]  (!%p6800_p4), %s6040_s29, 64, %s1163_s4, %s6011_s12  }
 0x337   : > { %s1181_s27 = sshll.u32 %s1173_s14, 4  ;;  %s6802_s1 = sand.u32 1, %s5520_s23   ;;  %s1182_s27 = int_to_ptr.vmem [resolvable:$true] %s1181_s27 }
 0x338   : > { %s1170_s5 = scalar_lea.sflag [#allocation13], %s6802_s1 }
 0x33a   : > { %s6248_s7 = scalar_lea.hbm %s6801_s24, %s3719_s9  ;;  %s5349_s21 = scalar_lea.hbm %s6801_s24, 64 }
 0x33b   : > { %s5344_s6 = scalar_lea.hbm %s6248_s7, 32  ;;  %p5350_p9 = scmp.lt.u32.totalorder %s6248_s7, %s6801_s24 }
 0x33c   : > { %p5345_p11 = scmp.ne.s32.totalorder %s6248_s7, %s5344_s6  ;;  %p5351_p12 = scmp.lt.u32.totalorder %s5349_s21, %s5344_s6 }
 0x33d   : > { %p5353_p8 = scmp.lt.u32.totalorder %s5344_s6, %s6248_s7 }
 0x33e   : > { %p5347_p1 = pnand %p5345_p11, %p6798_p3  ;;  %p5352_p13 = por %p5351_p12, %p5350_p9 }
 0x340   : > { %p5348_p5 = pneg %p5347_p1  ;;  %p5354_p6 = por %p5353_p8, %p5352_p13 }
 0x342   : > { %p5355_p2 = pnand %p5354_p6, %p5348_p5 }
 0x344   : > { %5358 = shalt.err (!%p5355_p2)
}
 0x345   : > { %s5359_s3 = scalar_lea.vmem %s1182_s27, 32  ;;  %s5583_s12 = smov [#allocation12]  }
 0x346   : > { %p5360_p7 = scmp.ne.s32.totalorder %s1182_s27, %s5359_s3  ;;  %s5364_s29 = sshll.u32 %s5583_s12, 4  ;;  %s5365_s29 = int_to_ptr.vmem [resolvable:$false] %s5364_s29 }
 0x347   : > { %s5366_s4 = scalar_lea.vmem %s5365_s29, 64  ;;  %p5367_p11 = scmp.lt.s32.totalorder %s1182_s27, %s5365_s29 }
 0x348   : > { %p5362_p10 = pnand %p5360_p7, %p6798_p3  ;;  %p5368_p1 = scmp.lt.s32.totalorder %s5366_s4, %s5359_s3 }
 0x34a   : > { %p5363_p0 = pneg %p5362_p10  ;;  %p5369_p4 = por %p5368_p1, %p5367_p11 }
 0x34c   : > { %p5370_p9 = pnand %p5369_p4, %p5363_p0 }
 0x34e   : > { %5373 = shalt.err (!%p5370_p9)
}
 0x34f   : > { %p6803_p12 = scmp.ne.s32.totalorder %s6776_s10, 0  ;;  %s6804_s25 = sld [smem:[#allocation103_spill]] }
 0x351   : > { %4277 = dma.hbm_to_vmem [thread:$0]  (!%p6803_p12), %s6248_s7, 32, %s1182_s27, %s1170_s5  }
 0x355   : > { %p6805_p5 = scmp.ne.s32.totalorder %s6804_s25, 0 }
 0x356   : > { %s6270_s19 = sand.u32 (!%p6805_p5), 1, %s5504_s15   ;;  %p6806_p3 = scmp.ne.s32.totalorder (!%p6805_p5), %s6773_s18, 0 }
 0x357   : > { %1190 = sbr.rel (%p6805_p5) target bundleno = 4858 (0x12fa), region = 140  ;;  %s3721_s9 = sshll.u32 (!%p6805_p5), %s6270_s19, 3 }
 0x358   : > { %s1193_s14 = scalar_lea.sflag (!%p6805_p5), [#allocation7], %s6270_s19  ;;  %s6276_s1 = scalar_lea.vmem (!%p6805_p5), [#allocation6], %s3721_s9 }
 0x35e   : > { %5427 = dma.done.wait (%p6806_p3), %s1193_s14, 128  }
 0x35f   : > { %5429 = vsyncadd (%p6806_p3), %s1193_s14, 4294967168  ;;  %s1201_s10 = sand.u32 1, %s5784_s26   ;;  %s3722_s7 = sshll.u32 %s6270_s19, 2 }
 0x360   : > { %s1202_s27 = scalar_lea.sflag [#allocation10], %s1201_s10  ;;  %s6284_s5 = scalar_lea.vmem [#allocation9], %s3722_s7 }
 0x361   : > { %5431 = dma.done.wait (%p6806_p3), %s1202_s27, 128  }
 0x362   : > { %5433 = vsyncadd (%p6806_p3), %s1202_s27, 4294967168  ;;  %s3724_s6 = sshll.u32 %s6270_s19, 1  ;;  %s6291_s21 = scalar_lea.vmem [#allocation11], %s3722_s7 }
 0x363   : > { %s1220_s3 = scalar_lea.sflag [#allocation13], %s1201_s10  ;;  %s6293_s12 = scalar_lea.vmem [#allocation12], %s3724_s6 }
 0x364   : > { %5435 = dma.done.wait (%p6806_p3), %s1220_s3, 32  }
 0x365   : > { %5437 = vsyncadd (%p6806_p3), %s1220_s3, 4294967264  ;;  %p6807_p4 = scmp.eq.s32.totalorder %s5784_s26, 0 }
 0x367   : > { %5439 = dma.done.wait (%p6807_p4), [#allocation13], 256   ;;  %p6808_p13 = pmov %p6807_p4 }
 0x368   : > { %p6809_p8 = pmov %p6807_p4 }
 0x369   : > { %5441 = vsyncadd (%p6808_p13), [#allocation13], 4294967040 }
 0x36a   : > { %5443 = dma.done.wait (%p6809_p8), [#allocation16], 272   ;;  %p6810_p6 = pmov %p6807_p4 }
 0x36b   : > { %p6811_p2 = pmov %p6807_p4 }
 0x36c   : > { %5445 = vsyncadd (%p6810_p6), [#allocation16], 4294967024 }
 0x36d   : > { %5447 = dma.done.wait (%p6811_p2), [#allocation19], 272   ;;  %p6812_p7 = pmov %p6811_p2 }
 0x36e   : > { %p6813_p10 = pmov %p6811_p2 }
 0x36f   : > { %5449 = vsyncadd (%p6812_p7), [#allocation19], 4294967024 }
 0x370   : > { %5451 = dma.done.wait (%p6813_p10), [#allocation22], 272   ;;  %p6814_p0 = pmov %p6811_p2 }
 0x372   : > { %5453 = vsyncadd (%p6814_p0), [#allocation22], 4294967024  ;;  %p6815_p11 = pmov %p6814_p0 }
 0x373   : > { %p6816_p1 = pmov %p6814_p0 }
 0x374   : > { %5455 = dma.done.wait (%p6815_p11), [#allocation25], 32  }
 0x375   : > { %5457 = vsyncadd (%p6816_p1), [#allocation25], 4294967264  ;;  %p6817_p9 = pmov %p6814_p0 }
 0x376   : > { %p6818_p12 = pmov %p6814_p0 }
 0x377   : > { %5459 = dma.done.wait (%p6817_p9), [#allocation28], 272  }
 0x378   : > { %5461 = vsyncadd (%p6818_p12), [#allocation28], 4294967024  ;;  %p6819_p5 = pmov %p6814_p0 }
 0x379   : > { %p6820_p3 = pmov %p6814_p0 }
 0x37a   : > { %5463 = dma.done.wait (%p6819_p5), [#allocation31], 272  }
 0x37b   : > { %5465 = vsyncadd (%p6820_p3), [#allocation31], 4294967024  ;;  %p6821_p4 = pmov %p6814_p0 }
 0x37c   : > { %p6822_p13 = pmov %p6814_p0 }
 0x37d   : > { %5467 = dma.done.wait (%p6821_p4), [#allocation34], 272  }
 0x37e   : > { %5469 = vsyncadd (%p6822_p13), [#allocation34], 4294967024  ;;  %p6823_p8 = pmov %p6814_p0 }
 0x37f   : > { %p6824_p6 = pmov %p6814_p0 }
 0x380   : > { %5471 = dma.done.wait (%p6823_p8), [#allocation37], 272  }
 0x381   : > { %5473 = vsyncadd (%p6824_p6), [#allocation37], 4294967024  ;;  %p6825_p2 = pmov %p6814_p0 }
 0x382   : > { %p6826_p7 = pmov %p6814_p0 }
 0x383   : > { %5475 = dma.done.wait (%p6825_p2), [#allocation40], 32  }
 0x384   : > { %5477 = vsyncadd (%p6826_p7), [#allocation40], 4294967264  ;;  %p6827_p10 = pmov %p6814_p0 }
 0x386   : > { %5479 = dma.done.wait (%p6827_p10), [#allocation43], 272  }
 0x387   : > { %5481 = vsyncadd (%p6814_p0), [#allocation43], 4294967024  ;;  %p6828_p11 = pmov %p6814_p0 }
 0x388   : > { %p6829_p1 = pmov %p6814_p0 }
 0x389   : > { %5483 = dma.done.wait (%p6828_p11), [#allocation46], 528  }
 0x38a   : > { %5485 = vsyncadd (%p6829_p1), [#allocation46], 4294966768  ;;  %p6830_p9 = pmov %p6814_p0 }
 0x38b   : > { %p6831_p12 = pmov %p6814_p0 }
 0x38c   : > { %5487 = dma.done.wait (%p6830_p9), [#allocation49], 32  }
 0x38d   : > { %5489 = vsyncadd (%p6831_p12), [#allocation49], 4294967264  ;;  %p6832_p5 = pmov %p6814_p0 }
 0x38e   : > { %p6833_p3 = pmov %p6814_p0 }
 0x38f   : > { %5491 = dma.done.wait (%p6832_p5), [#allocation52], 16  }
 0x390   : > { %5493 = vsyncadd (%p6833_p3), [#allocation52], 4294967280  ;;  %v5584_v0 = vmov 0.0   ;;  %vm5585_vm0 = vmmov 0   ;;  %v4450_v1 = vld [vmem:[#allocation17] sm:$0xff]   ;;  %v4451_v2 = vld [vmem:[#allocation17 + $0x8] sm:$0xff]  }
 0x391   : > { %3892 = vmatprep.subr.bf16.mxu0 %v5584_v0  ;;  %3896 = vmatprep.mubr.msk.bf16.mxu0 %vm5585_vm0, %v5584_v0  ;;  %v1424_v3 = vld [vmem:[%s6284_s5] sm:$0xf]  ;;  %vm1448_vm1 = vcmask 261120   ;;  %v4452_v4 = vld [vmem:[#allocation32] sm:$0xff]   ;;  %v1596_v8 = vld [vmem:[%s6291_s21] sm:$0xf] }
 0x392   : > { %3900 = vmatprep.subr.bf16.mxu1 %v5584_v0  ;;  %3904 = vmatprep.mubr.msk.bf16.mxu1 %vm5585_vm0, %v5584_v0  ;;  %v4456_v5 = vld [vmem:[#allocation20] sm:$0xff]   ;;  %v4457_v7 = vld [vmem:[#allocation20 + $0x8] sm:$0xff]   ;;  %v4459_v14 = vld [vmem:[#allocation35 + $0x8] sm:$0xff]   ;;  %vm1557_vm2 = vcmask 60416   ;;  %s5586_s26 = smov 104   ;;  %s5587_s18 = smov 120  }
 0x393   : > { %3893 = vmatpush3.bf16.msra.mxu0 %v4450_v1  ;;  %v4453_v6 = vld [vmem:[#allocation32 + $0x8] sm:$0xff]   ;;  %3901 = vmatpush3.bf16.msra.mxu1 %v4456_v5  ;;  %v4458_v13 = vld [vmem:[#allocation35] sm:$0xff]   ;;  %v3752_v15 = vld [vmem:[#allocation18] ss:$0 sm:$0xff]  ;;  %s5588_s29 = smov 112   ;;  %vm1853_vm3 = vcmask 64512  }
 0x394   : > { %3894 = vmatprep.subr.bf16.mxu0 %v5584_v0  ;;  %3902 = vmatprep.subr.bf16.mxu1 %v5584_v0  ;;  %v4454_v9 = vld [vmem:[#allocation14] sm:$0xff]   ;;  %v4455_v10 = vld [vmem:[#allocation14 + $0x8] sm:$0xff]   ;;  %v3772_v31 = vld [vmem:[#allocation15] ss:$0 sm:$0xff]  ;;  %vm2112_vm4 = vcmask 1043456   ;;  %s5589_s4 = smov 8  }
 0x395   : > { %v6379_v11 = vld [vmem:[%s6276_s1] sm:$0xff]  ;;  %v3762_v22 = vld [vmem:[#allocation33] ss:$0 sm:$0xff]  ;;  %v3756_v33 = vld [vmem:[#allocation21] ss:$0 sm:$0xff]  ;;  %s5590_s25 = smov 16  }
 0x396   : > { %v1767_v12 = vpack.c.bf16 %v6379_v11, %v6379_v11  ;;  %v3766_v45 = vld [vmem:[#allocation36] ss:$0 sm:$0xff]  ;;  %s5591_s14 = smov 24   ;;  %vm2319_vm6 = vcmask 130048   ;;  %vm2321_vm7 = vcmask 195584   ;;  %vm3168_vm8 = vcmask 523264  }
 0x397   : > { %3895 = vmatpush3.bf16.msra.mxu0 %v4451_v2  ;;  %3903 = vmatpush3.bf16.msra.mxu1 %v4457_v7  ;;  %s6836_s1 = sld [smem:[#allocation102_spill]]  ;;  %s6837_s10 = sld [smem:[#allocation101_spill]] }
 0x398   : > { %3908 = vmatprep.subr.bf16.mxu0 %v5584_v0  ;;  %3916 = vmatprep.subr.bf16.mxu1 %v5584_v0  ;;  %s1418_s27 = scalar_lea.vmem [#allocation53], %s3721_s9  ;;  %s3244_s21 = scalar_lea.sflag [#allocation8], %s6270_s19 }
 0x399   : > { %s3258_s5 = sshll.u32 %s1418_s27, 4  ;;  %p6838_p13 = scmp.ne.s32.totalorder %s6774_s17, 0  ;;  %s6617_s5 = int_to_ptr.vmem [resolvable:$true] %s3258_s5 }
 0x39a   : > { %3897 = vmatmul.mubr.msk.bf16.vlgmr.msra.gmra.mrb[0].mxu0 %vm1448_vm1, %v1424_v3  ;;  %3905 = vmatmul.mubr.msk.bf16.vlgmr.msra.gmra.mrb[0].mxu1 %vm1448_vm1, %v1424_v3  ;;  %v1843_v3 = vld [vmem:[%s6293_s12] sm:$0x3]  ;;  %s5374_s3 = scalar_lea.vmem %s6617_s5, 128  ;;  %s5592_s12 = smov [#allocation53]  }
 0x39b   : > { %3909 = vmatpush3.bf16.msra.mxu0 %v4452_v4  ;;  %3912 = vmatprep.mubr.msk.bf16.mxu0 %vm5585_vm0, %v5584_v0  ;;  %v1844_v4 = vunpack.c.0.s8 %v1843_v3  ;;  %p5375_p4 = scmp.ne.s32.totalorder %s6617_s5, %s5374_s3  ;;  %s5378_s9 = sshll.u32 %s5592_s12, 4  ;;  %s5379_s9 = int_to_ptr.vmem [resolvable:$false] %s5378_s9 }
 0x39c   : > { %3910 = vmatprep.subr.bf16.mxu0 %v5584_v0  ;;  %3920 = vmatprep.mubr.msk.bf16.mxu1 %vm5585_vm0, %v5584_v0  ;;  %p5381_p2 = scmp.lt.s32.totalorder %s6617_s5, %s5379_s9 }
 0x39d   : > { %3917 = vmatpush3.bf16.msra.mxu1 %v4458_v13  ;;  %vm6440_vm5 = vcmp.ne.s32.totalorder %v1844_v4, 0  ;;  %s3821_s7 = sshll.u32 %s6836_s1, 7  ;;  %p5376_p8 = pnand %p5375_p4, %p6838_p13 }
 0x39e   : > { %3918 = vmatprep.subr.bf16.mxu1 %v5584_v0  ;;  %s6615_s6 = scalar_lea.hbm %s6837_s10, %s3821_s7 }
 0x39f   : > { %3911 = vmatpush3.bf16.msra.mxu0 %v4453_v6  ;;  %p5377_p6 = pneg %p5376_p8 }
 0x3a0   : > { %3924 = vmatprep.subr.bf16.mxu0 %v5584_v0 }
 0x3a1   : > { %3919 = vmatpush3.bf16.msra.mxu1 %v4459_v14 }
 0x3a2   : > { %3913 = vmatmul.mubr.msk.bf16.vlgmr.msra.gmra.mrb[4].mxu0 %vm1448_vm1, %v1596_v8  ;;  %3932 = vmatprep.subr.bf16.mxu1 %v5584_v0 }
 0x3a3   : > { %3925 = vmatpush3.bf16.msra.mxu0 %v4454_v9  ;;  %3928 = vmatprep.mubr.msk.bf16.mxu0 %vm5585_vm0, %v5584_v0 }
 0x3a4   : > { %3926 = vmatprep.subr.bf16.mxu0 %v5584_v0  ;;  %3921 = vmatmul.mubr.msk.bf16.vlgmr.msra.gmra.mrb[4].mxu1 %vm1448_vm1, %v1596_v8 }
 0x3a5   : > { %3934 = vmatprep.mubr.msk.bf16.mxu1 %vm5585_vm0, %v5584_v0 }
 0x3a7   : > { %3927 = vmatpush3.bf16.msra.mxu0 %v4455_v10 }
 0x3a8   : > { %3938 = vmatprep.subr.bf16.mxu0 %v5584_v0 }
 0x3aa   : > { %3929 = vmatmul.mubr.msk.bf16.vlgmr.msra.gmra.mrb[8].mxu0 %vm1448_vm1, %v1767_v12 }
 0x3ab   : > { %3940 = vmatprep.mubr.msk.bf16.mxu0 %vm5585_vm0, %v5584_v0 }
 0x46d   : > { %v1486_v16 = vpop.f32.mrb[0].mxu0  ;;  %v1550_v34 = vpop.f32.mrb[0].mxu1 }
 0x46e   : > { %v1487_v17 = vadd.f32 %v3752_v15, %v1486_v16  ;;  %v3898_v18 = vpop.f32.mrb[1].mxu0  ;;  %v1551_v37 = vadd.f32 %v3756_v33, %v1550_v34  ;;  %v3906_v38 = vpop.f32.mrb[1].mxu1 }
 0x46f   : > { %v1489_v19 = vpop.f32.mrb[2].mxu0  ;;  %v1553_v40 = vpop.f32.mrb[2].mxu1 }
 0x470   : > { %v1492_v20 = vpack.c.bf16 %v1487_v17, %v1487_v17  ;;  %v3899_v21 = vpop.f32.mrb[3].mxu0  ;;  %v6403_v43 = vpack.c.bf16 %v1551_v37, %v1551_v37  ;;  %v3907_v44 = vpop.f32.mrb[3].mxu1 }
 0x472   : > { %1558 = vst.msk [vmem:[#allocation2] sm:$0xf] %vm1557_vm2, %v1492_v20  ;;  %1586 = vrot.lane.b32.xlu1 %v1492_v20, %s5586_s26  ;;  %1563 = vrot.lane.b32.xlu0 %v1492_v20, %s5587_s18  ;;  %1559 = vst.msk [vmem:[#allocation3] sm:$0xf] %vm1557_vm2, %v6403_v43 }
 0x475   : > { %v1657_v23 = vpop.f32.mrb[4].mxu0 }
 0x476   : > { %v1658_v24 = vadd.f32 %v3762_v22, %v1657_v23  ;;  %1576 = vrot.lane.b32.xlu0 %v1492_v20, %s5588_s29  ;;  %v3914_v25 = vpop.f32.mrb[5].mxu0 }
 0x477   : > { %v1660_v26 = vpop.f32.mrb[6].mxu0  ;;  %v1721_v46 = vpop.f32.mrb[4].mxu1 }
 0x478   : > { %v6397_v27 = vpack.c.bf16 %v1658_v24, %v1658_v24  ;;  %v3915_v28 = vpop.f32.mrb[7].mxu0  ;;  %v1722_v47 = vadd.f32 %v3766_v45, %v1721_v46  ;;  %v3922_v48 = vpop.f32.mrb[5].mxu1 }
 0x479   : > { %v1845_v29 = vld [vmem:[#allocation2] sm:$0xf]  ;;  %v1724_v49 = vpop.f32.mrb[6].mxu1  ;;  %v1849_v61 = vld [vmem:[#allocation3] sm:$0xf] }
 0x47a   : > { %1728 = vst.msk [vmem:[#allocation4] sm:$0xf] %vm1557_vm2, %v6397_v27  ;;  %v1858_v30 = vsel %vm1853_vm3, %v1845_v29, 0  ;;  %v6415_v50 = vpack.c.bf16 %v1722_v47, %v1722_v47  ;;  %v3923_v51 = vpop.f32.mrb[7].mxu1  ;;  %v2114_v63 = vsel %vm2112_vm4, %v1849_v61, 0 }
 0x47b   : > { %3933 = vmatpush3.bf16.xpose.msra.mxu1 %v1858_v30 }
 0x47c   : > { %3944 = vmatprep.subr.bf16.mxu1 %v5584_v0  ;;  %1729 = vst.msk [vmem:[#allocation5] sm:$0xf] %vm1557_vm2, %v6415_v50 }
 0x47d   : > { %v1829_v32 = vpop.f32.mrb[8].mxu0 }
 0x47e   : > { %v1830_v35 = vadd.f32 %v3772_v31, %v1829_v32  ;;  %v3930_v36 = vpop.f32.mrb[9].mxu0 }
 0x47f   : > { %v1832_v39 = vpop.f32.mrb[10].mxu0 }
 0x480   : > { %v1835_v41 = vpack.c.bf16 %v1830_v35, %v1830_v35  ;;  %v3931_v42 = vpop.f32.mrb[11].mxu0 }
 0x482   : > { %1839 = vrot.lane.b32.xlu0 %v1835_v41, %s5588_s29  ;;  %1837 = vrot.lane.b32.xlu1 %v1835_v41, %s5587_s18 }
 0x483   : > { %3935 = vmatmul.mubr.msk.bf16.vlgmr.msra.gmra.mrb[8].mxu1 %vm1853_vm3, %v1835_v41 }
 0x484   : > { %3946 = vmatprep.mubr.msk.bf16.mxu1 %vm5585_vm0, %v5584_v0 }
 0x486   : > { %1841 = vrot.lane.b32.xlu1 %v1835_v41, %s5586_s26 }
 0x48a   : > { %1571 = vrot.lane.b32.xlu1 %v6403_v43, %s5587_s18 }
 0x4e4   : > { %v1587_v52 = vpop.permute.xlu1 %1586  ;;  %v1564_v53 = vpop.permute.xlu0 %1563 }
 0x4e5   : > { %1590 = vst.msk [vmem:[#allocation2 + $0xc] sm:$0xf] %vm1557_vm2, %v1587_v52  ;;  %1567 = vst.msk [vmem:[#allocation2 + $0x4] sm:$0xf] %vm1557_vm2, %v1564_v53 }
 0x4e8   : > { %v1577_v54 = vpop.permute.xlu0 %1576 }
 0x4e9   : > { %1580 = vst.msk [vmem:[#allocation2 + $0x8] sm:$0xf] %vm1557_vm2, %v1577_v54 }
 0x4ec   : > { %v1846_v55 = vld [vmem:[#allocation2 + $0x4] sm:$0xf]  ;;  %v1848_v59 = vld [vmem:[#allocation2 + $0xc] sm:$0xf] }
 0x4ed   : > { %v1904_v56 = vsel %vm1853_vm3, %v1846_v55, 0  ;;  %v1996_v62 = vsel %vm1853_vm3, %v1848_v59, 0 }
 0x4ee   : > { %3939 = vmatpush3.bf16.xpose.msra.mxu0 %v1904_v56 }
 0x4ef   : > { %3950 = vmatprep.subr.bf16.mxu0 %v5584_v0 }
 0x4f0   : > { %v1847_v57 = vld [vmem:[#allocation2 + $0x8] sm:$0xf] }
 0x4f1   : > { %v1950_v58 = vsel %vm1853_vm3, %v1847_v57, 0 }
 0x4f2   : > { %3945 = vmatpush3.bf16.xpose.msra.mxu1 %v1950_v58 }
 0x4f3   : > { %3956 = vmatprep.subr.bf16.mxu1 %v5584_v0 }
 0x4f4   : > { %v1838_v60 = vpop.permute.xlu1 %1837  ;;  %v1840_v1 = vpop.permute.xlu0 %1839 }
 0x4f5   : > { %3941 = vmatmul.mubr.msk.bf16.vlgmr.msra.gmra.mrb[12].mxu0 %vm1853_vm3, %v1838_v60 }
 0x4f6   : > { %3951 = vmatpush3.bf16.xpose.msra.mxu0 %v1996_v62  ;;  %3952 = vmatprep.mubr.msk.bf16.mxu0 %vm5585_vm0, %v5584_v0 }
 0x4f7   : > { %3962 = vmatprep.subr.bf16.mxu0 %v5584_v0 }
 0x4f8   : > { %v1842_v2 = vpop.permute.xlu1 %1841 }
 0x4f9   : > { %3947 = vmatmul.mubr.msk.bf16.vlgmr.msra.gmra.mrb[12].mxu1 %vm1853_vm3, %v1840_v1 }
 0x4fa   : > { %3957 = vmatpush3.bf16.msra.mxu1 %v2114_v63  ;;  %3958 = vmatprep.mubr.msk.bf16.mxu1 %vm5585_vm0, %v5584_v0 }
 0x4fb   : > { %3968 = vmatprep.subr.bf16.mxu1 %v5584_v0 }
 0x4fc   : > { %v1572_v13 = vpop.permute.xlu1 %1571 }
 0x4fd   : > { %3953 = vmatmul.mubr.msk.bf16.vlgmr.msra.gmra.mrb[16].mxu0 %vm1853_vm3, %v1842_v2  ;;  %1575 = vst.msk [vmem:[#allocation3 + $0x4] sm:$0xf] %vm1557_vm2, %v1572_v13 }
 0x4fe   : > { %3964 = vmatprep.mubr.msk.bf16.mxu0 %vm5585_vm0, %v5584_v0 }
 0x504   : > { %v1850_v14 = vld [vmem:[#allocation3 + $0x4] sm:$0xf] }
 0x505   : > { %v2160_v15 = vsel %vm2112_vm4, %v1850_v14, 0 }
 0x506   : > { %3963 = vmatpush3.bf16.msra.mxu0 %v2160_v15 }
 0x507   : > { %3974 = vmatprep.subr.bf16.mxu0 %v5584_v0 }
 0x556   : > { %v1894_v6 = vpop.f32.mrb[8].mxu1 }
 0x557   : > { %v2041_v7 = vsel %vm6440_vm5, -10000.0, %v1894_v6  ;;  %v3936_v8 = vpop.f32.mrb[9].mxu1 }
 0x558   : > { %v1897_v9 = vpop.f32.mrb[10].mxu1  ;;  %v2045_v10 = vsel %vm1853_vm3, %v2041_v7, -inf }
 0x559   : > { %2046 = vmax.xlane.f32.xlu0 %v2045_v10  ;;  %v3937_v12 = vpop.f32.mrb[11].mxu1 }
 0x55a   : > { %v4460_v12 = vld [vmem:[#allocation23] sm:$0xff]  }
 0x5c8   : > { %v1940_v16 = vpop.f32.mrb[12].mxu0 }
 0x5c9   : > { %v2042_v17 = vsel %vm6440_vm5, -10000.0, %v1940_v16  ;;  %v3942_v18 = vpop.f32.mrb[13].mxu0 }
 0x5ca   : > { %v1943_v19 = vpop.f32.mrb[14].mxu0  ;;  %v2048_v20 = vsel %vm1853_vm3, %v2042_v17, -inf }
 0x5cb   : > { %2049 = vmax.xlane.f32.xlu1 %v2048_v20  ;;  %v3943_v21 = vpop.f32.mrb[15].mxu0 }
 0x5cc   : > { %v1986_v22 = vpop.f32.mrb[12].mxu1 }
 0x5cd   : > { %v2043_v23 = vsel %vm6440_vm5, -10000.0, %v1986_v22  ;;  %v3948_v24 = vpop.f32.mrb[13].mxu1 }
 0x5ce   : > { %v1989_v25 = vpop.f32.mrb[14].mxu1  ;;  %v2051_v26 = vsel %vm1853_vm3, %v2043_v23, -inf }
 0x5cf   : > { %2052 = vmax.xlane.f32.xlu0 %v2051_v26  ;;  %v3949_v28 = vpop.f32.mrb[15].mxu1 }
 0x5d0   : > { %v2032_v29 = vpop.f32.mrb[16].mxu0 }
 0x5d1   : > { %v2044_v30 = vsel %vm6440_vm5, -10000.0, %v2032_v29  ;;  %v3954_v31 = vpop.f32.mrb[17].mxu0 }
 0x5d2   : > { %v2035_v32 = vpop.f32.mrb[18].mxu0  ;;  %v2054_v33 = vsel %vm1853_vm3, %v2044_v30, -inf }
 0x5d3   : > { %2055 = vmax.xlane.f32.xlu0 %v2054_v33  ;;  %v3955_v34 = vpop.f32.mrb[19].mxu0 }
 0x5dc   : > { %1591 = vrot.lane.b32.xlu1 %v6403_v43, %s5586_s26 }
 0x5e6   : > { %v2047_v35 = vpop.xlane.xlu0 %2046 }
 0x5e7   : > { %v2057_v36 = vmax.f32 %v2047_v35, -1e+30 }
 0x5e9   : > { %v2073_v37 = vsub.f32 %v2041_v7, %v2057_v36  ;;  %1581 = vrot.lane.b32.xlu0 %v6403_v43, %s5588_s29  ;;  %v2061_v7 = vsub.f32 -1e+30, %v2057_v36 }
 0x5eb   : > { %v2077_v38 = vmul.f32 1.442695, %v2073_v37  ;;  %v2065_v8 = vmul.f32 1.442695, %v2061_v7  ;;  %v2496_v7 = vld [vmem:[#allocation4] sm:$0xf] }
 0x5ed   : > { %4472 = vpow2.f32 %v2077_v38  ;;  %v4461_v38 = vld [vmem:[#allocation23 + $0x8] sm:$0xff]  }
 0x5f7   : > { %v4473_v39 = vpop.eup %4472 }
 0x5f8   : > { %v2105_v40 = vpack.c.bf16 %v4473_v39, %v4473_v39  ;;  %v2089_v1 = vsel %vm1853_vm3, %v4473_v39, 0.0 }
 0x5fa   : > { %3959 = vmatmul.mubr.msk.bf16.vlgmr.msra.gmra.mrb[16].mxu1 %vm1853_vm3, %v2105_v40 }
 0x5fb   : > { %3970 = vmatprep.mubr.msk.bf16.mxu1 %vm5585_vm0, %v5584_v0 }
 0x658   : > { %v6466_v41 = vpop.xlane.xlu1 %2049 }
 0x659   : > { %v2058_v42 = vmax.f32 %v6466_v41, -1e+30 }
 0x65b   : > { %v2074_v44 = vsub.f32 %v2042_v17, %v2058_v42 }
 0x65c   : > { %v6471_v45 = vpop.xlane.xlu0 %2052  ;;  %v1592_v46 = vpop.permute.xlu1 %1591 }
 0x65d   : > { %v2079_v43 = vmul.f32 1.442695, %v2074_v44  ;;  %v2059_v47 = vmax.f32 %v6471_v45, -1e+30  ;;  %1595 = vst.msk [vmem:[#allocation3 + $0xc] sm:$0xf] %vm1557_vm2, %v1592_v46 }
 0x65f   : > { %v2075_v48 = vsub.f32 %v2043_v23, %v2059_v47  ;;  %4474 = vpow2.f32 %v2079_v43  ;;  %v2062_v23 = vsub.f32 -1e+30, %v2058_v42  ;;  %v2063_v25 = vsub.f32 -1e+30, %v2059_v47 }
 0x660   : > { %v2056_v49 = vpop.xlane.xlu0 %2055 }
 0x661   : > { %v2081_v51 = vmul.f32 1.442695, %v2075_v48  ;;  %v2060_v52 = vmax.f32 %v2056_v49, -1e+30  ;;  %v2067_v24 = vmul.f32 1.442695, %v2062_v23 }
 0x662   : > { %v2069_v26 = vmul.f32 1.442695, %v2063_v25  ;;  %v4462_v25 = vld [vmem:[#allocation29] sm:$0xff]  }
 0x663   : > { %v2076_v53 = vsub.f32 %v2044_v30, %v2060_v52  ;;  %4476 = vpow2.f32 %v2081_v51  ;;  %v2064_v28 = vsub.f32 -1e+30, %v2060_v52 }
 0x664   : > { %v1582_v54 = vpop.permute.xlu0 %1581  ;;  %v1852_v57 = vld [vmem:[#allocation3 + $0xc] sm:$0xf] }
 0x665   : > { %v2083_v55 = vmul.f32 1.442695, %v2076_v53  ;;  %1585 = vst.msk [vmem:[#allocation3 + $0x8] sm:$0xf] %vm1557_vm2, %v1582_v54  ;;  %v2252_v61 = vsel %vm2112_vm4, %v1852_v57, 0 }
 0x666   : > { %v2071_v29 = vmul.f32 1.442695, %v2064_v28 }
 0x667   : > { %4478 = vpow2.f32 %v2083_v55 }
 0x668   : > { %4480 = vpow2.f32 %v2065_v8 }
 0x669   : > { %v4475_v56 = vpop.eup %4474 }
 0x66a   : > { %v2092_v58 = vsel %vm1853_vm3, %v4475_v56, 0.0  ;;  %v2106_v59 = vpack.c.bf16 %v4475_v56, %v4475_v56 }
 0x66b   : > { %2093 = vadd.xlane.f32.xlu1 %v2092_v58 }
 0x66c   : > { %v1851_v60 = vld [vmem:[#allocation3 + $0x8] sm:$0xf]  ;;  %3965 = vmatmul.mubr.msk.bf16.vlgmr.msra.gmra.mrb[20].mxu0 %vm1853_vm3, %v2106_v59 }
 0x66d   : > { %v2206_v62 = vsel %vm2112_vm4, %v1851_v60, 0  ;;  %v4477_v63 = vpop.eup %4476  ;;  %3975 = vmatpush3.bf16.msra.mxu0 %v2252_v61  ;;  %3976 = vmatprep.mubr.msk.bf16.mxu0 %vm5585_vm0, %v5584_v0 }
 0x66e   : > { %3969 = vmatpush3.bf16.msra.mxu1 %v2206_v62  ;;  %v2095_v2 = vsel %vm1853_vm3, %v4477_v63, 0.0  ;;  %v2107_v3 = vpack.c.bf16 %v4477_v63, %v4477_v63  ;;  %3988 = vmatprep.subr.bf16.mxu0 %v5584_v0 }
 0x66f   : > { %3980 = vmatprep.subr.bf16.mxu1 %v5584_v0  ;;  %2090 = vadd.xlane.f32.xlu1 %v2089_v1 }
 0x670   : > { %2096 = vadd.xlane.f32.xlu0 %v2095_v2 }
 0x671   : > { %3971 = vmatmul.mubr.msk.bf16.vlgmr.msra.gmra.mrb[20].mxu1 %vm1853_vm3, %v2107_v3  ;;  %v4479_v4 = vpop.eup %4478 }
 0x672   : > { %3984 = vmatprep.mubr.msk.bf16.mxu1 %vm5585_vm0, %v5584_v0  ;;  %v2098_v5 = vsel %vm1853_vm3, %v4479_v4, 0.0  ;;  %v2108_v6 = vpack.c.bf16 %v4479_v4, %v4479_v4  ;;  %v4481_v9 = vpop.eup %4480  ;;  %3981 = vmatpush3.bf16.msra.mxu1 %v4460_v12 }
 0x673   : > { %v2085_v10 = vmul.f32 0.0, %v4481_v9  ;;  %3982 = vmatprep.subr.bf16.mxu1 %v5584_v0  ;;  %v2508_v9 = vsel %vm1853_vm3, %v2496_v7, 0 }
 0x674   : > { %2099 = vadd.xlane.f32.xlu0 %v2098_v5  ;;  %3977 = vmatmul.mubr.msk.bf16.vlgmr.msra.gmra.mrb[24].mxu0 %vm1853_vm3, %v2108_v6 }
 0x675   : > { %3992 = vmatprep.mubr.msk.bf16.mxu0 %vm5585_vm0, %v5584_v0  ;;  %3989 = vmatpush3.bf16.msra.mxu0 %v4462_v25 }
 0x676   : > { %3983 = vmatpush3.bf16.msra.mxu1 %v4461_v38  ;;  %3990 = vmatprep.subr.bf16.mxu0 %v5584_v0 }
 0x677   : > { %3996 = vmatprep.subr.bf16.mxu1 %v5584_v0 }
 0x6cd   : > { %v2150_v13 = vpop.f32.mrb[16].mxu1 }
 0x6ce   : > { %v2294_v14 = vadd.f32 %v2150_v13, %v2085_v10  ;;  %v3960_v15 = vpop.f32.mrb[17].mxu1 }
 0x6cf   : > { %v2153_v16 = vpop.f32.mrb[18].mxu1 }
 0x6d0   : > { %v3961_v17 = vpop.f32.mrb[19].mxu1 }
 0x6f8   : > { %v2094_v18 = vpop.xlane.xlu1 %2093 }
 0x6fc   : > { %v2091_v19 = vpop.xlane.xlu1 %2090 }
 0x6fd   : > { %v2101_v20 = vadd.f32 %v2091_v19, %v2085_v10  ;;  %v2097_v33 = vpop.xlane.xlu0 %2096  ;;  %v3784_v10 = vld [vmem:[#allocation24] ss:$0 sm:$0xff] }
 0x6ff   : > { %4482 = vrcp.f32 %v2101_v20 }
 0x700   : > { %4484 = vpow2.f32 %v2067_v24 }
 0x701   : > { %4486 = vpow2.f32 %v2069_v26  ;;  %v2100_v39 = vpop.xlane.xlu0 %2099  ;;  %v4463_v26 = vld [vmem:[#allocation29 + $0x8] sm:$0xff]  }
 0x702   : > { %4488 = vpow2.f32 %v2071_v29  ;;  %3991 = vmatpush3.bf16.msra.mxu0 %v4463_v26 }
 0x703   : > { %4002 = vmatprep.subr.bf16.mxu0 %v5584_v0 }
 0x709   : > { %v4483_v21 = vpop.eup %4482 }
 0x70a   : > { %v2302_v22 = vmul.f32 %v4483_v21, %v2294_v14  ;;  %v4485_v30 = vpop.eup %4484 }
 0x70b   : > { %v2086_v31 = vmul.f32 0.0, %v4485_v30  ;;  %v4487_v32 = vpop.eup %4486 }
 0x70c   : > { %v2087_v35 = vmul.f32 0.0, %v4487_v32  ;;  %v4489_v36 = vpop.eup %4488 }
 0x70d   : > { %v2102_v34 = vadd.f32 %v2094_v18, %v2086_v31  ;;  %v2088_v40 = vmul.f32 0.0, %v4489_v36 }
 0x70e   : > { %v2103_v37 = vadd.f32 %v2097_v33, %v2087_v35  ;;  %v3788_v33 = vld [vmem:[#allocation26] ss:$0 sm:$0xff] }
 0x70f   : > { %4490 = vrcp.f32 %v2102_v34  ;;  %v2104_v41 = vadd.f32 %v2100_v39, %v2088_v40 }
 0x710   : > { %4492 = vrcp.f32 %v2103_v37 }
 0x711   : > { %4494 = vrcp.f32 %v2104_v41 }
 0x719   : > { %v4491_v46 = vpop.eup %4490 }
 0x71a   : > { %v4493_v53 = vpop.eup %4492 }
 0x71b   : > { %v4495_v60 = vpop.eup %4494 }
 0x73f   : > { %v2196_v42 = vpop.f32.mrb[20].mxu0 }
 0x740   : > { %v2295_v44 = vadd.f32 %v2196_v42, %v2086_v31  ;;  %v3966_v45 = vpop.f32.mrb[21].mxu0 }
 0x741   : > { %v2199_v43 = vpop.f32.mrb[22].mxu0 }
 0x742   : > { %v2303_v47 = vmul.f32 %v4491_v46, %v2295_v44  ;;  %v3967_v48 = vpop.f32.mrb[23].mxu0 }
 0x744   : > { %v2242_v49 = vpop.f32.mrb[20].mxu1  ;;  %2307 = vrot.lane.b32.xlu0 %v2303_v47, %s5589_s4 }
 0x745   : > { %v2296_v51 = vadd.f32 %v2242_v49, %v2087_v35  ;;  %v3972_v52 = vpop.f32.mrb[21].mxu1  ;;  %v3789_v35 = vld [vmem:[#allocation27] ss:$0 sm:$0xff] }
 0x746   : > { %v2245_v54 = vpop.f32.mrb[22].mxu1 }
 0x747   : > { %v2304_v55 = vmul.f32 %v4493_v53, %v2296_v51  ;;  %v3973_v56 = vpop.f32.mrb[23].mxu1  ;;  %v2288_v57 = vpop.f32.mrb[24].mxu0  ;;  %v2500_v51 = vld [vmem:[#allocation5] sm:$0xf] }
 0x748   : > { %v2297_v58 = vadd.f32 %v2288_v57, %v2088_v40  ;;  %v3978_v59 = vpop.f32.mrb[25].mxu0  ;;  %v3790_v40 = vld [vmem:[#allocation30] ss:$0 sm:$0xff] }
 0x749   : > { %2311 = vrot.lane.b32.xlu1 %v2304_v55, %s5590_s25  ;;  %v2291_v61 = vpop.f32.mrb[26].mxu0  ;;  %v2756_v55 = vsel %vm2112_vm4, %v2500_v51, 0 }
 0x74a   : > { %v2305_v62 = vmul.f32 %v4495_v60, %v2297_v58  ;;  %v3979_v63 = vpop.f32.mrb[27].mxu0 }
 0x74d   : > { %2315 = vrot.lane.b32.xlu1 %v2305_v62, %s5591_s14 }
 0x7b6   : > { %v2308_v1 = vpop.permute.xlu0 %2307 }
 0x7b7   : > { %v2318_v3 = vsel %vm1853_vm3, %v2302_v22, %v2308_v1 }
 0x7bb   : > { %v2312_v2 = vpop.permute.xlu1 %2311 }
 0x7bc   : > { %v2320_v4 = vsel %vm2319_vm6, %v2318_v3, %v2312_v2 }
 0x7bf   : > { %v2316_v5 = vpop.permute.xlu1 %2315 }
 0x7c0   : > { %v2322_v6 = vsel %vm2321_vm7, %v2320_v4, %v2316_v5 }
 0x7c1   : > { %v2323_v8 = vpack.c.bf16 %v2322_v6, %v2322_v6 }
 0x7c3   : > { %3985 = vmatmul.mubr.msk.bf16.vlgmr.msra.gmra.mrb[24].mxu1 %vm1448_vm1, %v2323_v8 }
 0x7c4   : > { %3997 = vmatpush3.bf16.xpose.msra.mxu1 %v2508_v9  ;;  %3998 = vmatprep.mubr.msk.bf16.mxu1 %vm5585_vm0, %v5584_v0 }
 0x7c5   : > { %4008 = vmatprep.subr.bf16.mxu1 %v5584_v0 }
 0x896   : > { %v2384_v12 = vpop.f32.mrb[24].mxu1 }
 0x897   : > { %v2385_v13 = vadd.f32 %v3784_v10, %v2384_v12  ;;  %v3986_v14 = vpop.f32.mrb[25].mxu1 }
 0x898   : > { %v2387_v15 = vpop.f32.mrb[26].mxu1 }
 0x899   : > { %v3987_v16 = vpop.f32.mrb[27].mxu1  ;;  %v2390_v17 = vadd.f32 %v2385_v13, %v6379_v11 }
 0x89b   : > { %v2391_v18 = vsel %vm1448_vm1, %v2390_v17, 0.0 }
 0x89c   : > { %2392 = vadd.xlane.f32.xlu0 %v2391_v18 }
 0x8b2   : > { %1733 = vrot.lane.b32.xlu0 %v6397_v27, %s5587_s18 }
 0x8b6   : > { %1756 = vrot.lane.b32.xlu0 %v6397_v27, %s5586_s26 }
 0x929   : > { %v2393_v19 = vpop.xlane.xlu0 %2392 }
 0x92a   : > { %v2395_v20 = vmul.f32 0.03125, %v2393_v19 }
 0x92c   : > { %v2396_v21 = vsub.f32 %v2390_v17, %v2395_v20 }
 0x92d   : > { %v1734_v22 = vpop.permute.xlu0 %1733 }
 0x92e   : > { %1737 = vst.msk [vmem:[#allocation4 + $0x4] sm:$0xf] %vm1557_vm2, %v1734_v22  ;;  %v2397_v23 = vmul.f32 %v2396_v21, %v2396_v21 }
 0x930   : > { %v2398_v24 = vsel %vm1448_vm1, %v2397_v23, 0.0 }
 0x931   : > { %2399 = vadd.xlane.f32.xlu1 %v2398_v24  ;;  %v1757_v11 = vpop.permute.xlu0 %1756 }
 0x932   : > { %1760 = vst.msk [vmem:[#allocation4 + $0xc] sm:$0xf] %vm1557_vm2, %v1757_v11 }
 0x935   : > { %v2497_v37 = vld [vmem:[#allocation4 + $0x4] sm:$0xf] }
 0x936   : > { %v2554_v39 = vsel %vm1853_vm3, %v2497_v37, 0 }
 0x939   : > { %v2499_v49 = vld [vmem:[#allocation4 + $0xc] sm:$0xf] }
 0x93a   : > { %v2646_v54 = vsel %vm1853_vm3, %v2499_v49, 0 }
 0x942   : > { %1746 = vrot.lane.b32.xlu1 %v6397_v27, %s5588_s29 }
 0x9be   : > { %v2400_v28 = vpop.xlane.xlu1 %2399 }
 0x9bf   : > { %v2401_v29 = vmul.f32 0.03125, %v2400_v28 }
 0x9c1   : > { %v2402_v30 = vadd.f32 1e-05, %v2401_v29 }
 0x9c2   : > { %v1747_v31 = vpop.permute.xlu1 %1746 }
 0x9c3   : > { %4496 = vrsqrt.f32 %v2402_v30  ;;  %1750 = vst.msk [vmem:[#allocation4 + $0x8] sm:$0xf] %vm1557_vm2, %v1747_v31 }
 0x9ca   : > { %v2498_v47 = vld [vmem:[#allocation4 + $0x8] sm:$0xf] }
 0x9cb   : > { %v2600_v48 = vsel %vm1853_vm3, %v2498_v47, 0 }
 0x9cd   : > { %v4497_v32 = vpop.eup %4496 }
 0x9ce   : > { %v2404_v34 = vmul.f32 %v4497_v32, %v2396_v21 }
 0x9d0   : > { %v2412_v27 = vmul.f32 %v3788_v33, %v2404_v34 }
 0x9d2   : > { %v6522_v36 = vadd.f32 %v3789_v35, %v2412_v27 }
 0x9d4   : > { %v2421_v38 = vpack.c.bf16 %v6522_v36, %v6522_v36 }
 0x9d6   : > { %3993 = vmatmul.mubr.msk.bf16.vlgmr.msra.gmra.mrb[28].mxu0 %vm1448_vm1, %v2421_v38 }
 0x9d7   : > { %4003 = vmatpush3.bf16.xpose.msra.mxu0 %v2554_v39  ;;  %4004 = vmatprep.mubr.msk.bf16.mxu0 %vm5585_vm0, %v5584_v0 }
 0x9d8   : > { %4014 = vmatprep.subr.bf16.mxu0 %v5584_v0 }
 0xaa9   : > { %v2482_v41 = vpop.f32.mrb[28].mxu0 }
 0xaaa   : > { %v2483_v42 = vadd.f32 %v3790_v40, %v2482_v41  ;;  %v3994_v44 = vpop.f32.mrb[29].mxu0 }
 0xaab   : > { %v2485_v45 = vpop.f32.mrb[30].mxu0 }
 0xaac   : > { %v2488_v46 = vpack.c.bf16 %v2483_v42, %v2483_v42  ;;  %v3995_v43 = vpop.f32.mrb[31].mxu0 }
 0xaae   : > { %2492 = vrot.lane.b32.xlu0 %v2488_v46, %s5588_s29  ;;  %2490 = vrot.lane.b32.xlu1 %v2488_v46, %s5587_s18 }
 0xaaf   : > { %3999 = vmatmul.mubr.msk.bf16.vlgmr.msra.gmra.mrb[28].mxu1 %vm1853_vm3, %v2488_v46 }
 0xab0   : > { %4009 = vmatpush3.bf16.xpose.msra.mxu1 %v2600_v48  ;;  %4010 = vmatprep.mubr.msk.bf16.mxu1 %vm5585_vm0, %v5584_v0 }
 0xab1   : > { %4020 = vmatprep.subr.bf16.mxu1 %v5584_v0 }
 0xab2   : > { %2494 = vrot.lane.b32.xlu1 %v2488_v46, %s5586_s26 }
 0xab6   : > { %1741 = vrot.lane.b32.xlu1 %v6415_v50, %s5587_s18 }
 0xb20   : > { %v2493_v52 = vpop.permute.xlu0 %2492  ;;  %v2491_v53 = vpop.permute.xlu1 %2490 }
 0xb21   : > { %4005 = vmatmul.mubr.msk.bf16.vlgmr.msra.gmra.mrb[32].mxu0 %vm1853_vm3, %v2491_v53  ;;  %4011 = vmatmul.mubr.msk.bf16.vlgmr.msra.gmra.mrb[32].mxu1 %vm1853_vm3, %v2493_v52 }
 0xb22   : > { %4015 = vmatpush3.bf16.xpose.msra.mxu0 %v2646_v54  ;;  %4021 = vmatpush3.bf16.msra.mxu1 %v2756_v55 }
 0xb23   : > { %4016 = vmatprep.mubr.msk.bf16.mxu0 %vm5585_vm0, %v5584_v0  ;;  %4026 = vmatprep.subr.bf16.mxu0 %v5584_v0 }
 0xb24   : > { %v2495_v56 = vpop.permute.xlu1 %2494  ;;  %4022 = vmatprep.mubr.msk.bf16.mxu1 %vm5585_vm0, %v5584_v0  ;;  %4032 = vmatprep.subr.bf16.mxu1 %v5584_v0 }
 0xb28   : > { %v1742_v57 = vpop.permute.xlu1 %1741 }
 0xb29   : > { %1745 = vst.msk [vmem:[#allocation5 + $0x4] sm:$0xf] %vm1557_vm2, %v1742_v57  ;;  %4017 = vmatmul.mubr.msk.bf16.vlgmr.msra.gmra.mrb[36].mxu0 %vm1853_vm3, %v2495_v56 }
 0xb2a   : > { %4028 = vmatprep.mubr.msk.bf16.mxu0 %vm5585_vm0, %v5584_v0 }
 0xb30   : > { %v2501_v58 = vld [vmem:[#allocation5 + $0x4] sm:$0xf] }
 0xb31   : > { %v2802_v59 = vsel %vm2112_vm4, %v2501_v58, 0 }
 0xb32   : > { %4027 = vmatpush3.bf16.msra.mxu0 %v2802_v59 }
 0xb33   : > { %4038 = vmatprep.subr.bf16.mxu0 %v5584_v0 }
 0xb82   : > { %v2544_v60 = vpop.f32.mrb[28].mxu1 }
 0xb83   : > { %v4000_v61 = vpop.f32.mrb[29].mxu1  ;;  %v2688_v62 = vsel %vm1853_vm3, %v2544_v60, -inf }
 0xb84   : > { %2689 = vmax.xlane.f32.xlu0 %v2688_v62  ;;  %v2547_v63 = vpop.f32.mrb[30].mxu1 }
 0xb85   : > { %v4001_v1 = vpop.f32.mrb[31].mxu1 }
 0xbf4   : > { %v2590_v2 = vpop.f32.mrb[32].mxu0  ;;  %v2636_v3 = vpop.f32.mrb[32].mxu1 }
 0xbf5   : > { %v4006_v4 = vpop.f32.mrb[33].mxu0  ;;  %v4012_v5 = vpop.f32.mrb[33].mxu1  ;;  %v2694_v6 = vsel %vm1853_vm3, %v2636_v3, -inf  ;;  %v2691_v7 = vsel %vm1853_vm3, %v2590_v2, -inf }
 0xbf6   : > { %2695 = vmax.xlane.f32.xlu0 %v2694_v6  ;;  %v2639_v8 = vpop.f32.mrb[34].mxu1  ;;  %2692 = vmax.xlane.f32.xlu1 %v2691_v7  ;;  %v2593_v9 = vpop.f32.mrb[34].mxu0 }
 0xbf7   : > { %v4007_v10 = vpop.f32.mrb[35].mxu0  ;;  %v4013_v12 = vpop.f32.mrb[35].mxu1 }
 0xbfc   : > { %v2682_v13 = vpop.f32.mrb[36].mxu0 }
 0xbfd   : > { %v4018_v14 = vpop.f32.mrb[37].mxu0  ;;  %v2697_v15 = vsel %vm1853_vm3, %v2682_v13, -inf }
 0xbfe   : > { %2698 = vmax.xlane.f32.xlu0 %v2697_v15  ;;  %v2685_v16 = vpop.f32.mrb[38].mxu0 }
 0xbff   : > { %v4019_v17 = vpop.f32.mrb[39].mxu0 }
 0xc07   : > { %1761 = vrot.lane.b32.xlu1 %v6415_v50, %s5586_s26  ;;  %s5380_s26 = scalar_lea.vmem %s5379_s9, 256 }
 0xc08   : > { %p5382_p7 = scmp.lt.s32.totalorder %s5380_s26, %s5374_s3 }
 0xc0a   : > { %p5383_p10 = por %p5382_p7, %p5381_p2 }
 0xc0c   : > { %p5384_p0 = pnand %p5383_p10, %p5377_p6 }
 0xc11   : > { %v2690_v18 = vpop.xlane.xlu0 %2689 }
 0xc12   : > { %v2700_v19 = vmax.f32 %v2690_v18, -1e+30 }
 0xc14   : > { %v2716_v20 = vsub.f32 %v2544_v60, %v2700_v19  ;;  %1751 = vrot.lane.b32.xlu0 %v6415_v50, %s5588_s29  ;;  %v2704_v52 = vsub.f32 -1e+30, %v2700_v19 }
 0xc16   : > { %v2720_v21 = vmul.f32 1.442695, %v2716_v20  ;;  %v2708_v53 = vmul.f32 1.442695, %v2704_v52  ;;  %v4464_v20 = vld [vmem:[#allocation38] sm:$0xff]  }
 0xc18   : > { %4498 = vpow2.f32 %v2720_v21 }
 0xc22   : > { %v4499_v22 = vpop.eup %4498 }
 0xc23   : > { %v2748_v23 = vpack.c.bf16 %v4499_v22, %v4499_v22  ;;  %v2732_v47 = vsel %vm1853_vm3, %v4499_v22, 0.0 }
 0xc25   : > { %4023 = vmatmul.mubr.msk.bf16.vlgmr.msra.gmra.mrb[36].mxu1 %vm1853_vm3, %v2748_v23  ;;  %v4465_v23 = vld [vmem:[#allocation38 + $0x8] sm:$0xff]  }
 0xc26   : > { %4034 = vmatprep.mubr.msk.bf16.mxu1 %vm5585_vm0, %v5584_v0 }
 0xc83   : > { %v6568_v24 = vpop.xlane.xlu0 %2695  ;;  %v2693_v11 = vpop.xlane.xlu1 %2692 }
 0xc84   : > { %v2702_v25 = vmax.f32 %v6568_v24, -1e+30  ;;  %v2701_v26 = vmax.f32 %v2693_v11, -1e+30 }
 0xc86   : > { %v2718_v28 = vsub.f32 %v2636_v3, %v2702_v25  ;;  %v2717_v29 = vsub.f32 %v2590_v2, %v2701_v26  ;;  %v2705_v3 = vsub.f32 -1e+30, %v2701_v26  ;;  %v2706_v4 = vsub.f32 -1e+30, %v2702_v25 }
 0xc87   : > { %v1762_v30 = vpop.permute.xlu1 %1761 }
 0xc88   : > { %v2724_v31 = vmul.f32 1.442695, %v2718_v28  ;;  %1765 = vst.msk [vmem:[#allocation5 + $0xc] sm:$0xf] %vm1557_vm2, %v1762_v30  ;;  %v2722_v50 = vmul.f32 1.442695, %v2717_v29 }
 0xc89   : > { %v2710_v5 = vmul.f32 1.442695, %v2705_v3  ;;  %v2712_v6 = vmul.f32 1.442695, %v2706_v4  ;;  %v4468_v3 = vld [vmem:[#allocation47] sm:$0xff]   ;;  %v4469_v4 = vld [vmem:[#allocation47 + $0x8] sm:$0xff]  }
 0xc8a   : > { %4500 = vpow2.f32 %v2724_v31 }
 0xc8b   : > { %v2699_v32 = vpop.xlane.xlu0 %2698  ;;  %4502 = vpow2.f32 %v2722_v50 }
 0xc8c   : > { %v2703_v33 = vmax.f32 %v2699_v32, -1e+30 }
 0xc8e   : > { %v2719_v34 = vsub.f32 %v2682_v13, %v2703_v33  ;;  %v2707_v7 = vsub.f32 -1e+30, %v2703_v33 }
 0xc8f   : > { %v1752_v35 = vpop.permute.xlu0 %1751  ;;  %v2503_v40 = vld [vmem:[#allocation5 + $0xc] sm:$0xf] }
 0xc90   : > { %v2726_v27 = vmul.f32 1.442695, %v2719_v34  ;;  %1755 = vst.msk [vmem:[#allocation5 + $0x8] sm:$0xf] %vm1557_vm2, %v1752_v35  ;;  %v2894_v46 = vsel %vm2112_vm4, %v2503_v40, 0 }
 0xc91   : > { %v2714_v8 = vmul.f32 1.442695, %v2707_v7 }
 0xc92   : > { %4504 = vpow2.f32 %v2726_v27 }
 0xc93   : > { %4506 = vpow2.f32 %v2708_v53 }
 0xc94   : > { %v4501_v37 = vpop.eup %4500 }
 0xc95   : > { %v2738_v38 = vsel %vm1853_vm3, %v4501_v37, 0.0  ;;  %v4503_v39 = vpop.eup %4502  ;;  %v2750_v43 = vpack.c.bf16 %v4501_v37, %v4501_v37 }
 0xc96   : > { %2739 = vadd.xlane.f32.xlu0 %v2738_v38  ;;  %v2735_v42 = vsel %vm1853_vm3, %v4503_v39, 0.0  ;;  %v2749_v44 = vpack.c.bf16 %v4503_v39, %v4503_v39 }
 0xc97   : > { %v2502_v41 = vld [vmem:[#allocation5 + $0x8] sm:$0xf]  ;;  %2736 = vadd.xlane.f32.xlu1 %v2735_v42 }
 0xc98   : > { %v2848_v45 = vsel %vm2112_vm4, %v2502_v41, 0  ;;  %4029 = vmatmul.mubr.msk.bf16.vlgmr.msra.gmra.mrb[40].mxu0 %vm1853_vm3, %v2749_v44 }
 0xc99   : > { %4033 = vmatpush3.bf16.msra.mxu1 %v2848_v45  ;;  %4039 = vmatpush3.bf16.msra.mxu0 %v2894_v46 }
 0xc9a   : > { %4044 = vmatprep.subr.bf16.mxu1 %v5584_v0  ;;  %4040 = vmatprep.mubr.msk.bf16.mxu0 %vm5585_vm0, %v5584_v0 }
 0xc9b   : > { %4052 = vmatprep.subr.bf16.mxu0 %v5584_v0  ;;  %2733 = vadd.xlane.f32.xlu1 %v2732_v47 }
 0xc9c   : > { %4035 = vmatmul.mubr.msk.bf16.vlgmr.msra.gmra.mrb[40].mxu1 %vm1853_vm3, %v2750_v43  ;;  %v4505_v48 = vpop.eup %4504 }
 0xc9d   : > { %4048 = vmatprep.mubr.msk.bf16.mxu1 %vm5585_vm0, %v5584_v0  ;;  %v2741_v49 = vsel %vm1853_vm3, %v4505_v48, 0.0  ;;  %v2751_v51 = vpack.c.bf16 %v4505_v48, %v4505_v48  ;;  %v4507_v54 = vpop.eup %4506  ;;  %4045 = vmatpush3.bf16.msra.mxu1 %v4464_v20 }
 0xc9e   : > { %2742 = vadd.xlane.f32.xlu0 %v2741_v49  ;;  %v2728_v55 = vmul.f32 0.0, %v4507_v54  ;;  %4046 = vmatprep.subr.bf16.mxu1 %v5584_v0 }
 0xca0   : > { %4041 = vmatmul.mubr.msk.bf16.vlgmr.msra.gmra.mrb[44].mxu0 %vm1853_vm3, %v2751_v51  ;;  %v3802_v51 = vld [vmem:[#allocation39] ss:$0 sm:$0xff] }
 0xca1   : > { %4056 = vmatprep.mubr.msk.bf16.mxu0 %vm5585_vm0, %v5584_v0  ;;  %4047 = vmatpush3.bf16.msra.mxu1 %v4465_v23 }
 0xca2   : > { %4060 = vmatprep.subr.bf16.mxu1 %v5584_v0 }
 0xcf8   : > { %v2792_v56 = vpop.f32.mrb[36].mxu1 }
 0xcf9   : > { %v2936_v57 = vadd.f32 %v2792_v56, %v2728_v55  ;;  %v4024_v58 = vpop.f32.mrb[37].mxu1 }
 0xcfa   : > { %v2795_v59 = vpop.f32.mrb[38].mxu1 }
 0xcfb   : > { %v4025_v60 = vpop.f32.mrb[39].mxu1 }
 0xd23   : > { %v2740_v13 = vpop.xlane.xlu0 %2739 }
 0xd24   : > { %v2737_v61 = vpop.xlane.xlu1 %2736 }
 0xd28   : > { %v2734_v62 = vpop.xlane.xlu1 %2733 }
 0xd29   : > { %v2744_v63 = vadd.f32 %v2734_v62, %v2728_v55 }
 0xd2b   : > { %4508 = vrcp.f32 %v2744_v63  ;;  %v2743_v18 = vpop.xlane.xlu0 %2742 }
 0xd2c   : > { %4510 = vpow2.f32 %v2710_v5 }
 0xd2d   : > { %4512 = vpow2.f32 %v2712_v6 }
 0xd2e   : > { %4514 = vpow2.f32 %v2714_v8  ;;  %v3806_v8 = vld [vmem:[#allocation41] ss:$0 sm:$0xff] }
 0xd35   : > { %v4509_v1 = vpop.eup %4508 }
 0xd36   : > { %v2944_v2 = vmul.f32 %v4509_v1, %v2936_v57  ;;  %v4511_v9 = vpop.eup %4510  ;;  %v4466_v1 = vld [vmem:[#allocation44] sm:$0xff]  }
 0xd37   : > { %v4513_v10 = vpop.eup %4512  ;;  %v2729_v12 = vmul.f32 0.0, %v4511_v9  ;;  %4053 = vmatpush3.bf16.msra.mxu0 %v4466_v1 }
 0xd38   : > { %v2730_v15 = vmul.f32 0.0, %v4513_v10  ;;  %v4515_v17 = vpop.eup %4514  ;;  %4054 = vmatprep.subr.bf16.mxu0 %v5584_v0  ;;  %v3807_v10 = vld [vmem:[#allocation42] ss:$0 sm:$0xff] }
 0xd39   : > { %v2745_v14 = vadd.f32 %v2737_v61, %v2729_v12  ;;  %v2731_v19 = vmul.f32 0.0, %v4515_v17  ;;  %v3808_v17 = vld [vmem:[#allocation45] ss:$0 sm:$0xff] }
 0xd3a   : > { %v2746_v16 = vadd.f32 %v2740_v13, %v2730_v15 }
 0xd3b   : > { %4516 = vrcp.f32 %v2745_v14  ;;  %v2747_v21 = vadd.f32 %v2743_v18, %v2731_v19 }
 0xd3c   : > { %4518 = vrcp.f32 %v2746_v16  ;;  %v4471_v16 = vld [vmem:[#allocation47 + $0x18] sm:$0xff]  }
 0xd3d   : > { %4520 = vrcp.f32 %v2747_v21 }
 0xd45   : > { %v4517_v25 = vpop.eup %4516 }
 0xd46   : > { %v4519_v32 = vpop.eup %4518 }
 0xd47   : > { %v4521_v39 = vpop.eup %4520 }
 0xd6b   : > { %v2838_v22 = vpop.f32.mrb[40].mxu0 }
 0xd6c   : > { %v2937_v24 = vadd.f32 %v2838_v22, %v2729_v12  ;;  %v4030_v11 = vpop.f32.mrb[41].mxu0 }
 0xd6d   : > { %v2841_v26 = vpop.f32.mrb[42].mxu0  ;;  %v3812_v11 = vld [vmem:[#allocation48] ss:$0 sm:$0xff] }
 0xd6e   : > { %v2945_v29 = vmul.f32 %v4517_v25, %v2937_v24  ;;  %v4031_v30 = vpop.f32.mrb[43].mxu0 }
 0xd6f   : > { %v2884_v28 = vpop.f32.mrb[40].mxu1 }
 0xd70   : > { %v2938_v31 = vadd.f32 %v2884_v28, %v2730_v15  ;;  %v4036_v50 = vpop.f32.mrb[41].mxu1  ;;  %2949 = vrot.lane.b32.xlu0 %v2945_v29, %s5589_s4  ;;  %v4470_v15 = vld [vmem:[#allocation47 + $0x10] sm:$0xff]  }
 0xd71   : > { %v2887_v33 = vpop.f32.mrb[42].mxu1 }
 0xd72   : > { %v2946_v34 = vmul.f32 %v4519_v32, %v2938_v31  ;;  %v4037_v35 = vpop.f32.mrb[43].mxu1 }
 0xd73   : > { %v2930_v27 = vpop.f32.mrb[44].mxu0 }
 0xd74   : > { %2953 = vrot.lane.b32.xlu1 %v2946_v34, %s5590_s25  ;;  %v2939_v37 = vadd.f32 %v2930_v27, %v2731_v19  ;;  %v4042_v38 = vpop.f32.mrb[45].mxu0 }
 0xd75   : > { %v2933_v40 = vpop.f32.mrb[46].mxu0 }
 0xd76   : > { %v2947_v41 = vmul.f32 %v4521_v39, %v2939_v37  ;;  %v4043_v42 = vpop.f32.mrb[47].mxu0  ;;  %v3818_v40 = vld [vmem:[#allocation50] ss:$0 sm:$0xff] }
 0xd77   : > { %v3819_v42 = vld [vmem:[#allocation51] ss:$0 sm:$0xff] }
 0xd78   : > { %2957 = vrot.lane.b32.xlu1 %v2947_v41, %s5591_s14 }
 0xde2   : > { %v2950_v45 = vpop.permute.xlu0 %2949 }
 0xde3   : > { %v2960_v46 = vsel %vm1853_vm3, %v2944_v2, %v2950_v45  ;;  %v4467_v2 = vld [vmem:[#allocation44 + $0x8] sm:$0xff]  }
 0xde4   : > { %4055 = vmatpush3.bf16.msra.mxu0 %v4467_v2 }
 0xde6   : > { %v2954_v44 = vpop.permute.xlu1 %2953 }
 0xde7   : > { %v2961_v43 = vsel %vm2319_vm6, %v2960_v46, %v2954_v44 }
 0xdea   : > { %v2958_v47 = vpop.permute.xlu1 %2957 }
 0xdeb   : > { %v2962_v48 = vsel %vm2321_vm7, %v2961_v43, %v2958_v47 }
 0xdec   : > { %v2963_v49 = vpack.c.bf16 %v2962_v48, %v2962_v48 }
 0xdee   : > { %4049 = vmatmul.mubr.msk.bf16.vlgmr.msra.gmra.mrb[44].mxu1 %vm1448_vm1, %v2963_v49 }
 0xdef   : > { %4068 = vmatprep.mubr.msk.bf16.mxu1 %vm5585_vm0, %v5584_v0  ;;  %4061 = vmatpush3.bf16.msra.mxu1 %v4468_v3 }
 0xdf0   : > { %4062 = vmatprep.subr.bf16.mxu1 %v5584_v0 }
 0xdf3   : > { %4063 = vmatpush3.bf16.msra.mxu1 %v4469_v4 }
 0xdf4   : > { %4064 = vmatprep.subr.bf16.mxu1 %v5584_v0 }
 0xdf7   : > { %4065 = vmatpush3.bf16.msra.mxu1 %v4470_v15 }
 0xdf8   : > { %4066 = vmatprep.subr.bf16.mxu1 %v5584_v0 }
 0xdfb   : > { %4067 = vmatpush3.bf16.msra.mxu1 %v4471_v16 }
 0xec1   : > { %v3024_v52 = vpop.f32.mrb[44].mxu1 }
 0xec2   : > { %v3025_v53 = vadd.f32 %v3802_v51, %v3024_v52  ;;  %v4050_v54 = vpop.f32.mrb[45].mxu1 }
 0xec3   : > { %v3027_v55 = vpop.f32.mrb[46].mxu1 }
 0xec4   : > { %v4051_v56 = vpop.f32.mrb[47].mxu1  ;;  %v3030_v57 = vadd.f32 %v3025_v53, %v6522_v36 }
 0xec6   : > { %v3031_v58 = vsel %vm1448_vm1, %v3030_v57, 0.0 }
 0xec7   : > { %3032 = vadd.xlane.f32.xlu0 %v3031_v58 }
 0xf54   : > { %v3033_v59 = vpop.xlane.xlu0 %3032 }
 0xf55   : > { %v3034_v60 = vmul.f32 0.03125, %v3033_v59 }
 0xf57   : > { %v3035_v61 = vsub.f32 %v3030_v57, %v3034_v60 }
 0xf59   : > { %v3036_v62 = vmul.f32 %v3035_v61, %v3035_v61 }
 0xf5b   : > { %v3037_v63 = vsel %vm1448_vm1, %v3036_v62, 0.0 }
 0xf5c   : > { %3038 = vadd.xlane.f32.xlu1 %v3037_v63 }
 0xfe9   : > { %v3039_v36 = vpop.xlane.xlu1 %3038 }
 0xfea   : > { %v3040_v5 = vmul.f32 0.03125, %v3039_v36 }
 0xfec   : > { %v3041_v6 = vadd.f32 1e-05, %v3040_v5 }
 0xfee   : > { %4522 = vrsqrt.f32 %v3041_v6 }
 0xff8   : > { %v4523_v7 = vpop.eup %4522 }
 0xff9   : > { %v3043_v9 = vmul.f32 %v4523_v7, %v3035_v61 }
 0xffb   : > { %v3051_v12 = vmul.f32 %v3806_v8, %v3043_v9 }
 0xffd   : > { %v3059_v13 = vadd.f32 %v3807_v10, %v3051_v12 }
 0xfff   : > { %v3060_v14 = vpack.c.bf16 %v3059_v13, %v3059_v13 }
0x1001   : > { %4057 = vmatmul.mubr.msk.bf16.vlgmr.msra.gmra.mrb[48].mxu0 %vm1448_vm1, %v3060_v14 }
0x10d4   : > { %v3121_v18 = vpop.f32.mrb[48].mxu0 }
0x10d5   : > { %v3122_v19 = vadd.f32 %v3808_v17, %v3121_v18  ;;  %v4058_v20 = vpop.f32.mrb[49].mxu0 }
0x10d6   : > { %v3124_v21 = vpop.f32.mrb[50].mxu0 }
0x10d7   : > { %v3127_v22 = vmax.f32 %v3122_v19, 0.0  ;;  %v4059_v23 = vpop.f32.mrb[51].mxu0 }
0x10d9   : > { %v3128_v24 = vpack.c.bf16 %v3127_v22, %v3127_v22 }
0x10db   : > { %4069 = vmatmul.mubr.msk.bf16.vlgmr.msra.gmra.mrb[48].mxu1 %vm3168_vm8, %v3128_v24 }
0x11ae   : > { %v3206_v25 = vpop.f32.mrb[48].mxu1 }
0x11af   : > { %v3207_v26 = vadd.f32 %v3812_v11, %v3206_v25  ;;  %v4070_v28 = vpop.f32.mrb[49].mxu1 }
0x11b0   : > { %v3209_v29 = vpop.f32.mrb[50].mxu1 }
0x11b1   : > { %v4071_v30 = vpop.f32.mrb[51].mxu1  ;;  %v3212_v31 = vadd.f32 %v3207_v26, %v3059_v13 }
0x11b3   : > { %v3213_v0 = vsel %vm1448_vm1, %v3212_v31, 0.0 }
0x11b4   : > { %3214 = vadd.xlane.f32.xlu0 %v3213_v0 }
0x1241   : > { %v3215_v50 = vpop.xlane.xlu0 %3214 }
0x1242   : > { %v3216_v32 = vmul.f32 0.03125, %v3215_v50 }
0x1244   : > { %v3217_v33 = vsub.f32 %v3212_v31, %v3216_v32 }
0x1246   : > { %v3218_v34 = vmul.f32 %v3217_v33, %v3217_v33 }
0x1248   : > { %v3219_v35 = vsel %vm1448_vm1, %v3218_v34, 0.0 }
0x1249   : > { %3220 = vadd.xlane.f32.xlu0 %v3219_v35 }
0x12d6   : > { %v3221_v27 = vpop.xlane.xlu0 %3220 }
0x12d7   : > { %v3222_v37 = vmul.f32 0.03125, %v3221_v27 }
0x12d9   : > { %v3223_v38 = vadd.f32 1e-05, %v3222_v37 }
0x12db   : > { %4524 = vrsqrt.f32 %v3223_v38 }
0x12e5   : > { %v4525_v39 = vpop.eup %4524 }
0x12e6   : > { %v3225_v41 = vmul.f32 %v4525_v39, %v3217_v33 }
0x12e8   : > { %v3233_v44 = vmul.f32 %v3818_v40, %v3225_v41 }
0x12ea   : > { %v3241_v45 = vadd.f32 %v3819_v42, %v3233_v44 }
0x12ec   : > { %3242 = vst.msk [vmem:[%s1418_s27] sm:$0xff] %vm1448_vm1, %v3241_v45 }
0x12ed   : > { %5387 = shalt.err (!%p5384_p0)
}
0x12ee   : > { %s5388_s19 = scalar_lea.hbm %s6615_s6, 128  ;;  %s5392_s18 = scalar_lea.hbm %s6837_s10, 256 }
0x12ef   : > { %p5389_p11 = scmp.ne.s32.totalorder %s6615_s6, %s5388_s19  ;;  %p5393_p12 = scmp.lt.u32.totalorder %s6615_s6, %s6837_s10 }
0x12f0   : > { %p5394_p5 = scmp.lt.u32.totalorder %s5392_s18, %s5388_s19  ;;  %p5396_p4 = scmp.lt.u32.totalorder %s5388_s19, %s6615_s6 }
0x12f1   : > { %p5390_p1 = pnand %p5389_p11, %p6838_p13 }
0x12f2   : > { %p5395_p3 = por %p5394_p5, %p5393_p12 }
0x12f3   : > { %p5391_p9 = pneg %p5390_p1 }
0x12f4   : > { %p5397_p8 = por %p5396_p4, %p5395_p3 }
0x12f6   : > { %p5398_p6 = pnand %p5397_p8, %p5391_p9 }
0x12f8   : > { %5401 = shalt.err (!%p5398_p6)
}
0x12f9   : > { %4184 = dma.vmem_to_hbm [thread:$0]  (%p6838_p13), %s6617_s5, 128, %s6615_s6, %s3244_s21  }
0x12fa PF: > { %s3270_s29 = sand.u32 1, %s5500_s0   ;;  %p6839_p2 = scmp.ne.s32.totalorder %s6775_s28, 0 }
0x12fb   : > { %p6840_p7 = scmp.ge.s32.totalorder %s5520_s23, 2  ;;  %s3271_s4 = scalar_lea.sflag [#allocation8], %s3270_s29 }
0x12fd   : > { %p4279_p10 = pnand %p6840_p7, %p6839_p2 }
0x12ff   : > { %5495 = dma.done.wait (!%p4279_p10), %s3271_s4, 128  }
0x1300   : > { %5497 = vsyncadd (!%p4279_p10), %s3271_s4, 4294967168  ;;  %s96_s23 = sadd.s32 1, %s5520_s23   ;;  %s6841_s0 = smov %s5504_s15 }
0x1301   : > { %p93_p0 = scmp.ge.s32.totalorder %s96_s23, 4   ;;  %s6842_s15 = smov %s5508_s16 }
0x1302   : > { %s6843_s16 = smov %s5984_s11  ;;  %s6844_s18 = smov %s5516_s22 }
0x1303   : > { %s6845_s22 = smov %s6847_s2  ;;  %95 = sbr.rel (!%p93_p0) target bundleno = 87 (0x57), region = 372 }
0x130a   :  { %3276 = vsyncpa [#allocation7], 1 }
0x130b   :  { %3278 = vsyncpa [#allocation7 + $0x1], 1 }
0x130c   :  { %3279 = vsyncpa [#allocation10], 1 }
0x130d   :  { %3281 = vsyncpa [#allocation10 + $0x1], 1 }
0x130e   :  { %3282 = vsyncpa [#allocation13], 1 }
0x130f   :  { %3284 = vsyncpa [#allocation13 + $0x1], 1 }
0x1310   :  { %3285 = vsyncpa [#allocation16], 1 }
0x1311   :  { %3286 = vsyncpa [#allocation19], 1 }
0x1312   :  { %3287 = vsyncpa [#allocation22], 1 }
0x1313   :  { %3288 = vsyncpa [#allocation25], 1 }
0x1314   :  { %3289 = vsyncpa [#allocation28], 1 }
0x1315   :  { %3290 = vsyncpa [#allocation31], 1 }
0x1316   :  { %3291 = vsyncpa [#allocation34], 1 }
0x1317   :  { %3292 = vsyncpa [#allocation37], 1 }
0x1318   :  { %3293 = vsyncpa [#allocation40], 1 }
0x1319   :  { %3294 = vsyncpa [#allocation43], 1 }
0x131a   :  { %3295 = vsyncpa [#allocation46], 1 }
0x131b   :  { %3296 = vsyncpa [#allocation49], 1 }
0x131c   :  { %3297 = vsyncpa [#allocation52], 1 }
0x131d   :  { %3298 = vsyncpa [#allocation8], 1 }
0x131e   :  { %3300 = vsyncpa [#allocation8 + $0x1], 1 }

</bundles_post_ra>
